<compile_context>
chip_gen: v6e
topology: v6e:2x2x1
jax: 0.10.0
libtpu: 0.0.40
codegen_flags: <defaults>
</compile_context>

<pallas_src>
import functools
import math

import jax
import jax.numpy as jnp
from jax.experimental import pallas as pl
from jax.experimental.pallas import tpu as pltpu

EPS = 1e-5
_VMEM_LIMIT = 32 * 1024 * 1024   # scoped-VMEM budget valid on v5e/v6e/v7x


# --------------------------------------------------------------------------
# pass 1: conv as one wide-K matmul (+ bias/ReLU, or + BN-stat accumulation)
# --------------------------------------------------------------------------
def _make_pass1_kernel(ksize, ho, wo, cin, has_bn, has_relu):
    r = ho * wo

    def kernel(*refs):
        if has_bn:
            x_ref, w_ref, y_ref, sum_ref, sq_ref = refs[:5]
            scratch = refs[5:]
            b_ref = None
        else:
            x_ref, w_ref, b_ref, y_ref = refs[:4]
            scratch = refs[4:]
            sum_ref = sq_ref = None

        # Build the (R, k*k*Cin) bf16 im2col slab in VMEM (static slices only).
        if ksize == 1:
            rows = x_ref[:, 0:ho, 0:wo, :].reshape(r, cin)
        else:
            patch_ref = scratch[0]
            for dy in range(ksize):
                for dx in range(ksize):
                    idx = dy * ksize + dx
                    patch_ref[:, idx * cin:(idx + 1) * cin] = (
                        x_ref[:, dy:dy + ho, dx:dx + wo, :].reshape(r, cin))
            rows = patch_ref[...]

        # Single matmul, K = k*k*Cin: f32 accumulation stays in the MXU path,
        # output ref is written exactly once (no accumulator RMW, no zero-init).
        acc = jnp.dot(rows, w_ref[...], preferred_element_type=jnp.float32)

        if has_bn:
            # conv bias omitted: with batch-stat BN it cancels exactly.
            @pl.when(pl.program_id(0) == 0)
            def _init():
                sum_ref[...] = jnp.zeros_like(sum_ref)
                sq_ref[...] = jnp.zeros_like(sq_ref)

            sum_ref[...] += jnp.sum(acc, axis=0, keepdims=True)
            sq_ref[...] += jnp.sum(acc * acc, axis=0, keepdims=True)
            y_ref[0] = acc.astype(y_ref.dtype)          # bf16 intermediate
        else:
            out = acc + b_ref[...]
            if has_relu:
                out = jnp.maximum(out, 0.0)
            y_ref[0] = out.astype(y_ref.dtype)

    return kernel


# --------------------------------------------------------------------------
# pass 2 (BN only): apply folded scale/shift (+ReLU), cheap mem-bound sweep
# --------------------------------------------------------------------------
def _make_pass2_kernel(has_relu):
    def kernel(y_ref, scale_ref, shift_ref, o_ref):
        v = y_ref[0].astype(jnp.float32) * scale_ref[...] + shift_ref[...]
        if has_relu:
            v = jnp.maximum(v, 0.0)
        o_ref[0] = v

    return kernel


# --------------------------------------------------------------------------
# NHWC core (call this directly inside a network to avoid NCHW round trips)
# --------------------------------------------------------------------------
def _forward_nhwc(x_nhwc, params, *, out_planes, stride, padding, has_bn,
                  has_relu):
    if stride != 1:
        # TODO(synk): stride > 1 not implemented (RSN upsample head is stride=1).
        raise NotImplementedError("conv_bn_relu Pallas kernel supports stride=1 only")

    n, h, w, cin = x_nhwc.shape
    w_mat = params["w"]                       # (k*k*Cin, Cp) bf16
    kk_cin, cp = w_mat.shape
    assert kk_cin % cin == 0, (w_mat.shape, cin)
    ksize = math.isqrt(kk_cin // cin)
    assert ksize * ksize * cin == kk_cin, (w_mat.shape, cin)

    hp, wp = h + 2 * padding, w + 2 * padding
    ho, wo = hp - ksize + 1, wp - ksize + 1
    r = ho * wo

    # bf16 cast + spatial zero-pad (one fused XLA pass under jit).
    xp = jnp.pad(x_nhwc.astype(jnp.bfloat16),
                 ((0, 0), (padding, padding), (padding, padding), (0, 0)))

    x_spec = pl.BlockSpec((1, hp, wp, cin), lambda i: (i, 0, 0, 0))
    w_spec = pl.BlockSpec((kk_cin, cp), lambda i: (0, 0))     # VMEM-resident
    vec_spec = pl.BlockSpec((1, cp), lambda i: (0, 0))        # VMEM-resident
    row_spec = pl.BlockSpec((1, r, cp), lambda i: (i, 0, 0))  # lane-dense rows

    kern1 = _make_pass1_kernel(ksize, ho, wo, cin, has_bn, has_relu)
    scratch = ([pltpu.VMEM((r, kk_cin), jnp.bfloat16)] if ksize > 1 else [])

    if has_bn:
        out_shape = (jax.ShapeDtypeStruct((n, r, cp), jnp.bfloat16),
                     jax.ShapeDtypeStruct((1, cp), jnp.float32),   # sum
                     jax.ShapeDtypeStruct((1, cp), jnp.float32))   # sum of sq
        out_specs = (row_spec, vec_spec, vec_spec)
        inputs = (xp, w_mat)
        in_specs = [x_spec, w_spec]
        dims = ("arbitrary",)      # stat accumulation across tiles
    else:
        out_shape = jax.ShapeDtypeStruct((n, r, cp), jnp.float32)
        out_specs = row_spec
        inputs = (xp, w_mat, params["b"])
        in_specs = [x_spec, w_spec, vec_spec]
        dims = ("parallel",)       # fully independent tiles (v7x: 2 TCs)

    res = pl.pallas_call(
        kern1,
        grid=(n,),
        in_specs=in_specs,
        out_specs=out_specs,
        out_shape=out_shape,
        scratch_shapes=scratch,
        compiler_params=pltpu.CompilerParams(
            dimension_semantics=dims, vmem_limit_bytes=_VMEM_LIMIT),
    )(*inputs)

    if has_bn:
        y_bf, csum, csq = res
        count = float(n * r)
        mean = csum / count
        var = jnp.maximum(csq / count - mean * mean, 0.0)   # f32 sums, clamped
        scale = params["gamma"] * jax.lax.rsqrt(var + EPS)  # gamma padded w/ 0
        shift = params["beta"] - mean * scale

        y = pl.pallas_call(
            _make_pass2_kernel(has_relu),
            grid=(n,),
            in_specs=[row_spec, vec_spec, vec_spec],
            out_specs=row_spec,
            out_shape=jax.ShapeDtypeStruct((n, r, cp), jnp.float32),
            compiler_params=pltpu.CompilerParams(
                dimension_semantics=("parallel",),
                vmem_limit_bytes=_VMEM_LIMIT),
        )(y_bf, scale, shift)
    else:
        y = res

    # drop channel padding (TODO(synk): pixel-pack tiny Cout instead of padding)
    return y[:, :, :out_planes].reshape(n, ho, wo, out_planes)


@functools.partial(
    jax.jit,
    static_argnames=("out_planes", "stride", "padding", "has_bn", "has_relu"))
def conv_bn_relu_forward_nhwc(x_nhwc, params, *, out_planes, stride=1,
                              padding=0, has_bn=True, has_relu=True):
    """NHWC entry point (use inside a network; no layout round trips)."""
    return _forward_nhwc(x_nhwc, params, out_planes=out_planes, stride=stride,
                         padding=padding, has_bn=has_bn, has_relu=has_relu)


@functools.partial(
    jax.jit,
    static_argnames=("out_planes", "stride", "padding", "has_bn", "has_relu"))
def conv_bn_relu_forward(x, params, *, out_planes, stride=1, padding=0,
                         has_bn=True, has_relu=True):
    """PyTorch-parity NCHW entry point (single boundary transpose each way)."""
    xh = jnp.transpose(x, (0, 2, 3, 1))
    y = _forward_nhwc(xh, params, out_planes=out_planes, stride=stride,
                      padding=padding, has_bn=has_bn, has_relu=has_relu)
    return jnp.transpose(y, (0, 3, 1, 2))


# --------------------------------------------------------------------------
# parameter init (PyTorch layout) + one-time kernel-layout preparation
# --------------------------------------------------------------------------
def init_conv_bn_relu_params(key, in_planes, out_planes, kernel_size):
    k1, k2, k3, k4 = jax.random.split(key, 4)
    return {
        "w": 0.05 * jax.random.normal(
            k1, (out_planes, in_planes, kernel_size, kernel_size), jnp.float32),
        "b": 0.05 * jax.random.normal(k2, (out_planes,), jnp.float32),
        "gamma": 1.0 + 0.1 * jax.random.normal(k3, (out_planes,), jnp.float32),
        "beta": 0.1 * jax.random.normal(k4, (out_planes,), jnp.float32),
    }


def prepare_params(p):
    """Pre-transpose / channel-pad / bf16-cast the weights ONCE (not per call)."""
    cout, cin, k, _ = p["w"].shape
    cp = ((cout + 127) // 128) * 128              # lane-dense output channels
    # (Cout, Cin, ky, kx) -> (ky*kx*Cin, Cp); K ordering matches the in-kernel
    # im2col packing (dy, dx, c).
    w = jnp.transpose(p["w"], (2, 3, 1, 0)).reshape(k * k * cin, cout)
    w = jnp.pad(w, ((0, 0), (0, cp - cout))).astype(jnp.bfloat16)

    def pad1(v, fill):
        return jnp.pad(v, (0, cp - cout),
                       constant_values=fill).reshape(1, cp).astype(jnp.float32)

    # gamma padded with 0 -> BN scale of padded lanes is exactly 0.
    return {"w": w, "b": pad1(p["b"], 0.0),
            "gamma": pad1(p["gamma"], 0.0), "beta": pad1(p["beta"], 0.0)}


# --------------------------------------------------------------------------
# pure-JAX reference (same bf16 operands) for correctness checking
# --------------------------------------------------------------------------
def conv_bn_relu_reference(x, p, stride, padding, has_bn, has_relu):
    y = jax.lax.conv_general_dilated(
        x.astype(jnp.bfloat16), p["w"].astype(jnp.bfloat16),
        window_strides=(stride, stride),
        padding=[(padding, padding), (padding, padding)],
        dimension_numbers=("NCHW", "OIHW", "NCHW"),
        preferred_element_type=jnp.float32)
    y = y + p["b"].reshape(1, -1, 1, 1)
    if has_bn:
        mean = jnp.mean(y, axis=(0, 2, 3), keepdims=True)
        var = jnp.mean(jnp.square(y - mean), axis=(0, 2, 3), keepdims=True)
        y = (y - mean) * jax.lax.rsqrt(var + EPS)
        y = y * p["gamma"].reshape(1, -1, 1, 1) + p["beta"].reshape(1, -1, 1, 1)
    if has_relu:
        y = jnp.maximum(y, 0.0)
    return y


# --------------------------------------------------------------------------
if __name__ == "__main__":
    # NOTE: `efficient=True` (torch.utils.checkpoint) is a training-time
    # rematerialization trick with no forward-pass kernel equivalent.
    key = jax.random.PRNGKey(0)
    N = 2
    # (in_planes, out_planes, ksize, stride, padding, has_bn, has_relu, H, W)
    cases = [
        (64, 32, 3, 1, 1, True,  True,  16, 16),   # typical res_conv2-style 3x3
        (64, 32, 1, 1, 0, True,  False, 16, 16),   # u_skip-style 1x1, no relu
        (32,  8, 1, 1, 0, False, True,  16, 16),   # no BN -> conv-bias path
    ]

    for ci, (cin, cout, k, s, p, hbn, hrelu, H, W) in enumerate(cases):
        key, kx, kp = jax.random.split(key, 3)
        x = jax.random.normal(kx, (N, cin, H, W), jnp.float32)
        raw = init_conv_bn_relu_params(kp, cin, cout, k)
        prep = prepare_params(raw)

        out = conv_bn_relu_forward(
            x, prep, out_planes=cout, stride=s, padding=p,
            has_bn=hbn, has_relu=hrelu)
        out = jax.block_until_ready(out)

        ho = (H + 2 * p - k) // s + 1
        wo = (W + 2 * p - k) // s + 1
        assert out.shape == (N, cout, ho, wo), (ci, out.shape)
        assert bool(jnp.all(jnp.isfinite(out))), ci

        ref = conv_bn_relu_reference(x, raw, s, p, hbn, hrelu)
        err = float(jnp.max(jnp.abs(out - ref)))
        assert err < 3e-2, (ci, err)

    print("KERNEL_OK")
</pallas_src>

<mosaic_0001>
module attributes {stable_mosaic.version = 11 : i64} {
  func.func @kernel(%arg0: i32, %arg1: memref<1x18x18x64xbf16, #tpu.memory_space<vmem>>, %arg2: memref<576x128xbf16, #tpu.memory_space<vmem>>, %arg3: memref<1x256x128xbf16, #tpu.memory_space<vmem>>, %arg4: memref<1x128xf32, #tpu.memory_space<vmem>>, %arg5: memref<1x128xf32, #tpu.memory_space<vmem>>, %arg6: memref<256x576xbf16, #tpu.memory_space<vmem>>) attributes {dimension_semantics = [#tpu.dimension_semantics<arbitrary>], iteration_bounds = array<i64: 2>, scalar_prefetch = 0 : i64, scratch_operands = 1 : i64, tpu.core_type = #tpu.core_type<tc>, window_params = [{transform_indices = @transform_0, window_bounds = array<i64: 1, 18, 18, 64>}, {pipeline_mode = #tpu.pipeline_mode<synchronous>, transform_indices = @transform_1, window_bounds = array<i64: 576, 128>}, {transform_indices = @transform_2, window_bounds = array<i64: 1, 256, 128>}, {pipeline_mode = #tpu.pipeline_mode<synchronous>, transform_indices = @transform_3, window_bounds = array<i64: 1, 128>}, {pipeline_mode = #tpu.pipeline_mode<synchronous>, transform_indices = @transform_4, window_bounds = array<i64: 1, 128>}]} {
    %c0 = arith.constant 0 : index
    %c0_0 = arith.constant 0 : index
    %c0_1 = arith.constant 0 : index
    %c0_2 = arith.constant 0 : index
    %0 = vector.load %arg1[%c0, %c0_0, %c0_1, %c0_2] : memref<1x18x18x64xbf16, #tpu.memory_space<vmem>>, vector<1x16x16x64xbf16>
    %1 = vector.shape_cast %0 : vector<1x16x16x64xbf16> to vector<256x64xbf16>
    %c0_3 = arith.constant 0 : index
    %c0_4 = arith.constant 0 : index
    %2 = vector.load %arg6[%c0_3, %c0_4] : memref<256x576xbf16, #tpu.memory_space<vmem>>, vector<256x64xbf16>
    tpu.vector_store %arg6[%c0_3, %c0_4], %1 {strides = array<i32>} : memref<256x576xbf16, #tpu.memory_space<vmem>>, vector<256x64xbf16>,
    %c0_5 = arith.constant 0 : index
    %c0_6 = arith.constant 0 : index
    %c1 = arith.constant 1 : index
    %c0_7 = arith.constant 0 : index
    %3 = vector.load %arg1[%c0_5, %c0_6, %c1, %c0_7] : memref<1x18x18x64xbf16, #tpu.memory_space<vmem>>, vector<1x16x16x64xbf16>
    %4 = vector.shape_cast %3 : vector<1x16x16x64xbf16> to vector<256x64xbf16>
    %c0_8 = arith.constant 0 : index
    %c64 = arith.constant 64 : index
    %5 = vector.load %arg6[%c0_8, %c64] : memref<256x576xbf16, #tpu.memory_space<vmem>>, vector<256x64xbf16>
    tpu.vector_store %arg6[%c0_8, %c64], %4 {strides = array<i32>} : memref<256x576xbf16, #tpu.memory_space<vmem>>, vector<256x64xbf16>,
    %c0_9 = arith.constant 0 : index
    %c0_10 = arith.constant 0 : index
    %c2 = arith.constant 2 : index
    %c0_11 = arith.constant 0 : index
    %6 = vector.load %arg1[%c0_9, %c0_10, %c2, %c0_11] : memref<1x18x18x64xbf16, #tpu.memory_space<vmem>>, vector<1x16x16x64xbf16>
    %7 = vector.shape_cast %6 : vector<1x16x16x64xbf16> to vector<256x64xbf16>
    %c0_12 = arith.constant 0 : index
    %c128 = arith.constant 128 : index
    %8 = vector.load %arg6[%c0_12, %c128] : memref<256x576xbf16, #tpu.memory_space<vmem>>, vector<256x64xbf16>
    tpu.vector_store %arg6[%c0_12, %c128], %7 {strides = array<i32>} : memref<256x576xbf16, #tpu.memory_space<vmem>>, vector<256x64xbf16>,
    %c0_13 = arith.constant 0 : index
    %c1_14 = arith.constant 1 : index
    %c0_15 = arith.constant 0 : index
    %c0_16 = arith.constant 0 : index
    %9 = vector.load %arg1[%c0_13, %c1_14, %c0_15, %c0_16] : memref<1x18x18x64xbf16, #tpu.memory_space<vmem>>, vector<1x16x16x64xbf16>
    %10 = vector.shape_cast %9 : vector<1x16x16x64xbf16> to vector<256x64xbf16>
    %c0_17 = arith.constant 0 : index
    %c192 = arith.constant 192 : index
    %11 = vector.load %arg6[%c0_17, %c192] : memref<256x576xbf16, #tpu.memory_space<vmem>>, vector<256x64xbf16>
    tpu.vector_store %arg6[%c0_17, %c192], %10 {strides = array<i32>} : memref<256x576xbf16, #tpu.memory_space<vmem>>, vector<256x64xbf16>,
    %c0_18 = arith.constant 0 : index
    %c1_19 = arith.constant 1 : index
    %c1_20 = arith.constant 1 : index
    %c0_21 = arith.constant 0 : index
    %12 = vector.load %arg1[%c0_18, %c1_19, %c1_20, %c0_21] : memref<1x18x18x64xbf16, #tpu.memory_space<vmem>>, vector<1x16x16x64xbf16>
    %13 = vector.shape_cast %12 : vector<1x16x16x64xbf16> to vector<256x64xbf16>
    %c0_22 = arith.constant 0 : index
    %c256 = arith.constant 256 : index
    %14 = vector.load %arg6[%c0_22, %c256] : memref<256x576xbf16, #tpu.memory_space<vmem>>, vector<256x64xbf16>
    tpu.vector_store %arg6[%c0_22, %c256], %13 {strides = array<i32>} : memref<256x576xbf16, #tpu.memory_space<vmem>>, vector<256x64xbf16>,
    %c0_23 = arith.constant 0 : index
    %c1_24 = arith.constant 1 : index
    %c2_25 = arith.constant 2 : index
    %c0_26 = arith.constant 0 : index
    %15 = vector.load %arg1[%c0_23, %c1_24, %c2_25, %c0_26] : memref<1x18x18x64xbf16, #tpu.memory_space<vmem>>, vector<1x16x16x64xbf16>
    %16 = vector.shape_cast %15 : vector<1x16x16x64xbf16> to vector<256x64xbf16>
    %c0_27 = arith.constant 0 : index
    %c320 = arith.constant 320 : index
    %17 = vector.load %arg6[%c0_27, %c320] : memref<256x576xbf16, #tpu.memory_space<vmem>>, vector<256x64xbf16>
    tpu.vector_store %arg6[%c0_27, %c320], %16 {strides = array<i32>} : memref<256x576xbf16, #tpu.memory_space<vmem>>, vector<256x64xbf16>,
    %c0_28 = arith.constant 0 : index
    %c2_29 = arith.constant 2 : index
    %c0_30 = arith.constant 0 : index
    %c0_31 = arith.constant 0 : index
    %18 = vector.load %arg1[%c0_28, %c2_29, %c0_30, %c0_31] : memref<1x18x18x64xbf16, #tpu.memory_space<vmem>>, vector<1x16x16x64xbf16>
    %19 = vector.shape_cast %18 : vector<1x16x16x64xbf16> to vector<256x64xbf16>
    %c0_32 = arith.constant 0 : index
    %c384 = arith.constant 384 : index
    %20 = vector.load %arg6[%c0_32, %c384] : memref<256x576xbf16, #tpu.memory_space<vmem>>, vector<256x64xbf16>
    tpu.vector_store %arg6[%c0_32, %c384], %19 {strides = array<i32>} : memref<256x576xbf16, #tpu.memory_space<vmem>>, vector<256x64xbf16>,
    %c0_33 = arith.constant 0 : index
    %c2_34 = arith.constant 2 : index
    %c1_35 = arith.constant 1 : index
    %c0_36 = arith.constant 0 : index
    %21 = vector.load %arg1[%c0_33, %c2_34, %c1_35, %c0_36] : memref<1x18x18x64xbf16, #tpu.memory_space<vmem>>, vector<1x16x16x64xbf16>
    %22 = vector.shape_cast %21 : vector<1x16x16x64xbf16> to vector<256x64xbf16>
    %c0_37 = arith.constant 0 : index
    %c448 = arith.constant 448 : index
    %23 = vector.load %arg6[%c0_37, %c448] : memref<256x576xbf16, #tpu.memory_space<vmem>>, vector<256x64xbf16>
    tpu.vector_store %arg6[%c0_37, %c448], %22 {strides = array<i32>} : memref<256x576xbf16, #tpu.memory_space<vmem>>, vector<256x64xbf16>,
    %c0_38 = arith.constant 0 : index
    %c2_39 = arith.constant 2 : index
    %c2_40 = arith.constant 2 : index
    %c0_41 = arith.constant 0 : index
    %24 = vector.load %arg1[%c0_38, %c2_39, %c2_40, %c0_41] : memref<1x18x18x64xbf16, #tpu.memory_space<vmem>>, vector<1x16x16x64xbf16>
    %25 = vector.shape_cast %24 : vector<1x16x16x64xbf16> to vector<256x64xbf16>
    %c0_42 = arith.constant 0 : index
    %c512 = arith.constant 512 : index
    %26 = vector.load %arg6[%c0_42, %c512] : memref<256x576xbf16, #tpu.memory_space<vmem>>, vector<256x64xbf16>
    tpu.vector_store %arg6[%c0_42, %c512], %25 {strides = array<i32>} : memref<256x576xbf16, #tpu.memory_space<vmem>>, vector<256x64xbf16>,
    %c0_43 = arith.constant 0 : index
    %c0_44 = arith.constant 0 : index
    %27 = vector.load %arg6[%c0_43, %c0_44] : memref<256x576xbf16, #tpu.memory_space<vmem>>, vector<256x576xbf16>
    %c0_45 = arith.constant 0 : index
    %c0_46 = arith.constant 0 : index
    %28 = vector.load %arg2[%c0_45, %c0_46] : memref<576x128xbf16, #tpu.memory_space<vmem>>, vector<576x128xbf16>
    %cst = arith.constant dense<0.000000e+00> : vector<256x128xf32>
    %29 = tpu.matmul %27, %28, %cst {dimension_numbers = #tpu.dot_dimension_numbers<[1], [0], [0], [1], [0, 0, 1, 1], [], []>} : vector<256x576xbf16>, vector<576x128xbf16>, vector<256x128xf32> -> vector<256x128xf32>
    %c0_i32 = arith.constant 0 : i32
    %30 = arith.cmpi eq, %arg0, %c0_i32 : i32
    %31 = arith.extui %30 : i1 to i32
    %c0_i32_47 = arith.constant 0 : i32
    %32 = arith.cmpi ne, %31, %c0_i32_47 : i32
    scf.if %32 {
      %cst_61 = arith.constant 0.000000e+00 : f32
      %48 = vector.broadcast %cst_61 : f32 to vector<1x128xf32>
      %c0_62 = arith.constant 0 : index
      %c0_63 = arith.constant 0 : index
      %49 = vector.load %arg4[%c0_62, %c0_63] : memref<1x128xf32, #tpu.memory_space<vmem>>, vector<1x128xf32>
      tpu.vector_store %arg4[%c0_62, %c0_63], %48 {strides = array<i32>} : memref<1x128xf32, #tpu.memory_space<vmem>>, vector<1x128xf32>,
      %cst_64 = arith.constant 0.000000e+00 : f32
      %50 = vector.broadcast %cst_64 : f32 to vector<1x128xf32>
      %c0_65 = arith.constant 0 : index
      %c0_66 = arith.constant 0 : index
      %51 = vector.load %arg5[%c0_65, %c0_66] : memref<1x128xf32, #tpu.memory_space<vmem>>, vector<1x128xf32>
      tpu.vector_store %arg5[%c0_65, %c0_66], %50 {strides = array<i32>} : memref<1x128xf32, #tpu.memory_space<vmem>>, vector<1x128xf32>,
    } else {
    }
    %c0_48 = arith.constant 0 : index
    %c0_49 = arith.constant 0 : index
    %33 = vector.load %arg4[%c0_48, %c0_49] : memref<1x128xf32, #tpu.memory_space<vmem>>, vector<1x128xf32>
    %cst_50 = arith.constant dense<0.000000e+00> : vector<128xf32>
    %34 = vector.multi_reduction <add>, %29, %cst_50 [0] : vector<256x128xf32> to vector<128xf32>
    %35 = vector.shape_cast %34 : vector<128xf32> to vector<1x128xf32>
    %36 = arith.addf %33, %35 : vector<1x128xf32>
    %c0_51 = arith.constant 0 : index
    %c0_52 = arith.constant 0 : index
    %37 = vector.load %arg4[%c0_51, %c0_52] : memref<1x128xf32, #tpu.memory_space<vmem>>, vector<1x128xf32>
    tpu.vector_store %arg4[%c0_51, %c0_52], %36 {strides = array<i32>} : memref<1x128xf32, #tpu.memory_space<vmem>>, vector<1x128xf32>,
    %c0_53 = arith.constant 0 : index
    %c0_54 = arith.constant 0 : index
    %38 = vector.load %arg5[%c0_53, %c0_54] : memref<1x128xf32, #tpu.memory_space<vmem>>, vector<1x128xf32>
    %39 = arith.mulf %29, %29 : vector<256x128xf32>
    %cst_55 = arith.constant dense<0.000000e+00> : vector<128xf32>
    %40 = vector.multi_reduction <add>, %39, %cst_55 [0] : vector<256x128xf32> to vector<128xf32>
    %41 = vector.shape_cast %40 : vector<128xf32> to vector<1x128xf32>
    %42 = arith.addf %38, %41 : vector<1x128xf32>
    %c0_56 = arith.constant 0 : index
    %c0_57 = arith.constant 0 : index
    %43 = vector.load %arg5[%c0_56, %c0_57] : memref<1x128xf32, #tpu.memory_space<vmem>>, vector<1x128xf32>
    tpu.vector_store %arg5[%c0_56, %c0_57], %42 {strides = array<i32>} : memref<1x128xf32, #tpu.memory_space<vmem>>, vector<1x128xf32>,
    %44 = arith.truncf %29 : vector<256x128xf32> to vector<256x128xbf16>
    %c0_58 = arith.constant 0 : index
    %c0_59 = arith.constant 0 : index
    %c0_60 = arith.constant 0 : index
    %45 = vector.load %arg3[%c0_58, %c0_59, %c0_60] : memref<1x256x128xbf16, #tpu.memory_space<vmem>>, vector<1x256x128xbf16>
    %46 = vector.shape_cast %45 : vector<1x256x128xbf16> to vector<256x128xbf16>
    %47 = vector.shape_cast %44 : vector<256x128xbf16> to vector<1x256x128xbf16>
    tpu.vector_store %arg3[%c0_58, %c0_59, %c0_60], %47 {strides = array<i32>} : memref<1x256x128xbf16, #tpu.memory_space<vmem>>, vector<1x256x128xbf16>,
    return
  }
  func.func @transform_0(%arg0: i32) -> (i32, i32, i32, i32) {
    %c0_i32 = arith.constant 0 : i32
    %c0_i32_0 = arith.constant 0 : i32
    %c0_i32_1 = arith.constant 0 : i32
    %c0_i32_2 = arith.constant 0 : i32
    return %arg0, %c0_i32, %c0_i32_0, %c0_i32_1 : i32, i32, i32, i32
  }
  func.func @transform_1(%arg0: i32) -> (i32, i32) {
    %c0_i32 = arith.constant 0 : i32
    %c0_i32_0 = arith.constant 0 : i32
    %c0_i32_1 = arith.constant 0 : i32
    return %c0_i32, %c0_i32_0 : i32, i32
  }
  func.func @transform_2(%arg0: i32) -> (i32, i32, i32) {
    %c0_i32 = arith.constant 0 : i32
    %c0_i32_0 = arith.constant 0 : i32
    %c0_i32_1 = arith.constant 0 : i32
    return %arg0, %c0_i32, %c0_i32_0 : i32, i32, i32
  }
  func.func @transform_3(%arg0: i32) -> (i32, i32) {
    %c0_i32 = arith.constant 0 : i32
    %c0_i32_0 = arith.constant 0 : i32
    %c0_i32_1 = arith.constant 0 : i32
    return %c0_i32, %c0_i32_0 : i32, i32
  }
  func.func @transform_4(%arg0: i32) -> (i32, i32) {
    %c0_i32 = arith.constant 0 : i32
    %c0_i32_0 = arith.constant 0 : i32
    %c0_i32_1 = arith.constant 0 : i32
    return %c0_i32, %c0_i32_0 : i32, i32
  }
}

module attributes {stable_mosaic.version = 11 : i64} {
  func.func @kernel(%arg0: i32, %arg1: memref<1x256x128xbf16, #tpu.memory_space<vmem>>, %arg2: memref<1x128xf32, #tpu.memory_space<vmem>>, %arg3: memref<1x128xf32, #tpu.memory_space<vmem>>, %arg4: memref<1x256x128xf32, #tpu.memory_space<vmem>>) attributes {dimension_semantics = [#tpu.dimension_semantics<parallel>], iteration_bounds = array<i64: 2>, scalar_prefetch = 0 : i64, scratch_operands = 0 : i64, tpu.core_type = #tpu.core_type<tc>, window_params = [{transform_indices = @transform_0, window_bounds = array<i64: 1, 256, 128>}, {pipeline_mode = #tpu.pipeline_mode<synchronous>, transform_indices = @transform_1, window_bounds = array<i64: 1, 128>}, {pipeline_mode = #tpu.pipeline_mode<synchronous>, transform_indices = @transform_2, window_bounds = array<i64: 1, 128>}, {transform_indices = @transform_3, window_bounds = array<i64: 1, 256, 128>}]} {
    %c0 = arith.constant 0 : index
    %c0_0 = arith.constant 0 : index
    %c0_1 = arith.constant 0 : index
    %0 = vector.load %arg1[%c0, %c0_0, %c0_1] : memref<1x256x128xbf16, #tpu.memory_space<vmem>>, vector<1x256x128xbf16>
    %1 = vector.shape_cast %0 : vector<1x256x128xbf16> to vector<256x128xbf16>
    %2 = arith.extf %1 : vector<256x128xbf16> to vector<256x128xf32>
    %c0_2 = arith.constant 0 : index
    %c0_3 = arith.constant 0 : index
    %3 = vector.load %arg2[%c0_2, %c0_3] : memref<1x128xf32, #tpu.memory_space<vmem>>, vector<1x128xf32>
    %4 = vector.broadcast %3 : vector<1x128xf32> to vector<256x128xf32>
    %5 = arith.mulf %2, %4 : vector<256x128xf32>
    %c0_4 = arith.constant 0 : index
    %c0_5 = arith.constant 0 : index
    %6 = vector.load %arg3[%c0_4, %c0_5] : memref<1x128xf32, #tpu.memory_space<vmem>>, vector<1x128xf32>
    %7 = vector.broadcast %6 : vector<1x128xf32> to vector<256x128xf32>
    %8 = arith.addf %5, %7 : vector<256x128xf32>
    %cst = arith.constant 0.000000e+00 : f32
    %9 = vector.broadcast %cst : f32 to vector<256x128xf32>
    %10 = arith.maximumf %8, %9 : vector<256x128xf32>
    %c0_6 = arith.constant 0 : index
    %c0_7 = arith.constant 0 : index
    %c0_8 = arith.constant 0 : index
    %11 = vector.load %arg4[%c0_6, %c0_7, %c0_8] : memref<1x256x128xf32, #tpu.memory_space<vmem>>, vector<1x256x128xf32>
    %12 = vector.shape_cast %11 : vector<1x256x128xf32> to vector<256x128xf32>
    %13 = vector.shape_cast %10 : vector<256x128xf32> to vector<1x256x128xf32>
    tpu.vector_store %arg4[%c0_6, %c0_7, %c0_8], %13 {strides = array<i32>} : memref<1x256x128xf32, #tpu.memory_space<vmem>>, vector<1x256x128xf32>,
    return
  }
  func.func @transform_0(%arg0: i32) -> (i32, i32, i32) {
    %c0_i32 = arith.constant 0 : i32
    %c0_i32_0 = arith.constant 0 : i32
    %c0_i32_1 = arith.constant 0 : i32
    return %arg0, %c0_i32, %c0_i32_0 : i32, i32, i32
  }
  func.func @transform_1(%arg0: i32) -> (i32, i32) {
    %c0_i32 = arith.constant 0 : i32
    %c0_i32_0 = arith.constant 0 : i32
    %c0_i32_1 = arith.constant 0 : i32
    return %c0_i32, %c0_i32_0 : i32, i32
  }
  func.func @transform_2(%arg0: i32) -> (i32, i32) {
    %c0_i32 = arith.constant 0 : i32
    %c0_i32_0 = arith.constant 0 : i32
    %c0_i32_1 = arith.constant 0 : i32
    return %c0_i32, %c0_i32_0 : i32, i32
  }
  func.func @transform_3(%arg0: i32) -> (i32, i32, i32) {
    %c0_i32 = arith.constant 0 : i32
    %c0_i32_0 = arith.constant 0 : i32
    %c0_i32_1 = arith.constant 0 : i32
    return %arg0, %c0_i32, %c0_i32_0 : i32, i32, i32
  }
}

</mosaic_0001>

<bundles_post_ra>
// kernel: conv_bn_relu_forward.3
= control target key start
LH: loop header
LB: loop body
LE: loop exit
PB: predicated region body
PF: predicated region fallthrough
CT: control target
= control target key end

     0   :  { %8 = vsyncpa [#allocation3], 0  ;;  %s905_s0 = inlined_call_operand.vmem [shape: bf16[2,256,128], index: 0, kind: input, shape index: {}]   ;;  %s906_s1 = inlined_call_operand.vmem [shape: f32[1,128], index: 1, kind: input, shape index: {}]   ;;  %s907_s2 = inlined_call_operand.vmem [shape: f32[1,128], index: 2, kind: input, shape index: {}]   ;;  %s908_s3 = inlined_call_operand.hbm [shape: f32[2,256,128], index: 3, kind: output, shape index: {}]  }
   0x1   :  { %10 = vsyncpa [#allocation3 + $0x1], 0  ;;  %s672_s12 = smov 0   ;;  %s674_s13 = smov 0  }
   0x2   :  { %s676_s14 = smov 0   ;;  %s678_s15 = smov 0  }
   0x3 LB: > { %s693_s16 = sadd.s32 4294967295, %s647_s15   ;;  %s451_s17 = sadd.s32 4294967294, %s647_s15   ;;  %s647_s15 = sphi %s678_s15, %s914_s15   ;;  %s643_s14 = sphi %s676_s14, %s913_s14   ;;  %s639_s13 = sphi %s674_s13, %s912_s13   ;;  %s635_s12 = sphi %s672_s12, %s911_s12  }
   0x4   : > { %s697_s18 = sadd.s32 1, %s647_s15   ;;  %s91_s19 = sadd.s32 1, %s643_s14 }
   0x5   : > { %s88_s20 = ssub.s32 %s647_s15, %s697_s18  ;;  %p101_p0 = scmp.ne.s32.totalorder %s643_s14, %s639_s13 }
   0x6   : > { %p89_p1 = scmp.eq.s32.totalorder %s88_s20, 0  ;;  %p102_p2 = scmp.eq.s32.totalorder %s693_s16, 1 }
   0x7   : > { %p107_p3 = scmp.ne.s32.totalorder %s639_s13, %s635_s12  ;;  %p108_p4 = scmp.eq.s32.totalorder %s451_s17, 1 }
   0x8   : > { %s708_s21 = scalar_select %p89_p1, %s643_s14, %s91_s19  }
   0x9   : > { %p710_p5 = por %p102_p2, %p101_p0  ;;  %p714_p6 = por %p108_p4, %p107_p3 }
   0xa   : > { %p454_p7 = scmp.ge.s32.totalorder %s647_s15, 1  ;;  %p140_p8 = scmp.lt.s32.totalorder %s647_s15, 3 }
   0xc   : > { %p141_p9 = pnand %p454_p7, %p140_p8 }
   0xd   : > { %p164_p10 = scmp.lt.s32.totalorder (!%p141_p9), %s693_s16, 1  ;;  %s161_s4 = sand.u32 (!%p141_p9), 1, %s639_s13  }
   0xe   : > { %144 = sbr.rel (%p141_p9) target bundleno = 73 (0x49), region = 32  ;;  %s455_s7 = sshll.u32 (!%p141_p9), %s161_s4, 8 }
   0xf   : > { %s764_s8 = scalar_lea.vmem (!%p141_p9), [#allocation2], %s455_s7  ;;  %s466_s9 = sshll.u32 (!%p141_p9), %s693_s16, 12 }
  0x10   : > { %s389_s10 = sshll.u32 (!%p141_p9), %s764_s8, 4  ;;  %s851_s17 = scalar_lea.hbm (!%p141_p9), %s908_s3, %s466_s9  ;;  %s853_s10 = int_to_ptr.vmem [resolvable:$true] %s389_s10 }
  0x11   : > { %s865_s19 = scalar_lea.sflag (!%p141_p9), [#allocation3], %s161_s4  ;;  %s587_s20 = scalar_lea.vmem (!%p141_p9), %s853_s10, 4096 }
  0x12   : > { %p588_p11 = scmp.ne.s32.totalorder (!%p141_p9), %s853_s10, %s587_s20 }
  0x13   : > { %s165_s24 = scalar_select %p164_p10, %s693_s16, 1  ;;  %v730_v0 = vld [vmem:[%s906_s1] ss:$0 sm:$0xff] }
  0x14   : > { %v740_v9 = vld [vmem:[%s907_s2] ss:$0 sm:$0xff]  ;;  %p589_p12 = pnand %p588_p11, %p710_p5 }
  0x15   : > { %s465_s25 = sshll.u32 %s165_s24, 7  ;;  %s649_s24 = smov [#allocation2]  }
  0x16   : > { %s725_s28 = scalar_lea.vmem %s905_s0, %s465_s25  ;;  %p590_p13 = pneg %p589_p12 }
  0x17   : > { %v468_v1 = vld [vmem:[%s725_s28] sm:$0xff]   ;;  %v531_v2 = vld [vmem:[%s725_s28 + $0x8] sm:$0xff]   ;;  %v532_v3 = vld [vmem:[%s725_s28 + $0x10] sm:$0xff]   ;;  %s591_s25 = sshll.u32 %s649_s24, 4  ;;  %s592_s25 = int_to_ptr.vmem [resolvable:$false] %s591_s25 }
  0x18   : > { %v469_v4 = vunpack.c.l.bf16 %v468_v1  ;;  %v470_v5 = vunpack.c.h.bf16 %v468_v1  ;;  %v473_v6 = vunpack.c.l.bf16 %v531_v2  ;;  %v474_v7 = vunpack.c.h.bf16 %v531_v2  ;;  %v533_v8 = vld [vmem:[%s725_s28 + $0x18] sm:$0xff]   ;;  %v534_v30 = vld [vmem:[%s725_s28 + $0x20] sm:$0xff]   ;;  %v535_v31 = vld [vmem:[%s725_s28 + $0x28] sm:$0xff]   ;;  %s593_s26 = scalar_lea.vmem %s592_s25, 8192  ;;  %p594_p0 = scmp.lt.s32.totalorder %s853_s10, %s592_s25 }
  0x19   : > { %v477_v10 = vunpack.c.l.bf16 %v532_v3  ;;  %v478_v11 = vunpack.c.h.bf16 %v532_v3  ;;  %v481_v12 = vunpack.c.l.bf16 %v533_v8  ;;  %v482_v13 = vunpack.c.h.bf16 %v533_v8  ;;  %v536_v36 = vld [vmem:[%s725_s28 + $0x30] sm:$0xff]   ;;  %v537_v37 = vld [vmem:[%s725_s28 + $0x38] sm:$0xff]   ;;  %v538_v3 = vld [vmem:[%s725_s28 + $0x40] sm:$0xff]   ;;  %p595_p1 = scmp.lt.s32.totalorder %s593_s26, %s587_s20 }
  0x1a   : > { %v240_v14 = vmul.f32 %v469_v4, %v730_v0  ;;  %v241_v15 = vmul.f32 %v470_v5, %v730_v0  ;;  %v242_v16 = vmul.f32 %v473_v6, %v730_v0  ;;  %v243_v17 = vmul.f32 %v474_v7, %v730_v0  ;;  %v539_v4 = vld [vmem:[%s725_s28 + $0x48] sm:$0xff]  }
  0x1b   : > { %v244_v18 = vmul.f32 %v477_v10, %v730_v0  ;;  %v245_v19 = vmul.f32 %v478_v11, %v730_v0  ;;  %v246_v20 = vmul.f32 %v481_v12, %v730_v0  ;;  %v247_v21 = vmul.f32 %v482_v13, %v730_v0  ;;  %v540_v10 = vld [vmem:[%s725_s28 + $0x50] sm:$0xff]   ;;  %v541_v11 = vld [vmem:[%s725_s28 + $0x58] sm:$0xff]   ;;  %p596_p2 = por %p595_p1, %p594_p0 }
  0x1c   : > { %v279_v22 = vadd.f32 %v740_v9, %v240_v14  ;;  %v280_v23 = vadd.f32 %v740_v9, %v241_v15  ;;  %v281_v24 = vadd.f32 %v740_v9, %v242_v16  ;;  %v282_v25 = vadd.f32 %v740_v9, %v243_v17 }
  0x1d   : > { %v283_v26 = vadd.f32 %v740_v9, %v244_v18  ;;  %v284_v27 = vadd.f32 %v740_v9, %v245_v19  ;;  %v285_v28 = vadd.f32 %v740_v9, %v246_v20  ;;  %v286_v29 = vadd.f32 %v740_v9, %v247_v21  ;;  %p597_p3 = pnand %p596_p2, %p590_p13 }
  0x1e   : > { %v311_v32 = vmax.f32 %v279_v22, 0.0  ;;  %v312_v33 = vmax.f32 %v280_v23, 0.0  ;;  %v313_v34 = vmax.f32 %v281_v24, 0.0  ;;  %v314_v35 = vmax.f32 %v282_v25, 0.0 }
  0x1f   : > { %v315_v38 = vmax.f32 %v283_v26, 0.0  ;;  %v316_v39 = vmax.f32 %v284_v27, 0.0  ;;  %v317_v40 = vmax.f32 %v285_v28, 0.0  ;;  %v318_v41 = vmax.f32 %v286_v29, 0.0 }
  0x20   : > { %343 = vst [vmem:[%s764_s8] sm:$0xff] %v311_v32  ;;  %344 = vst [vmem:[%s764_s8 + $0x8] sm:$0xff] %v312_v33  ;;  %v485_v42 = vunpack.c.l.bf16 %v534_v30  ;;  %v486_v43 = vunpack.c.h.bf16 %v534_v30  ;;  %v489_v44 = vunpack.c.l.bf16 %v535_v31  ;;  %v490_v45 = vunpack.c.h.bf16 %v535_v31 }
  0x21   : > { %345 = vst [vmem:[%s764_s8 + $0x10] sm:$0xff] %v313_v34  ;;  %346 = vst [vmem:[%s764_s8 + $0x18] sm:$0xff] %v314_v35  ;;  %v493_v46 = vunpack.c.l.bf16 %v536_v36  ;;  %v494_v47 = vunpack.c.h.bf16 %v536_v36  ;;  %v497_v48 = vunpack.c.l.bf16 %v537_v37  ;;  %v498_v49 = vunpack.c.h.bf16 %v537_v37 }
  0x22   : > { %347 = vst [vmem:[%s764_s8 + $0x20] sm:$0xff] %v315_v38  ;;  %348 = vst [vmem:[%s764_s8 + $0x28] sm:$0xff] %v316_v39  ;;  %v248_v50 = vmul.f32 %v485_v42, %v730_v0  ;;  %v249_v51 = vmul.f32 %v486_v43, %v730_v0  ;;  %v250_v52 = vmul.f32 %v489_v44, %v730_v0  ;;  %v501_v16 = vunpack.c.l.bf16 %v538_v3 }
  0x23   : > { %349 = vst [vmem:[%s764_s8 + $0x30] sm:$0xff] %v317_v40  ;;  %350 = vst [vmem:[%s764_s8 + $0x38] sm:$0xff] %v318_v41  ;;  %v251_v53 = vmul.f32 %v490_v45, %v730_v0  ;;  %v252_v54 = vmul.f32 %v493_v46, %v730_v0  ;;  %v253_v55 = vmul.f32 %v494_v47, %v730_v0  ;;  %v502_v17 = vunpack.c.h.bf16 %v538_v3  ;;  %v542_v40 = vld [vmem:[%s725_s28 + $0x60] sm:$0xff]   ;;  %v543_v41 = vld [vmem:[%s725_s28 + $0x68] sm:$0xff]  }
  0x24   : > { %v254_v56 = vmul.f32 %v497_v48, %v730_v0  ;;  %v255_v57 = vmul.f32 %v498_v49, %v730_v0  ;;  %v287_v58 = vadd.f32 %v740_v9, %v248_v50  ;;  %v288_v59 = vadd.f32 %v740_v9, %v249_v51  ;;  %v544_v46 = vld [vmem:[%s725_s28 + $0x70] sm:$0xff]   ;;  %v545_v47 = vld [vmem:[%s725_s28 + $0x78] sm:$0xff]  }
  0x25   : > { %v289_v60 = vadd.f32 %v740_v9, %v250_v52  ;;  %v290_v61 = vadd.f32 %v740_v9, %v251_v53  ;;  %v291_v62 = vadd.f32 %v740_v9, %v252_v54  ;;  %v292_v63 = vadd.f32 %v740_v9, %v253_v55 }
  0x26   : > { %v293_v1 = vadd.f32 %v740_v9, %v254_v56  ;;  %v294_v2 = vadd.f32 %v740_v9, %v255_v57  ;;  %v319_v5 = vmax.f32 %v287_v58, 0.0  ;;  %v320_v6 = vmax.f32 %v288_v59, 0.0 }
  0x27   : > { %v321_v7 = vmax.f32 %v289_v60, 0.0  ;;  %v322_v8 = vmax.f32 %v290_v61, 0.0  ;;  %v323_v12 = vmax.f32 %v291_v62, 0.0  ;;  %v324_v13 = vmax.f32 %v292_v63, 0.0 }
  0x28   : > { %v325_v14 = vmax.f32 %v293_v1, 0.0  ;;  %v326_v15 = vmax.f32 %v294_v2, 0.0  ;;  %351 = vst [vmem:[%s764_s8 + $0x40] sm:$0xff] %v319_v5  ;;  %352 = vst [vmem:[%s764_s8 + $0x48] sm:$0xff] %v320_v6  ;;  %v505_v18 = vunpack.c.l.bf16 %v539_v4  ;;  %v506_v19 = vunpack.c.h.bf16 %v539_v4 }
  0x29   : > { %353 = vst [vmem:[%s764_s8 + $0x50] sm:$0xff] %v321_v7  ;;  %354 = vst [vmem:[%s764_s8 + $0x58] sm:$0xff] %v322_v8  ;;  %v509_v20 = vunpack.c.l.bf16 %v540_v10  ;;  %v510_v21 = vunpack.c.h.bf16 %v540_v10  ;;  %v513_v22 = vunpack.c.l.bf16 %v541_v11  ;;  %v514_v23 = vunpack.c.h.bf16 %v541_v11 }
  0x2a   : > { %355 = vst [vmem:[%s764_s8 + $0x60] sm:$0xff] %v323_v12  ;;  %356 = vst [vmem:[%s764_s8 + $0x68] sm:$0xff] %v324_v13  ;;  %v256_v24 = vmul.f32 %v501_v16, %v730_v0  ;;  %v257_v25 = vmul.f32 %v502_v17, %v730_v0  ;;  %v258_v26 = vmul.f32 %v505_v18, %v730_v0  ;;  %v517_v52 = vunpack.c.l.bf16 %v542_v40 }
  0x2b   : > { %357 = vst [vmem:[%s764_s8 + $0x70] sm:$0xff] %v325_v14  ;;  %358 = vst [vmem:[%s764_s8 + $0x78] sm:$0xff] %v326_v15  ;;  %v259_v27 = vmul.f32 %v506_v19, %v730_v0  ;;  %v260_v28 = vmul.f32 %v509_v20, %v730_v0  ;;  %v261_v29 = vmul.f32 %v510_v21, %v730_v0  ;;  %v518_v53 = vunpack.c.h.bf16 %v542_v40 }
  0x2c   : > { %v262_v30 = vmul.f32 %v513_v22, %v730_v0  ;;  %v263_v31 = vmul.f32 %v514_v23, %v730_v0  ;;  %v295_v32 = vadd.f32 %v740_v9, %v256_v24  ;;  %v296_v33 = vadd.f32 %v740_v9, %v257_v25 }
  0x2d   : > { %v297_v34 = vadd.f32 %v740_v9, %v258_v26  ;;  %v298_v35 = vadd.f32 %v740_v9, %v259_v27  ;;  %v299_v36 = vadd.f32 %v740_v9, %v260_v28  ;;  %v300_v37 = vadd.f32 %v740_v9, %v261_v29 }
  0x2e   : > { %v301_v38 = vadd.f32 %v740_v9, %v262_v30  ;;  %v302_v39 = vadd.f32 %v740_v9, %v263_v31  ;;  %v327_v42 = vmax.f32 %v295_v32, 0.0  ;;  %v328_v43 = vmax.f32 %v296_v33, 0.0 }
  0x2f   : > { %v329_v44 = vmax.f32 %v297_v34, 0.0  ;;  %v330_v45 = vmax.f32 %v298_v35, 0.0  ;;  %v331_v48 = vmax.f32 %v299_v36, 0.0  ;;  %v332_v49 = vmax.f32 %v300_v37, 0.0 }
  0x30   : > { %v333_v50 = vmax.f32 %v301_v38, 0.0  ;;  %v334_v51 = vmax.f32 %v302_v39, 0.0  ;;  %359 = vst [vmem:[%s764_s8 + $0x80] sm:$0xff] %v327_v42  ;;  %360 = vst [vmem:[%s764_s8 + $0x88] sm:$0xff] %v328_v43  ;;  %v521_v54 = vunpack.c.l.bf16 %v543_v41  ;;  %v522_v55 = vunpack.c.h.bf16 %v543_v41 }
  0x31   : > { %361 = vst [vmem:[%s764_s8 + $0x90] sm:$0xff] %v329_v44  ;;  %362 = vst [vmem:[%s764_s8 + $0x98] sm:$0xff] %v330_v45  ;;  %v525_v56 = vunpack.c.l.bf16 %v544_v46  ;;  %v526_v57 = vunpack.c.h.bf16 %v544_v46  ;;  %v529_v58 = vunpack.c.l.bf16 %v545_v47  ;;  %v530_v59 = vunpack.c.h.bf16 %v545_v47 }
  0x32   : > { %363 = vst [vmem:[%s764_s8 + $0xa0] sm:$0xff] %v331_v48  ;;  %364 = vst [vmem:[%s764_s8 + $0xa8] sm:$0xff] %v332_v49  ;;  %v264_v60 = vmul.f32 %v517_v52, %v730_v0  ;;  %v265_v61 = vmul.f32 %v518_v53, %v730_v0  ;;  %v266_v62 = vmul.f32 %v521_v54, %v730_v0 }
  0x33   : > { %365 = vst [vmem:[%s764_s8 + $0xb0] sm:$0xff] %v333_v50  ;;  %366 = vst [vmem:[%s764_s8 + $0xb8] sm:$0xff] %v334_v51  ;;  %v267_v63 = vmul.f32 %v522_v55, %v730_v0  ;;  %v268_v1 = vmul.f32 %v525_v56, %v730_v0  ;;  %v269_v2 = vmul.f32 %v526_v57, %v730_v0 }
  0x34   : > { %v270_v3 = vmul.f32 %v529_v58, %v730_v0  ;;  %v271_v4 = vmul.f32 %v530_v59, %v730_v0  ;;  %v303_v5 = vadd.f32 %v740_v9, %v264_v60  ;;  %v304_v6 = vadd.f32 %v740_v9, %v265_v61 }
  0x35   : > { %v305_v7 = vadd.f32 %v740_v9, %v266_v62  ;;  %v306_v8 = vadd.f32 %v740_v9, %v267_v63  ;;  %v307_v10 = vadd.f32 %v740_v9, %v268_v1  ;;  %v308_v11 = vadd.f32 %v740_v9, %v269_v2 }
  0x36   : > { %v309_v0 = vadd.f32 %v740_v9, %v270_v3  ;;  %v310_v12 = vadd.f32 %v740_v9, %v271_v4  ;;  %v335_v13 = vmax.f32 %v303_v5, 0.0  ;;  %v336_v14 = vmax.f32 %v304_v6, 0.0 }
  0x37   : > { %v337_v15 = vmax.f32 %v305_v7, 0.0  ;;  %v338_v16 = vmax.f32 %v306_v8, 0.0  ;;  %v339_v17 = vmax.f32 %v307_v10, 0.0  ;;  %v340_v9 = vmax.f32 %v308_v11, 0.0 }
  0x38   : > { %v341_v18 = vmax.f32 %v309_v0, 0.0  ;;  %v342_v19 = vmax.f32 %v310_v12, 0.0  ;;  %367 = vst [vmem:[%s764_s8 + $0xc0] sm:$0xff] %v335_v13  ;;  %368 = vst [vmem:[%s764_s8 + $0xc8] sm:$0xff] %v336_v14 }
  0x39   : > { %369 = vst [vmem:[%s764_s8 + $0xd0] sm:$0xff] %v337_v15  ;;  %370 = vst [vmem:[%s764_s8 + $0xd8] sm:$0xff] %v338_v16 }
  0x3a   : > { %371 = vst [vmem:[%s764_s8 + $0xe0] sm:$0xff] %v339_v17  ;;  %372 = vst [vmem:[%s764_s8 + $0xe8] sm:$0xff] %v340_v9 }
  0x3b   : > { %373 = vst [vmem:[%s764_s8 + $0xf0] sm:$0xff] %v341_v18  ;;  %374 = vst [vmem:[%s764_s8 + $0xf8] sm:$0xff] %v342_v19 }
  0x3c   : > { %600 = shalt.err (!%p597_p3)
}
  0x3d   : > { %s601_s27 = scalar_lea.hbm %s851_s17, 4096  ;;  %s605_s30 = scalar_lea.hbm %s908_s3, 8192 }
  0x3e   : > { %p602_p4 = scmp.ne.s32.totalorder %s851_s17, %s601_s27  ;;  %p606_p9 = scmp.lt.s32.totalorder %s851_s17, %s908_s3 }
  0x3f   : > { %p607_p10 = scmp.lt.s32.totalorder %s605_s30, %s601_s27 }
  0x40   : > { %p603_p7 = pnand %p602_p4, %p710_p5 }
  0x41   : > { %p608_p11 = por %p607_p10, %p606_p9 }
  0x42   : > { %p604_p8 = pneg %p603_p7 }
  0x44   : > { %p609_p12 = pnand %p608_p11, %p604_p8 }
  0x46   : > { %612 = shalt.err (!%p609_p12)
}
  0x47   : > { %s650_s6 = smov 128   ;;  %s651_s7 = smov 8  }
  0x48   : > { %546 = dma.vmem_to_hbm [thread:$0]  (%p710_p5), %s853_s10, 4096, %s851_s17, %s865_s19, %s650_s6, %s650_s6, %s651_s7  }
  0x49 PF: > { %p552_p13 = scmp.ge.s32.totalorder %s647_s15, 2  ;;  %s404_s8 = sand.u32 1, %s635_s12  }
  0x4a   : > { %s405_s9 = scalar_lea.sflag [#allocation3], %s404_s8 }
  0x4b   : > { %p549_p0 = pnand %p552_p13, %p714_p6 }
  0x4d   : > { %p550_p1 = pneg %p549_p0 }
  0x4f   : > { %630 = dma.done.wait (%p550_p1), %s405_s9, 4096  }
  0x50   : > { %632 = vsyncadd (%p550_p1), %s405_s9, 4294963200  ;;  %p13_p2 = scmp.ge.s32.totalorder %s697_s18, 4   ;;  %s911_s12 = smov %s639_s13 }
  0x51   : > { %s912_s13 = smov %s643_s14  ;;  %s913_s14 = smov %s708_s21 }
  0x52   : > { %s914_s15 = smov %s697_s18  ;;  %15 = sbr.rel (!%p13_p2) target bundleno = 3 (0x3), region = 67 }
  0x57   :  { %410 = vsyncpa [#allocation3], 1 }
  0x58   :  { %412 = vsyncpa [#allocation3 + $0x1], 1 }

// kernel: conv_bn_relu_forward.2
= control target key start
LH: loop header
LB: loop body
LE: loop exit
PB: predicated region body
PF: predicated region fallthrough
CT: control target
= control target key end

     0   :  { %s5753_s15 = smov 0   ;;  %s8304_s0 = inlined_call_operand.vmem [shape: bf16[2,18,18,64], index: 0, kind: input, shape index: {}]   ;;  %s8305_s1 = inlined_call_operand.vmem [shape: bf16[576,128], index: 1, kind: input, shape index: {}]   ;;  %s8306_s2 = inlined_call_operand.vmem [shape: bf16[2,256,128], index: 2, kind: output, shape index: {0}]   ;;  %s8307_s3 = inlined_call_operand.vmem [shape: f32[1,128], index: 3, kind: output, shape index: {1}]   ;;  %s8308_s4 = inlined_call_operand.vmem [shape: f32[1,128], index: 4, kind: output, shape index: {2}]  }
   0x1 LB: > { %s5759_s16 = sadd.s32 4294967295, %s5724_s15   ;;  %p4685_p0 = scmp.ge.s32.totalorder %s5724_s15, 1  ;;  %s5724_s15 = sphi %s5753_s15, %s15_s15  }
   0x2   : > { %p157_p1 = scmp.lt.s32.totalorder %s5724_s15, 3 }
   0x4   : > { %p158_p2 = pnand %p4685_p0, %p157_p1 }
   0x5   : > { %p183_p3 = scmp.lt.s32.totalorder (!%p158_p2), %s5759_s16, 1  ;;  %s5726_s10 = smov (!%p158_p2), 64  }
   0x6   : > { %161 = sbr.rel (%p158_p2) target bundleno = 732 (0x2dc), region = 28  ;;  %p5125_p4 = scmp.ne.s32.totalorder (!%p158_p2), %s5759_s16, 0 }
   0xb   : > { %s184_s17 = scalar_select %p183_p3, %s5759_s16, 1  ;;  %v5599_v0 = vld [vmem:[%s8305_s1 + $0x78] sm:$0xff]   ;;  %v5601_v2 = vld [vmem:[%s8305_s1 + $0x70] sm:$0xff]   ;;  %v5603_v4 = vld [vmem:[%s8305_s1 + $0x68] sm:$0xff]   ;;  %vm307_vm0 = vsmask.f32 3328 }
   0xc   : > { %v5600_v1 = vld [vmem:[%s8305_s1 + $0x38] sm:$0xff]   ;;  %5572 = vmatprep.subr.bf16.mxu1 %v5599_v0  ;;  %5288 = vmatprep.subr.bf16.mxu0 %v5599_v0  ;;  %v5602_v3 = vld [vmem:[%s8305_s1 + $0x30] sm:$0xff]   ;;  %vm308_vm1 = vsmask.f32 7440  ;;  %v5604_v17 = vld [vmem:[%s8305_s1 + $0x28] sm:$0xff]   ;;  %vm919_vm3 = vcmask 1042432  }
   0xd   : > { %s5588_s22 = smul.u32 216, %s184_s17  ;;  %s5160_s23 = sshll.u32 %s184_s17, 7  ;;  %5580 = vmatpush3.bf16.msra.mxu1 %v5600_v1  ;;  %5289 = vmatpush3.bf16.msra.mxu0 %v5600_v1  ;;  %v5605_v34 = vld [vmem:[%s8305_s1 + $0x60] sm:$0xff]   ;;  %vm5816_vm2 = vmor %vm307_vm0, %vm308_vm1  ;;  %v5607_v46 = vld [vmem:[%s8305_s1 + $0x58] sm:$0xff]   ;;  %vm920_vm4 = vcmask 1046532   ;;  %vm226_vm5 = vcmask 519168  }
   0xe   : > { %s5780_s30 = scalar_lea.vmem %s8306_s2, %s5160_s23  ;;  %5573 = vmatprep.subr.bf16.mxu1 %v5601_v2  ;;  %5290 = vmatprep.subr.bf16.mxu0 %v5601_v2  ;;  %v5606_v41 = vld [vmem:[%s8305_s1 + $0x20] sm:$0xff]   ;;  %v5608_v57 = vld [vmem:[%s8305_s1 + $0x18] sm:$0xff]   ;;  %vm6002_vm6 = vmor %vm919_vm3, %vm920_vm4  ;;  %vm790_vm7 = vcmask 1043968   ;;  %vm3804_vm8 = vcmask 523264  }
   0xf   : > { %s5785_s7 = scalar_lea.vmem %s8304_s0, %s5588_s22 }
  0x10   : > { %v4729_v5 = vld [vmem:[%s5785_s7 + $0x9c] sm:$0xf]  ;;  %v4705_v6 = vld [vmem:[%s5785_s7 + $0xc] sm:$0xf]  ;;  %v4730_v7 = vld [vmem:[%s5785_s7 + $0xa0] sm:$0xf] }
  0x11   : > { %1211 = vrot.lane.b32.xlu1 %v4729_v5, %s5726_s10  ;;  %1163 = vrot.lane.b32.xlu0 %v4705_v6, %s5726_s10  ;;  %v295_v8 = vld [vmem:[%s5785_s7 + $0x90] sm:$0xf]  ;;  %v296_v9 = vld [vmem:[%s5785_s7 + $0x94] sm:$0xf] }
  0x12   : > { %v599_v10 = vshrl.u32 %v295_v8, 16  ;;  %v602_v11 = vshll.u32 %v295_v8, 16  ;;  %v297_v12 = vld [vmem:[%s5785_s7 + $0x98] sm:$0x1]  ;;  %5581 = vmatpush3.bf16.msra.mxu1 %v5602_v3  ;;  %5291 = vmatpush3.bf16.msra.mxu0 %v5602_v3  ;;  %v608_v13 = vshll.u32 %v296_v9, 16  ;;  %v612_v14 = vshrl.u32 %v296_v9, 16 }
  0x13   : > { %v618_v15 = vshll.u32 %v297_v12, 16  ;;  %v260_v16 = vld [vmem:[%s5785_s7 + $0x4] sm:$0xf]  ;;  %5574 = vmatprep.subr.bf16.mxu1 %v5603_v4  ;;  %5292 = vmatprep.subr.bf16.mxu0 %v5603_v4  ;;  %v4706_v18 = vld [vmem:[%s5785_s7 + $0x10] sm:$0xf] }
  0x14   : > { %v601_v19 = vrot.slane %v599_v10, 4  ;;  %v604_v20 = vrot.slane %v602_v11, 5  ;;  %v261_v21 = vld [vmem:[%s5785_s7 + $0x8] sm:$0x1]  ;;  %v320_v22 = vshll.u32 %v260_v16, 16  ;;  %v324_v23 = vshrl.u32 %v260_v16, 16 }
  0x15   : > { %1213 = vrot.lane.b32.xlu1 %v4730_v7, %s5726_s10  ;;  %v610_v24 = vrot.slane %v608_v13, 5  ;;  %v614_v25 = vrot.slane %v612_v14, 4  ;;  %v5805_v26 = vrot.slane %v618_v15, 5  ;;  %v330_v27 = vshll.u32 %v261_v21, 16  ;;  %v299_v28 = vld [vmem:[%s5785_s7 + $0xa0] sm:$0xf] }
  0x16   : > { %v605_v29 = vor.u32 %v604_v20, %v601_v19  ;;  %v5808_v30 = vrot.slane %v320_v22, 5  ;;  %v326_v31 = vrot.slane %v324_v23, 4  ;;  %v300_v32 = vld [vmem:[%s5785_s7 + $0xa4] sm:$0x1]  ;;  %v632_v33 = vshll.u32 %v299_v28, 16  ;;  %5582 = vmatpush3.bf16.msra.mxu1 %v5604_v17  ;;  %5293 = vmatpush3.bf16.msra.mxu0 %v5604_v17  ;;  %v5609_v3 = vld [vmem:[%s8305_s1 + $0x50] sm:$0xff]  }
  0x17   : > { %v615_v36 = vor.u32 %v614_v25, %v610_v24  ;;  %v332_v37 = vrot.slane %v330_v27, 5  ;;  %v636_v38 = vshrl.u32 %v299_v28, 16  ;;  %v642_v39 = vshll.u32 %v300_v32, 16  ;;  %v259_v40 = vld [vmem:[%s5785_s7] sm:$0xf]  ;;  %5575 = vmatprep.subr.bf16.mxu1 %v5605_v34  ;;  %5294 = vmatprep.subr.bf16.mxu0 %v5605_v34  ;;  %v5610_v9 = vld [vmem:[%s8305_s1 + $0x10] sm:$0xff]  }
  0x18   : > { %v606_v42 = vrot.slane %v605_v29, 4  ;;  %v327_v43 = vor.u32 %v326_v31, %v5808_v30  ;;  %v5825_v44 = vrot.slane %v632_v33, 5  ;;  %v311_v45 = vshrl.u32 %v259_v40, 16  ;;  %v298_v51 = vld [vmem:[%s5785_s7 + $0x9c] sm:$0xf]  ;;  %v5611_v22 = vld [vmem:[%s8305_s1 + $0x48] sm:$0xff]  }
  0x19   : > { %1165 = vrot.lane.b32.xlu1 %v4706_v18, %s5726_s10  ;;  %v616_v47 = vrot.slane %v615_v36, 4  ;;  %v638_v48 = vrot.slane %v636_v38, 4  ;;  %v644_v49 = vrot.slane %v642_v39, 5  ;;  %v314_v50 = vshll.u32 %v259_v40, 16  ;;  %v263_v56 = vld [vmem:[%s5785_s7 + $0x10] sm:$0xf] }
  0x1a   : > { %v611_v52 = vsel %vm5816_vm2, %v606_v42, %v610_v24  ;;  %v328_v53 = vrot.slane %v327_v43, 4  ;;  %v313_v54 = vrot.slane %v311_v45, 4  ;;  %v623_v55 = vshrl.u32 %v298_v51, 16  ;;  %5583 = vmatpush3.bf16.msra.mxu1 %v5606_v41  ;;  %5295 = vmatpush3.bf16.msra.mxu0 %v5606_v41  ;;  %v264_v62 = vld [vmem:[%s5785_s7 + $0x14] sm:$0x1]  ;;  %v5612_v33 = vld [vmem:[%s8305_s1 + $0x8] sm:$0xff]  }
  0x1b   : > { %742 = vrot.lane.b32.xlu0 %v611_v52, %s5726_s10  ;;  %v621_v58 = vsel %vm5816_vm2, %v616_v47, %v5805_v26  ;;  %v639_v59 = vor.u32 %v638_v48, %v5825_v44  ;;  %v316_v60 = vrot.slane %v314_v50, 5  ;;  %v626_v61 = vshll.u32 %v298_v51, 16  ;;  %5576 = vmatprep.subr.bf16.mxu1 %v5607_v46  ;;  %v262_v8 = vld [vmem:[%s5785_s7 + $0xc] sm:$0xf]  ;;  %v301_v27 = vld [vmem:[%s5785_s7 + $0xa8] sm:$0xf] }
  0x1c   : > { %v333_v63 = vsel %vm5816_vm2, %v328_v53, %v332_v37  ;;  %v625_v0 = vrot.slane %v623_v55, 4  ;;  %v344_v1 = vshll.u32 %v263_v56, 16  ;;  %v348_v2 = vshrl.u32 %v263_v56, 16  ;;  %5296 = vmatprep.subr.bf16.mxu0 %v5607_v46  ;;  %v302_v14 = vld [vmem:[%s5785_s7 + $0xac] sm:$0xf] }
  0x1d   : > { %696 = vrot.lane.b32.xlu1 %v333_v63, %s5726_s10  ;;  %v640_v4 = vrot.slane %v639_v59, 4  ;;  %v317_v5 = vor.u32 %v316_v60, %v313_v54  ;;  %v628_v6 = vrot.slane %v626_v61, 5  ;;  %v354_v7 = vshll.u32 %v264_v62, 16  ;;  %v4732_v24 = vld [vmem:[%s5785_s7 + $0xac] sm:$0xf] }
  0x1e   : > { %v5854_v10 = vrot.slane %v344_v1, 5  ;;  %v350_v11 = vrot.slane %v348_v2, 4  ;;  %v335_v12 = vshrl.u32 %v262_v8, 16  ;;  %v338_v13 = vshll.u32 %v262_v8, 16  ;;  %5584 = vmatpush3.bf16.msra.mxu1 %v5608_v57  ;;  %5297 = vmatpush3.bf16.msra.mxu0 %v5608_v57  ;;  %v303_v31 = vld [vmem:[%s5785_s7 + $0xb0] sm:$0x1] }
  0x1f   : > { %744 = vrot.lane.b32.xlu0 %v621_v58, %s5726_s10  ;;  %v645_v15 = vsel %vm5816_vm2, %v640_v4, %v644_v49  ;;  %v318_v16 = vrot.slane %v317_v5, 4  ;;  %v629_v17 = vor.u32 %v628_v6, %v625_v0  ;;  %5577 = vmatprep.subr.bf16.mxu1 %v5609_v3  ;;  %v656_v21 = vshll.u32 %v302_v14, 16  ;;  %v266_v36 = vld [vmem:[%s5785_s7 + $0x1c] sm:$0xf]  ;;  %v4731_v47 = vld [vmem:[%s5785_s7 + $0xa8] sm:$0xf] }
  0x20   : > { %v351_v18 = vor.u32 %v350_v11, %v5854_v10  ;;  %v337_v19 = vrot.slane %v335_v12, 4  ;;  %v340_v20 = vrot.slane %v338_v13, 5  ;;  %5298 = vmatprep.subr.bf16.mxu0 %v5609_v3  ;;  %v660_v26 = vshrl.u32 %v302_v14, 16  ;;  %v4708_v51 = vld [vmem:[%s5785_s7 + $0x1c] sm:$0xf] }
  0x21   : > { %748 = vrot.lane.b32.xlu1 %v645_v15, %s5726_s10  ;;  %v323_v23 = vsel %vm5816_vm2, %v318_v16, %v5808_v30  ;;  %v630_v25 = vrot.slane %v629_v17, 4  ;;  %v356_v29 = vrot.slane %v354_v7, 5  ;;  %v5871_v32 = vrot.slane %v656_v21, 5  ;;  %v5613_v30 = vld [vmem:[%s8305_s1 + $0x40] sm:$0xff]   ;;  %v265_v52 = vld [vmem:[%s5785_s7 + $0x18] sm:$0xf] }
  0x22   : > { %v352_v28 = vrot.slane %v351_v18, 4  ;;  %5585 = vmatpush3.bf16.msra.mxu1 %v5610_v9  ;;  %5299 = vmatpush3.bf16.msra.mxu0 %v5610_v9  ;;  %v662_v34 = vrot.slane %v660_v26, 4  ;;  %v341_v38 = vor.u32 %v340_v20, %v337_v19  ;;  %v647_v39 = vshrl.u32 %v301_v27, 16  ;;  %v305_v57 = vld [vmem:[%s5785_s7 + $0xb8] sm:$0xf] }
  0x23   : > { %694 = vrot.lane.b32.xlu0 %v323_v23, %s5726_s10  ;;  %5578 = vmatprep.subr.bf16.mxu1 %v5611_v22  ;;  %v635_v37 = vsel %vm5816_vm2, %v630_v25, %v5825_v44  ;;  %v650_v40 = vshll.u32 %v301_v27, 16  ;;  %v666_v41 = vshll.u32 %v303_v31, 16  ;;  %v368_v45 = vshll.u32 %v266_v36, 16  ;;  %v5614_v44 = vld [vmem:[%s8305_s1] sm:$0xff]   ;;  %v4707_v4 = vld [vmem:[%s5785_s7 + $0x18] sm:$0xf] }
  0x24   : > { %5300 = vmatprep.subr.bf16.mxu0 %v5611_v22  ;;  %v357_v42 = vsel %vm5816_vm2, %v352_v28, %v356_v29  ;;  %v663_v43 = vor.u32 %v662_v34, %v5871_v32  ;;  %v372_v46 = vshrl.u32 %v266_v36, 16  ;;  %v342_v48 = vrot.slane %v341_v38, 4  ;;  %v267_v58 = vld [vmem:[%s5785_s7 + $0x20] sm:$0x1]  ;;  %v304_v8 = vld [vmem:[%s5785_s7 + $0xb4] sm:$0xf] }
  0x25   : > { %1217 = vrot.lane.b32.xlu1 %v4732_v24, %s5726_s10  ;;  %v649_v49 = vrot.slane %v647_v39, 4  ;;  %v652_v50 = vrot.slane %v650_v40, 5  ;;  %v668_v54 = vrot.slane %v666_v41, 5  ;;  %v5896_v55 = vrot.slane %v368_v45, 5  ;;  %v4734_v9 = vld [vmem:[%s5785_s7 + $0xb8] sm:$0xf] }
  0x26   : > { %5586 = vmatpush3.bf16.msra.mxu1 %v5612_v33  ;;  %5301 = vmatpush3.bf16.msra.mxu0 %v5612_v33  ;;  %v664_v53 = vrot.slane %v663_v43, 4  ;;  %v374_v56 = vrot.slane %v372_v46, 4  ;;  %v347_v59 = vsel %vm5816_vm2, %v342_v48, %v5854_v10  ;;  %v359_v61 = vshrl.u32 %v265_v52, 16  ;;  %v306_v14 = vld [vmem:[%s5785_s7 + $0xbc] sm:$0x1] }
  0x27   : > { %746 = vrot.lane.b32.xlu0 %v635_v37, %s5726_s10  ;;  %5579 = vmatprep.subr.bf16.mxu1 %v5613_v30  ;;  %v653_v60 = vor.u32 %v652_v50, %v649_v49  ;;  %v362_v62 = vshll.u32 %v265_v52, 16  ;;  %v680_v63 = vshll.u32 %v305_v57, 16  ;;  %v684_v0 = vshrl.u32 %v305_v57, 16  ;;  %v269_v15 = vld [vmem:[%s5785_s7 + $0x28] sm:$0xf]  ;;  %v5627_v25 = vld [vmem:[%s8305_s1 + $0xf8] sm:$0xff]  }
  0x28   : > { %5302 = vmatprep.subr.bf16.mxu0 %v5613_v30  ;;  %v669_v1 = vsel %vm5816_vm2, %v664_v53, %v668_v54  ;;  %v375_v2 = vor.u32 %v374_v56, %v5896_v55  ;;  %v378_v3 = vshll.u32 %v267_v58, 16  ;;  %v361_v6 = vrot.slane %v359_v61, 4  ;;  %v268_v28 = vld [vmem:[%s5785_s7 + $0x24] sm:$0xf]  ;;  %v4733_v29 = vld [vmem:[%s5785_s7 + $0xb4] sm:$0xf] }
  0x29   : > { %700 = vrot.lane.b32.xlu1 %v357_v42, %s5726_s10  ;;  %v654_v5 = vrot.slane %v653_v60, 4  ;;  %v364_v7 = vrot.slane %v362_v62, 5  ;;  %v5913_v10 = vrot.slane %v680_v63, 5  ;;  %v686_v11 = vrot.slane %v684_v0, 4  ;;  %v4710_v33 = vld [vmem:[%s5785_s7 + $0x28] sm:$0xf] }
  0x2a   : > { %5587 = vmatpush3.bf16.msra.mxu1 %v5614_v44  ;;  %5303 = vmatpush3.bf16.msra.mxu0 %v5614_v44  ;;  %v376_v12 = vrot.slane %v375_v2, 4  ;;  %v380_v13 = vrot.slane %v378_v3, 5  ;;  %v671_v16 = vshrl.u32 %v304_v8, 16  ;;  %v674_v17 = vshll.u32 %v304_v8, 16  ;;  %v270_v38 = vld [vmem:[%s5785_s7 + $0x2c] sm:$0x1] }
  0x2b   : > { %1215 = vrot.lane.b32.xlu0 %v4731_v47, %s5726_s10  ;;  %v659_v18 = vsel %vm5816_vm2, %v654_v5, %v5871_v32  ;;  %v365_v19 = vor.u32 %v364_v7, %v361_v6  ;;  %v687_v20 = vor.u32 %v686_v11, %v5913_v10  ;;  %v690_v21 = vshll.u32 %v306_v14, 16  ;;  %v4882_v32 = vld [vmem:[%s5785_s7 + $0x1c] sm:$0xf]  ;;  %5400 = vmatprep.subr.bf16.mxu1 %v5627_v25  ;;  %v5938_v41 = vld [vmem:[%s5785_s7 + $0x10] sm:$0xf] }
  0x2c   : > { %v392_v22 = vshll.u32 %v269_v15, 16  ;;  %v396_v23 = vshrl.u32 %v269_v15, 16  ;;  %v381_v24 = vsel %vm5816_vm2, %v376_v12, %v380_v13  ;;  %v673_v26 = vrot.slane %v671_v16, 4  ;;  %v272_v46 = vld [vmem:[%s5785_s7 + $0x34] sm:$0xf] }
  0x2d   : > { %1169 = vrot.lane.b32.xlu1 %v4708_v51, %s5726_s10  ;;  %v676_v27 = vrot.slane %v674_v17, 5  ;;  %v366_v31 = vrot.slane %v365_v19, 4  ;;  %v688_v34 = vrot.slane %v687_v20, 4  ;;  %v692_v36 = vrot.slane %v690_v21, 5  ;;  %v5950_v50 = vld [vmem:[%s5785_s7 + $0x14] sm:$0x1] }
  0x2e   : > { %v5934_v30 = vrot.slane %v392_v22, 5  ;;  %v398_v37 = vrot.slane %v396_v23, 4  ;;  %v383_v39 = vshrl.u32 %v268_v28, 16  ;;  %v386_v40 = vshll.u32 %v268_v28, 16  ;;  %v4881_v52 = vld [vmem:[%s5785_s7 + $0x18] sm:$0xf] }
  0x2f   : > { %698 = vrot.lane.b32.xlu0 %v347_v59, %s5726_s10  ;;  %v677_v42 = vor.u32 %v676_v27, %v673_v26  ;;  %v2246_v43 = vshll.u32 %v4882_v32, 16  ;;  %v2250_v45 = vshrl.u32 %v4882_v32, 16  ;;  %v371_v44 = vsel %vm5816_vm2, %v366_v31, %v5896_v55  ;;  %v4709_v53 = vld [vmem:[%s5785_s7 + $0x24] sm:$0xf]  ;;  %v4883_v56 = vld [vmem:[%s5785_s7 + $0x20] sm:$0x1] }
  0x30   : > { %v693_v47 = vsel %vm5816_vm2, %v688_v34, %v692_v36  ;;  %v399_v48 = vor.u32 %v398_v37, %v5934_v30  ;;  %v402_v49 = vshll.u32 %v270_v38, 16  ;;  %v1885_v51 = vrot.slane %v5938_v41, 5  ;;  %v5960_v62 = vld [vmem:[%s5785_s7 + $0xc] sm:$0xe]  ;;  %v273_v63 = vld [vmem:[%s5785_s7 + $0x38] sm:$0x1] }
  0x31   : > { %752 = vrot.lane.b32.xlu1 %v669_v1, %s5726_s10  ;;  %v385_v54 = vrot.slane %v383_v39, 4  ;;  %v388_v55 = vrot.slane %v386_v40, 5  ;;  %v416_v57 = vshll.u32 %v272_v46, 16  ;;  %v420_v58 = vshrl.u32 %v272_v46, 16  ;;  %v271_v2 = vld [vmem:[%s5785_s7 + $0x30] sm:$0xf] }
  0x32   : > { %v678_v59 = vrot.slane %v677_v42, 4  ;;  %v5957_v60 = vrot.slane %v2246_v43, 5  ;;  %v2252_v61 = vrot.slane %v2250_v45, 4  ;;  %v2237_v0 = vshrl.u32 %v4881_v52, 16  ;;  %v4736_v3 = vld [vmem:[%s5785_s7 + $0xc4] sm:$0xf] }
  0x33   : > { %1167 = vrot.lane.b32.xlu0 %v4707_v4, %s5726_s10  ;;  %v2240_v1 = vshll.u32 %v4881_v52, 16  ;;  %v400_v4 = vrot.slane %v399_v48, 4  ;;  %v404_v5 = vrot.slane %v402_v49, 5  ;;  %v1887_v6 = vrot.slane %v1885_v51, 4  ;;  %v4885_v13 = vld [vmem:[%s5785_s7 + $0x28] sm:$0xf] }
  0x34   : > { %v1888_v7 = vrot.slane %v5950_v50, 5  ;;  %v389_v8 = vor.u32 %v388_v55, %v385_v54  ;;  %v5969_v11 = vrot.slane %v416_v57, 5  ;;  %v422_v12 = vrot.slane %v420_v58, 4  ;;  %v5983_v23 = vld [vmem:[%s5785_s7 + $0x20] sm:$0x1] }
  0x35   : > { %1221 = vrot.lane.b32.xlu1 %v4734_v9, %s5726_s10  ;;  %v2256_v9 = vshll.u32 %v4883_v56, 16  ;;  %v2253_v14 = vor.u32 %v2252_v61, %v5957_v60  ;;  %v4833_v15 = vrot.slane %v5960_v62, 9  ;;  %v426_v16 = vshll.u32 %v273_v63, 16  ;;  %v275_v31 = vld [vmem:[%s5785_s7 + $0x40] sm:$0xf] }
  0x36   : > { %v407_v17 = vshrl.u32 %v271_v2, 16  ;;  %v683_v19 = vsel %vm5816_vm2, %v678_v59, %v5913_v10  ;;  %v2239_v20 = vrot.slane %v2237_v0, 4  ;;  %v2242_v21 = vrot.slane %v2240_v1, 5  ;;  %v4884_v37 = vld [vmem:[%s5785_s7 + $0x24] sm:$0xf] }
  0x37   : > { %750 = vrot.lane.b32.xlu0 %v659_v18, %s5726_s10  ;;  %v5976_v18 = vld [vmem:[%s5785_s7 + $0x1c] sm:$0xf]  ;;  %v410_v22 = vshll.u32 %v271_v2, 16  ;;  %v2270_v25 = vshll.u32 %v4885_v13, 16  ;;  %v2274_v26 = vshrl.u32 %v4885_v13, 16  ;;  %v405_v27 = vsel %vm5816_vm2, %v400_v4, %v404_v5 }
  0x38   : > { %v390_v28 = vrot.slane %v389_v8, 4  ;;  %v1892_v10 = vrot.slane %v5976_v18, 5  ;;  %v5992_v32 = vrot.slane %v2253_v14, 4  ;;  %v5996_v34 = vrot.slane %v426_v16, 5  ;;  %v4735_v38 = vld [vmem:[%s5785_s7 + $0xc0] sm:$0xf] }
  0x39   : > { %704 = vrot.lane.b32.xlu1 %v381_v24, %s5726_s10  ;;  %v4886_v24 = vld [vmem:[%s5785_s7 + $0x2c] sm:$0x1]  ;;  %v409_v36 = vrot.slane %v407_v17, 4  ;;  %v2243_v40 = vor.u32 %v2242_v21, %v2239_v20  ;;  %v412_v42 = vrot.slane %v410_v22, 5  ;;  %v1895_v43 = vrot.slane %v5983_v23, 5 }
  0x3a   : > { %v2280_v45 = vshll.u32 %v4886_v24, 16  ;;  %v6008_v46 = vrot.slane %v2270_v25, 5  ;;  %v440_v48 = vshll.u32 %v275_v31, 16  ;;  %v444_v49 = vshrl.u32 %v275_v31, 16  ;;  %v4712_v50 = vld [vmem:[%s5785_s7 + $0x34] sm:$0xf] }
  0x3b   : > { %1219 = vrot.lane.b32.xlu0 %v4733_v29, %s5726_s10  ;;  %v423_v29 = vor.u32 %v422_v12, %v5969_v11  ;;  %v2261_v54 = vshrl.u32 %v4884_v37, 16  ;;  %v2264_v55 = vshll.u32 %v4884_v37, 16  ;;  %v1889_v56 = vsel %vm6002_vm6, %v1887_v6, %v1888_v7  ;;  %v859_v57 = vld [vmem:[%s5785_s7 + $0x90] sm:$0xe]  ;;  %v860_v58 = vld [vmem:[%s5785_s7 + $0x94] sm:$0xf] }
  0x3c   : > { %v395_v59 = vsel %vm5816_vm2, %v390_v28, %v5934_v30  ;;  %v6028_v61 = vrot.slane %v2243_v40, 4  ;;  %v413_v63 = vor.u32 %v412_v42, %v409_v36  ;;  %v276_v1 = vld [vmem:[%s5785_s7 + $0x44] sm:$0x1]  ;;  %v274_v2 = vld [vmem:[%s5785_s7 + $0x3c] sm:$0xf]  ;;  %v6035_v4 = vrot.slane %v2280_v45, 5 }
  0x3d   : > { %1173 = vrot.lane.b32.xlu1 %v4710_v33, %s5726_s10  ;;  %v5994_v33 = vrot.slane %v2256_v9, 5  ;;  %v6014_v52 = vrot.slane %v423_v29, 4  ;;  %v6037_v5 = vrot.slane %v440_v48, 5  ;;  %v446_v30 = vrot.slane %v444_v49, 4  ;;  %v4711_v6 = vld [vmem:[%s5785_s7 + $0x30] sm:$0xf] }
  0x3e   : > { %v2263_v7 = vrot.slane %v2261_v54, 4  ;;  %v2266_v8 = vrot.slane %v2264_v55, 5  ;;  %v4701_v9 = vrot.slane %v859_v57, 9  ;;  %v1008_v12 = vrot.slane %v860_v58, 5  ;;  %v6042_v16 = vld [vmem:[%s5785_s7 + $0x28] sm:$0xf] }
  0x3f   : > { %702 = vrot.lane.b32.xlu0 %v371_v44, %s5726_s10  ;;  %v2276_v44 = vrot.slane %v2274_v26, 4  ;;  %v450_v13 = vshll.u32 %v276_v1, 16  ;;  %v431_v14 = vshrl.u32 %v274_v2, 16  ;;  %v4888_v17 = vld [vmem:[%s5785_s7 + $0x34] sm:$0xf]  ;;  %v2259_v22 = vsel %vm5816_vm2, %v5992_v32, %v5994_v33 }
  0x40   : > { %v861_v20 = vld [vmem:[%s5785_s7 + $0x98] sm:$0x1]  ;;  %v823_v21 = vld [vmem:[%s5785_s7] sm:$0xe]  ;;  %v1886_v24 = vsel %vm6002_vm6, %v4833_v15, %v1885_v51  ;;  %v6060_v25 = vrot.slane %v413_v63, 4  ;;  %v434_v26 = vshll.u32 %v274_v2, 16  ;;  %v447_v29 = vor.u32 %v446_v30, %v6037_v5 }
  0x41   : > { %756 = vrot.lane.b32.xlu1 %v693_v47, %s5726_s10  ;;  %v6011_v47 = vld [vmem:[%s5785_s7 + $0x18] sm:$0xe]  ;;  %v2267_v31 = vor.u32 %v2266_v8, %v2263_v7  ;;  %v6068_v32 = vld [vmem:[%s5785_s7 + $0x2c] sm:$0x1]  ;;  %v1899_v41 = vrot.slane %v6042_v16, 5  ;;  %v2294_v51 = vshll.u32 %v4888_v17, 16  ;;  %v2249_v2 = vsel %vm5816_vm2, %v6028_v61, %v5957_v60 }
  0x42   : > { %v4834_v0 = vrot.slane %v6011_v47, 9  ;;  %v4889_v62 = vld [vmem:[%s5785_s7 + $0x38] sm:$0x1]  ;;  %v1010_v15 = vrot.slane %v1008_v12, 4  ;;  %v1011_v33 = vrot.slane %v861_v20, 5  ;;  %v4689_v36 = vrot.slane %v823_v21, 9 }
  0x43   : > { %1171 = vrot.lane.b32.xlu0 %v4709_v53, %s5726_s10  ;;  %v6018_v53 = vrot.slane %v1892_v10, 4  ;;  %v6073_v37 = vrot.slane %v450_v13, 5  ;;  %v2298_v40 = vshrl.u32 %v4888_v17, 16  ;;  %v6078_v45 = vrot.slane %v434_v26, 5  ;;  %v278_v48 = vld [vmem:[%s5785_s7 + $0x4c] sm:$0xf] }
  0x44   : > { %v1012_v49 = vsel %vm6002_vm6, %v1010_v15, %v1011_v33  ;;  %v6090_v54 = vrot.slane %v1899_v41, 4  ;;  %v2304_v55 = vshll.u32 %v4889_v62, 16  ;;  %v4887_v57 = vld [vmem:[%s5785_s7 + $0x30] sm:$0xf]  ;;  %v825_v63 = vld [vmem:[%s5785_s7 + $0x8] sm:$0x1] }
  0x45   : > { %1225 = vrot.lane.b32.xlu1 %v4736_v3, %s5726_s10  ;;  %v2277_v3 = vor.u32 %v2276_v44, %v6008_v46  ;;  %v1902_v44 = vrot.slane %v6068_v32, 5  ;;  %1091 = vst.msk [vmem:[#allocation2 + $0x1f8] sm:$0xf] %vm226_vm5, %v1012_v49  ;;  %v2300_v30 = vrot.slane %v2298_v40, 4  ;;  %v277_v7 = vld [vmem:[%s5785_s7 + $0x48] sm:$0xf]  ;;  %v1896_v61 = vsel %vm6002_vm6, %v6018_v53, %v1895_v43 }
  0x46   : > { %v927_v8 = vrot.slane %v825_v63, 5  ;;  %v468_v13 = vshrl.u32 %v278_v48, 16  ;;  %v2288_v17 = vshll.u32 %v4887_v57, 16  ;;  %v4891_v21 = vld [vmem:[%s5785_s7 + $0x40] sm:$0xf]  ;;  %v455_v43 = vshrl.u32 %v277_v7, 16 }
  0x47   : > { %754 = vrot.lane.b32.xlu0 %v683_v19, %s5726_s10  ;;  %v1009_v19 = vsel %vm6002_vm6, %v4701_v9, %v1008_v12  ;;  %v6064_v28 = vrot.slane %v2277_v3, 4  ;;  %v4714_v3 = vld [vmem:[%s5785_s7 + $0x40] sm:$0xf]  ;;  %v218_v9 = vld [vmem:[%s5785_s7 + $0x90] sm:$0xf]  ;;  %v464_v12 = vshll.u32 %v278_v48, 16 }
  0x48   : > { %1090 = vst.msk [vmem:[#allocation2 + $0x1e4] sm:$0xf] %vm226_vm5, %v1009_v19  ;;  %251 = vst.msk [vmem:[#allocation2 + $0x1e0] sm:$0xf] %vm226_vm5, %v218_v9  ;;  %v6126_v19 = vrot.slane %v2304_v55, 5  ;;  %v458_v53 = vshll.u32 %v277_v7, 16  ;;  %v1893_v7 = vsel %vm6002_vm6, %v4834_v0, %v1892_v10 }
  0x49   : > { %708 = vrot.lane.b32.xlu1 %v405_v27, %s5726_s10  ;;  %v824_v27 = vld [vmem:[%s5785_s7 + $0x4] sm:$0xf]  ;;  %v4713_v62 = vld [vmem:[%s5785_s7 + $0x3c] sm:$0xf]  ;;  %v2290_v15 = vrot.slane %v2288_v17, 5 }
  0x4a   : > { %v924_v42 = vrot.slane %v824_v27, 5  ;;  %v195_v26 = vld [vmem:[%s5785_s7 + $0x4] sm:$0xf]  ;;  %v6150_v33 = vld [vmem:[%s5785_s7 + $0x38] sm:$0x1] }
  0x4b   : > { %1223 = vrot.lane.b32.xlu0 %v4735_v38, %s5726_s10  ;;  %v6075_v38 = vrot.slane %v431_v14, 4  ;;  %v2285_v14 = vshrl.u32 %v4887_v57, 16  ;;  %228 = vst.msk [vmem:[#allocation2 + $0x14] sm:$0xf] %vm226_vm5, %v195_v26  ;;  %v4892_v40 = vld [vmem:[%s5785_s7 + $0x44] sm:$0x1] }
  0x4c   : > { %v925_v58 = vsel %vm6002_vm6, %v4689_v36, %v924_v42  ;;  %v926_v1 = vrot.slane %v924_v42, 4  ;;  %v2318_v36 = vshll.u32 %v4891_v21, 16  ;;  %v457_v42 = vrot.slane %v455_v43, 4  ;;  %v221_v48 = vld [vmem:[%s5785_s7 + $0xa0] sm:$0xf] }
  0x4d   : > { %1177 = vrot.lane.b32.xlu1 %v4712_v50, %s5726_s10  ;;  %v429_v50 = vsel %vm5816_vm2, %v6014_v52, %v5996_v34  ;;  %v6102_v34 = vrot.slane %v2267_v31, 4  ;;  %v6104_v52 = vrot.slane %v2294_v51, 5  ;;  %1066 = vst.msk [vmem:[#allocation2 + $0x4] sm:$0xf] %vm226_vm5, %v925_v58  ;;  %v437_v23 = vor.u32 %v6078_v45, %v6075_v38  ;;  %v194_v49 = vld [vmem:[%s5785_s7] sm:$0xf] }
  0x4e   : > { %v928_v60 = vsel %vm6002_vm6, %v926_v1, %v927_v8  ;;  %v470_v31 = vrot.slane %v468_v13, 4  ;;  %v2287_v51 = vrot.slane %v2285_v14, 4  ;;  %v2322_v38 = vshrl.u32 %v4891_v21, 16  ;;  %254 = vst.msk [vmem:[#allocation2 + $0x21c] sm:$0xf] %vm226_vm5, %v221_v48 }
  0x4f   : > { %706 = vrot.lane.b32.xlu0 %v395_v59, %s5726_s10  ;;  %v6100_v59 = vrot.slane %v447_v29, 4  ;;  %1067 = vst.msk [vmem:[#allocation2 + $0x18] sm:$0xf] %vm226_vm5, %v928_v60  ;;  %v2301_v27 = vor.u32 %v2300_v30, %v6104_v52  ;;  %v6142_v29 = vrot.slane %v464_v12, 5  ;;  %v460_v45 = vrot.slane %v458_v53, 5 }
  0x50   : > { %v6161_v55 = vrot.slane %v437_v23, 4  ;;  %227 = vst.msk [vmem:[#allocation2] sm:$0xf] %vm226_vm5, %v194_v49  ;;  %v2328_v30 = vshll.u32 %v4892_v40, 16  ;;  %v6183_v9 = vld [vmem:[%s5785_s7 + $0x30] sm:$0xe]  ;;  %v2273_v10 = vsel %vm5816_vm2, %v6102_v34, %v6008_v46 }
  0x51   : > { %1997 = vrot.lane.b32.xlu1 %v1889_v56, %s5726_s10  ;;  %v6093_v56 = vld [vmem:[%s5785_s7 + $0x24] sm:$0xe]  ;;  %v6163_v57 = vrot.slane %v2301_v27, 4  ;;  %v471_v58 = vor.u32 %v470_v31, %v6142_v29  ;;  %v461_v8 = vor.u32 %v460_v45, %v457_v42  ;;  %v282_v12 = vld [vmem:[%s5785_s7 + $0x5c] sm:$0x1]  ;;  %v453_v14 = vsel %vm5816_vm2, %v6100_v59, %v6073_v37 }
  0x52   : > { %v4835_v20 = vrot.slane %v6093_v56, 9  ;;  %v863_v13 = vld [vmem:[%s5785_s7 + $0xa0] sm:$0xf]  ;;  %v4890_v47 = vld [vmem:[%s5785_s7 + $0x3c] sm:$0xf]  ;;  %v6213_v43 = vrot.slane %v2328_v30, 5 }
  0x53   : > { %1175 = vrot.lane.b32.xlu0 %v4711_v6, %s5726_s10  ;;  %v279_v6 = vld [vmem:[%s5785_s7 + $0x50] sm:$0x1]  ;;  %v6192_v18 = vrot.slane %v471_v58, 4  ;;  %v864_v17 = vld [vmem:[%s5785_s7 + $0xa4] sm:$0x1]  ;;  %v1015_v60 = vrot.slane %v863_v13, 5 }
  0x54   : > { %v1018_v21 = vrot.slane %v864_v17, 5  ;;  %v4716_v46 = vld [vmem:[%s5785_s7 + $0x4c] sm:$0xf]  ;;  %v6211_v34 = vrot.slane %v461_v8, 4  ;;  %v498_v53 = vshll.u32 %v282_v12, 16  ;;  %v2309_v26 = vshrl.u32 %v4890_v47, 16 }
  0x55   : > { %2622 = vrot.lane.b32.xlu1 %v2259_v22, %s5726_s10  ;;  %v219_v22 = vld [vmem:[%s5785_s7 + $0x94] sm:$0xf]  ;;  %v1017_v23 = vrot.slane %v1015_v60, 4  ;;  %v4836_v31 = vrot.slane %v6183_v9, 9  ;;  %v284_v42 = vld [vmem:[%s5785_s7 + $0x64] sm:$0xf] }
  0x56   : > { %252 = vst.msk [vmem:[#allocation2 + $0x1f4] sm:$0xf] %vm226_vm5, %v219_v22  ;;  %v220_v22 = vld [vmem:[%s5785_s7 + $0x9c] sm:$0xf]  ;;  %v280_v27 = vld [vmem:[%s5785_s7 + $0x54] sm:$0xf] }
  0x57   : > { %1995 = vrot.lane.b32.xlu0 %v1886_v24, %s5726_s10  ;;  %v419_v24 = vsel %vm5816_vm2, %v6060_v25, %v5969_v11  ;;  %v474_v11 = vshll.u32 %v279_v6, 16  ;;  %v6145_v25 = vld [vmem:[%s5785_s7 + $0x34] sm:$0xf]  ;;  %v281_v6 = vld [vmem:[%s5785_s7 + $0x58] sm:$0xf]  ;;  %v479_v49 = vshrl.u32 %v280_v27, 16 }
  0x58   : > { %v1906_v1 = vrot.slane %v6145_v25, 5  ;;  %253 = vst.msk [vmem:[#allocation2 + $0x208] sm:$0xf] %vm226_vm5, %v220_v22  ;;  %v862_v45 = vld [vmem:[%s5785_s7 + $0x9c] sm:$0xe]  ;;  %v6237_v58 = vrot.slane %v2309_v26, 4  ;;  %v2307_v26 = vsel %vm5816_vm2, %v6163_v57, %v6126_v19 }
  0x59   : > { %712 = vrot.lane.b32.xlu1 %v429_v50, %s5726_s10  ;;  %v2283_v50 = vsel %vm5816_vm2, %v6064_v28, %v6035_v4  ;;  %v6168_v63 = vrot.slane %v474_v11, 5  ;;  %v2324_v4 = vrot.slane %v2322_v38, 4  ;;  %v2291_v28 = vor.u32 %v2290_v15, %v2287_v51  ;;  %v197_v15 = vld [vmem:[%s5785_s7 + $0x10] sm:$0xf]  ;;  %v828_v12 = vld [vmem:[%s5785_s7 + $0x14] sm:$0x1] }
  0x5a   : > { %v6207_v59 = vrot.slane %v1906_v1, 4  ;;  %v2312_v11 = vshll.u32 %v4890_v47, 16  ;;  %v1019_v51 = vsel %vm6002_vm6, %v1017_v23, %v1018_v21  ;;  %230 = vst.msk [vmem:[#allocation2 + $0x3c] sm:$0xf] %vm226_vm5, %v197_v15  ;;  %v827_v30 = vld [vmem:[%s5785_s7 + $0x10] sm:$0xf] }
  0x5b   : > { %2620 = vrot.lane.b32.xlu0 %v2249_v2, %s5726_s10  ;;  %v6171_v2 = vrot.slane %v2318_v36, 5  ;;  %v6203_v37 = vrot.slane %v2291_v28, 4  ;;  %v443_v36 = vsel %vm5816_vm2, %v6161_v55, %v6037_v5  ;;  %1093 = vst.msk [vmem:[#allocation2 + $0x220] sm:$0xf] %vm226_vm5, %v1019_v51  ;;  %v4702_v5 = vrot.slane %v862_v45, 9 }
  0x5c   : > { %v6235_v55 = vrot.slane %v498_v53, 5  ;;  %v931_v13 = vrot.slane %v827_v30, 5  ;;  %v4715_v47 = vld [vmem:[%s5785_s7 + $0x48] sm:$0xf]  ;;  %v516_v17 = vshrl.u32 %v284_v42, 16  ;;  %v481_v21 = vrot.slane %v479_v49, 4 }
  0x5d   : > { %1181 = vrot.lane.b32.xlu1 %v4714_v3, %s5726_s10  ;;  %v1909_v3 = vrot.slane %v6150_v33, 5  ;;  %v2325_v0 = vor.u32 %v2324_v4, %v6171_v2  ;;  %v1016_v8 = vsel %vm6002_vm6, %v4702_v5, %v1015_v60  ;;  %v6256_v22 = vld [vmem:[%s5785_s7 + $0x40] sm:$0xf]  ;;  %v223_v53 = vld [vmem:[%s5785_s7 + $0xac] sm:$0xf]  ;;  %v477_v15 = vsel %vm5816_vm2, %v6192_v18, %v6168_v63 }
  0x5e   : > { %1092 = vst.msk [vmem:[#allocation2 + $0x20c] sm:$0xf] %vm226_vm5, %v1016_v8  ;;  %256 = vst.msk [vmem:[#allocation2 + $0x244] sm:$0xf] %vm226_vm5, %v223_v53  ;;  %v826_v56 = vld [vmem:[%s5785_s7 + $0xc] sm:$0xe] }
  0x5f   : > { %710 = vrot.lane.b32.xlu0 %v419_v24, %s5726_s10  ;;  %v492_v24 = vshrl.u32 %v281_v6, 16  ;;  %v6226_v38 = vrot.slane %v2325_v0, 4  ;;  %v934_v0 = vrot.slane %v828_v12, 5  ;;  %v518_v19 = vrot.slane %v516_v17, 4  ;;  %v866_v49 = vld [vmem:[%s5785_s7 + $0xac] sm:$0xf] }
  0x60   : > { %v4690_v57 = vrot.slane %v826_v56, 9  ;;  %v1913_v45 = vrot.slane %v6256_v22, 5  ;;  %v867_v30 = vld [vmem:[%s5785_s7 + $0xb0] sm:$0x1]  ;;  %v222_v8 = vld [vmem:[%s5785_s7 + $0xa8] sm:$0xf]  ;;  %v2297_v17 = vsel %vm5816_vm2, %v6203_v37, %v6104_v52 }
  0x61   : > { %2001 = vrot.lane.b32.xlu1 %v1896_v61, %s5726_s10  ;;  %v488_v61 = vshll.u32 %v281_v6, 16  ;;  %v494_v48 = vrot.slane %v492_v24, 4  ;;  %v2314_v6 = vrot.slane %v2312_v11, 5  ;;  %v933_v24 = vrot.slane %v931_v13, 4  ;;  %255 = vst.msk [vmem:[#allocation2 + $0x230] sm:$0xf] %vm226_vm5, %v222_v8 }
  0x62   : > { %v865_v52 = vld [vmem:[%s5785_s7 + $0xa8] sm:$0xe]  ;;  %v4898_v8 = vld [vmem:[%s5785_s7 + $0x5c] sm:$0x1]  ;;  %v2331_v33 = vsel %vm5816_vm2, %v6226_v38, %v6213_v43  ;;  %v224_v25 = vld [vmem:[%s5785_s7 + $0xb4] sm:$0xf] }
  0x63   : > { %1179 = vrot.lane.b32.xlu0 %v4713_v62, %s5726_s10  ;;  %v4894_v62 = vld [vmem:[%s5785_s7 + $0x4c] sm:$0xf]  ;;  %v6228_v40 = vrot.slane %v488_v61, 5  ;;  %257 = vst.msk [vmem:[#allocation2 + $0x258] sm:$0xf] %vm226_vm5, %v224_v25 }
  0x64   : > { %v2342_v4 = vshll.u32 %v4894_v62, 16  ;;  %v2346_v28 = vshrl.u32 %v4894_v62, 16  ;;  %v196_v61 = vld [vmem:[%s5785_s7 + $0xc] sm:$0xf]  ;;  %v6281_v62 = vld [vmem:[%s5785_s7 + $0x44] sm:$0x1] }
  0x65   : > { %2626 = vrot.lane.b32.xlu1 %v2283_v50, %s5726_s10  ;;  %v482_v50 = vshll.u32 %v280_v27, 16  ;;  %v495_v60 = vor.u32 %v494_v48, %v6228_v40  ;;  %229 = vst.msk [vmem:[#allocation2 + $0x28] sm:$0xf] %vm226_vm5, %v196_v61  ;;  %v285_v27 = vld [vmem:[%s5785_s7 + $0x68] sm:$0x1] }
  0x66   : > { %v6266_v23 = vrot.slane %v2342_v4, 5  ;;  %v283_v48 = vld [vmem:[%s5785_s7 + $0x60] sm:$0xf]  ;;  %v522_v4 = vshll.u32 %v285_v27, 16  ;;  %v6339_v27 = vld [vmem:[%s5785_s7 + $0x50] sm:$0x1] }
  0x67   : > { %1999 = vrot.lane.b32.xlu0 %v1893_v7, %s5726_s10  ;;  %v512_v7 = vshll.u32 %v284_v42, 16  ;;  %v484_v32 = vrot.slane %v482_v50, 5 }
  0x69   : > { %716 = vrot.lane.b32.xlu1 %v453_v14, %s5726_s10  ;;  %v1903_v14 = vsel %vm6002_vm6, %v6090_v54, %v1902_v44  ;;  %v1900_v44 = vsel %vm6002_vm6, %v4835_v20, %v1899_v41  ;;  %v4895_v54 = vld [vmem:[%s5785_s7 + $0x50] sm:$0x1]  ;;  %v935_v41 = vsel %vm6002_vm6, %v933_v24, %v934_v0  ;;  %v2315_v20 = vor.u32 %v2314_v6, %v6237_v58  ;;  %v6298_v58 = vld [vmem:[%s5785_s7 + $0x3c] sm:$0xe]  ;;  %v4897_v0 = vld [vmem:[%s5785_s7 + $0x58] sm:$0xf] }
  0x6a   : > { %v6283_v51 = vrot.slane %v512_v7, 5  ;;  %1069 = vst.msk [vmem:[#allocation2 + $0x40] sm:$0xf] %vm226_vm5, %v935_v41  ;;  %v485_v42 = vor.u32 %v484_v32, %v481_v21  ;;  %v2352_v5 = vshll.u32 %v4895_v54, 16  ;;  %v1022_v6 = vrot.slane %v866_v49, 5 }
  0x6b   : > { %2624 = vrot.lane.b32.xlu0 %v2273_v10, %s5726_s10  ;;  %v4893_v10 = vld [vmem:[%s5785_s7 + $0x48] sm:$0xf]  ;;  %v1025_v7 = vrot.slane %v867_v30, 5  ;;  %v6306_v12 = vrot.slane %v2315_v20, 4  ;;  %v4718_v21 = vld [vmem:[%s5785_s7 + $0x58] sm:$0xf] }
  0x6c   : > { %v2333_v11 = vshrl.u32 %v4893_v10, 16  ;;  %v2336_v16 = vshll.u32 %v4893_v10, 16  ;;  %v506_v10 = vshll.u32 %v283_v48, 16  ;;  %v1024_v61 = vrot.slane %v1022_v6, 4  ;;  %v287_v20 = vld [vmem:[%s5785_s7 + $0x70] sm:$0xf] }
  0x6d   : > { %1185 = vrot.lane.b32.xlu1 %v4716_v46, %s5726_s10  ;;  %v2348_v46 = vrot.slane %v2346_v28, 4  ;;  %v932_v28 = vsel %vm6002_vm6, %v4690_v57, %v931_v13  ;;  %v519_v13 = vor.u32 %v518_v19, %v6283_v51  ;;  %v6319_v32 = vrot.slane %v485_v42, 4  ;;  %v831_v49 = vld [vmem:[%s5785_s7 + $0x20] sm:$0x1]  ;;  %v198_v30 = vld [vmem:[%s5785_s7 + $0x18] sm:$0xf] }
  0x6e   : > { %v2335_v63 = vrot.slane %v2333_v11, 4  ;;  %v2338_v18 = vrot.slane %v2336_v16, 5  ;;  %1068 = vst.msk [vmem:[#allocation2 + $0x2c] sm:$0xf] %vm226_vm5, %v932_v28  ;;  %v6323_v24 = vrot.slane %v1913_v45, 4  ;;  %v6325_v54 = vrot.slane %v2352_v5, 5 }
  0x6f   : > { %714 = vrot.lane.b32.xlu0 %v443_v36, %s5726_s10  ;;  %v6291_v36 = vrot.slane %v495_v60, 4  ;;  %v2349_v50 = vor.u32 %v2348_v46, %v6266_v23  ;;  %v199_v60 = vld [vmem:[%s5785_s7 + $0x1c] sm:$0xf]  ;;  %v6333_v46 = vrot.slane %v522_v4, 5  ;;  %v1026_v11 = vsel %vm6002_vm6, %v1024_v61, %v1025_v7  ;;  %v4896_v7 = vld [vmem:[%s5785_s7 + $0x54] sm:$0xf] }
  0x70   : > { %232 = vst.msk [vmem:[#allocation2 + $0x64] sm:$0xf] %vm226_vm5, %v199_v60  ;;  %v2339_v53 = vor.u32 %v2338_v18, %v2335_v63  ;;  %v6343_v16 = vrot.slane %v519_v13, 4  ;;  %v2366_v41 = vshll.u32 %v4897_v0, 16  ;;  %v2370_v56 = vshrl.u32 %v4897_v0, 16 }
  0x71   : > { %2005 = vrot.lane.b32.xlu1 %v1903_v14, %s5726_s10  ;;  %v1916_v14 = vrot.slane %v6281_v62, 5  ;;  %v6331_v37 = vrot.slane %v2349_v50, 4  ;;  %1095 = vst.msk [vmem:[#allocation2 + $0x248] sm:$0xf] %vm226_vm5, %v1026_v11  ;;  %v4703_v19 = vrot.slane %v865_v52, 9  ;;  %v467_v57 = vsel %vm5816_vm2, %v6211_v34, %v6142_v29 }
  0x72   : > { %v6354_v42 = vrot.slane %v506_v10, 5  ;;  %v941_v28 = vrot.slane %v831_v49, 5  ;;  %v6363_v63 = vrot.slane %v2339_v53, 4  ;;  %v1923_v29 = vrot.slane %v6339_v27, 5  ;;  %231 = vst.msk [vmem:[#allocation2 + $0x50] sm:$0xf] %vm226_vm5, %v198_v30 }
  0x73   : > { %1183 = vrot.lane.b32.xlu0 %v4715_v47, %s5726_s10  ;;  %v503_v47 = vshrl.u32 %v283_v48, 16  ;;  %v830_v48 = vld [vmem:[%s5785_s7 + $0x1c] sm:$0xf]  ;;  %v1023_v5 = vsel %vm6002_vm6, %v4703_v19, %v1022_v6  ;;  %v536_v34 = vshll.u32 %v287_v20, 16  ;;  %v540_v18 = vshrl.u32 %v287_v20, 16 }
  0x74   : > { %v938_v4 = vrot.slane %v830_v48, 5  ;;  %1094 = vst.msk [vmem:[#allocation2 + $0x234] sm:$0xf] %vm226_vm5, %v1023_v5  ;;  %v1910_v6 = vsel %vm6002_vm6, %v6207_v59, %v1909_v3  ;;  %v6375_v13 = vrot.slane %v2366_v41, 5  ;;  %v6380_v10 = vld [vmem:[%s8305_s1 + $0x118] sm:$0xff]   ;;  %v2357_v60 = vshrl.u32 %v4896_v7, 16 }
  0x75   : > { %2630 = vrot.lane.b32.xlu1 %v2307_v26, %s5726_s10  ;;  %v6336_v26 = vld [vmem:[%s5785_s7 + $0x4c] sm:$0xf]  ;;  %v288_v0 = vld [vmem:[%s5785_s7 + $0x74] sm:$0x1]  ;;  %v225_v3 = vld [vmem:[%s5785_s7 + $0xb8] sm:$0xf]  ;;  %5532 = vmatprep.subr.bf16.mxu0 %v6380_v10  ;;  %v1907_v48 = vsel %vm6002_vm6, %v4836_v31, %v1906_v1  ;;  %v501_v1 = vsel %vm5816_vm2, %v6291_v36, %v6235_v55  ;;  %v2355_v22 = vsel %vm5816_vm2, %v6331_v37, %v6325_v54 }
  0x76   : > { %v1920_v50 = vrot.slane %v6336_v26, 5  ;;  %v829_v59 = vld [vmem:[%s5785_s7 + $0x18] sm:$0xe]  ;;  %v4717_v61 = vld [vmem:[%s5785_s7 + $0x54] sm:$0xf]  ;;  %v6405_v41 = vrot.slane %v536_v34, 5  ;;  %v525_v54 = vsel %vm5816_vm2, %v6343_v16, %v6333_v46  ;;  %v2345_v37 = vsel %vm5816_vm2, %v6363_v63, %v6266_v23 }
  0x77   : > { %2003 = vrot.lane.b32.xlu0 %v1900_v44, %s5726_s10  ;;  %v4837_v44 = vrot.slane %v6298_v58, 9  ;;  %258 = vst.msk [vmem:[#allocation2 + $0x26c] sm:$0xf] %vm226_vm5, %v225_v3  ;;  %v4691_v53 = vrot.slane %v829_v59, 9  ;;  %v6403_v11 = vld [vmem:[%s5785_s7 + $0x48] sm:$0xe] }
  0x78   : > { %v6400_v38 = vrot.slane %v1920_v50, 4  ;;  %v2376_v19 = vshll.u32 %v4898_v8, 16  ;;  %v286_v5 = vld [vmem:[%s5785_s7 + $0x6c] sm:$0xf]  ;;  %v870_v30 = vld [vmem:[%s5785_s7 + $0xbc] sm:$0x1] }
  0x79   : > { %720 = vrot.lane.b32.xlu1 %v477_v15, %s5726_s10  ;;  %v6352_v15 = vrot.slane %v503_v47, 4  ;;  %v2372_v47 = vrot.slane %v2370_v56, 4  ;;  %v542_v56 = vrot.slane %v540_v18, 4  ;;  %v4838_v31 = vrot.slane %v6403_v11, 9  ;;  %v4900_v3 = vld [vmem:[%s5785_s7 + $0x64] sm:$0xf] }
  0x7a   : > { %v201_v59 = vld [vmem:[%s5785_s7 + $0x28] sm:$0xf]  ;;  %v1914_v62 = vsel %vm6002_vm6, %v4837_v44, %v1913_v45  ;;  %v5636_v26 = vld [vmem:[%s8305_s1 + $0xa0] sm:$0xff]  }
  0x7b   : > { %2628 = vrot.lane.b32.xlu0 %v2297_v17, %s5726_s10  ;;  %v940_v17 = vrot.slane %v938_v4, 4  ;;  %v509_v43 = vor.u32 %v6354_v42, %v6352_v15  ;;  %v2373_v20 = vor.u32 %v2372_v47, %v6375_v13  ;;  %v939_v15 = vsel %vm6002_vm6, %v4691_v53, %v938_v4  ;;  %v6454_v53 = vld [vmem:[%s5785_s7 + $0x5c] sm:$0x1]  ;;  %234 = vst.msk [vmem:[#allocation2 + $0x8c] sm:$0xf] %vm226_vm5, %v201_v59 }
  0x7c   : > { %1070 = vst.msk [vmem:[#allocation2 + $0x54] sm:$0xf] %vm226_vm5, %v939_v15  ;;  %v2359_v4 = vrot.slane %v2357_v60, 4  ;;  %v6437_v47 = vrot.slane %v2376_v19, 5  ;;  %v4720_v60 = vld [vmem:[%s5785_s7 + $0x64] sm:$0xf] }
  0x7d   : > { %1189 = vrot.lane.b32.xlu1 %v4718_v21, %s5726_s10  ;;  %v2360_v21 = vshll.u32 %v4896_v7, 16  ;;  %v942_v52 = vsel %vm6002_vm6, %v940_v17, %v941_v28  ;;  %v869_v28 = vld [vmem:[%s5785_s7 + $0xb8] sm:$0xf]  ;;  %v1032_v7 = vrot.slane %v870_v30, 5  ;;  %v6430_v9 = vrot.slane %v509_v43, 4 }
  0x7e   : > { %1071 = vst.msk [vmem:[#allocation2 + $0x68] sm:$0xf] %vm226_vm5, %v942_v52  ;;  %v1029_v18 = vrot.slane %v869_v28, 5  ;;  %v6435_v8 = vrot.slane %v2373_v20, 4  ;;  %v527_v17 = vshrl.u32 %v286_v5, 16  ;;  %v491_v28 = vsel %vm5816_vm2, %v6319_v32, %v6228_v40 }
  0x7f   : > { %718 = vrot.lane.b32.xlu0 %v467_v57, %s5726_s10  ;;  %v546_v57 = vshll.u32 %v288_v0, 16  ;;  %v2362_v34 = vrot.slane %v2360_v21, 5  ;;  %v530_v0 = vshll.u32 %v286_v5, 16  ;;  %v6451_v52 = vld [vmem:[%s5785_s7 + $0x58] sm:$0xf]  ;;  %v1917_v32 = vsel %vm6002_vm6, %v6323_v24, %v1916_v14 }
  0x80   : > { %v6464_v19 = vld [vmem:[%s5785_s7 + $0x68] sm:$0x1]  ;;  %v289_v14 = vld [vmem:[%s5785_s7 + $0x78] sm:$0xf] }
  0x81   : > { %2009 = vrot.lane.b32.xlu1 %v1910_v6, %s5726_s10  ;;  %v543_v6 = vor.u32 %v542_v56, %v6405_v41  ;;  %v6440_v36 = vrot.slane %v546_v57, 5  ;;  %v2363_v21 = vor.u32 %v2362_v34, %v2359_v4  ;;  %v868_v56 = vld [vmem:[%s5785_s7 + $0xb4] sm:$0xe]  ;;  %v2390_v57 = vshll.u32 %v4900_v3, 16  ;;  %v290_v34 = vld [vmem:[%s5785_s7 + $0x7c] sm:$0xf] }
  0x82   : > { %v1930_v4 = vrot.slane %v6454_v53, 5  ;;  %v6622_v27 = vld [vmem:[%s5785_s7 + $0x68] sm:$0x1] }
  0x83   : > { %1187 = vrot.lane.b32.xlu0 %v4717_v61, %s5726_s10  ;;  %v1212_v42 = vpop.permute.xlu1 %1211  ;;  %v1164_v49 = vpop.permute.xlu0 %1163  ;;  %v2321_v61 = vsel %vm5816_vm2, %v6306_v12, %v6171_v2  ;;  %v6461_v20 = vrot.slane %v543_v6, 4  ;;  %v4704_v2 = vrot.slane %v868_v56, 9  ;;  %v6467_v12 = vrot.slane %v527_v17, 4  ;;  %v834_v6 = vld [vmem:[%s5785_s7 + $0x2c] sm:$0x1] }
  0x84   : > { %1283 = vst.msk [vmem:[#allocation2 + $0x1e4] sm:$0xf] %vm790_vm7, %v1212_v42  ;;  %1259 = vst.msk [vmem:[#allocation2 + $0x4] sm:$0xf] %vm790_vm7, %v1164_v49  ;;  %v6470_v42 = vrot.slane %v530_v0, 5  ;;  %v2394_v49 = vshrl.u32 %v4900_v3, 16 }
  0x85   : > { %2634 = vrot.lane.b32.xlu1 %v2331_v33, %s5726_s10  ;;  %v1031_v33 = vrot.slane %v1029_v18, 4  ;;  %v1030_v5 = vsel %vm6002_vm6, %v4704_v2, %v1029_v18  ;;  %v6480_v30 = vrot.slane %v2363_v21, 4  ;;  %v2400_v18 = vshll.u32 %v6464_v19, 16  ;;  %v4719_v17 = vld [vmem:[%s5785_s7 + $0x60] sm:$0xf]  ;;  %v5646_v53 = vld [vmem:[%s8305_s1 + $0x88] sm:$0xff]  }
  0x86   : > { %1096 = vst.msk [vmem:[#allocation2 + $0x25c] sm:$0xf] %vm226_vm5, %v1030_v5  ;;  %v200_v0 = vld [vmem:[%s5785_s7 + $0x24] sm:$0xf]  ;;  %v6503_v59 = vrot.slane %v2394_v49, 4  ;;  %v560_v21 = vshll.u32 %v290_v34, 16  ;;  %v533_v45 = vor.u32 %v6470_v42, %v6467_v12 }
  0x87   : > { %2007 = vrot.lane.b32.xlu0 %v1907_v48, %s5726_s10  ;;  %v1214_v55 = vpop.permute.xlu1 %1213  ;;  %v1033_v43 = vsel %vm6002_vm6, %v1031_v33, %v1032_v7  ;;  %v1927_v48 = vrot.slane %v6451_v52, 5  ;;  %v833_v7 = vld [vmem:[%s5785_s7 + $0x28] sm:$0xf]  ;;  %v6499_v33 = vrot.slane %v2390_v57, 5  ;;  %233 = vst.msk [vmem:[#allocation2 + $0x78] sm:$0xf] %vm226_vm5, %v200_v0 }
  0x88   : > { %1284 = vst.msk [vmem:[#allocation2 + $0x1f8] sm:$0xf] %vm790_vm7, %v1214_v55  ;;  %v945_v40 = vrot.slane %v833_v7, 5  ;;  %v948_v55 = vrot.slane %v834_v6, 5  ;;  %v4738_v57 = vld [vmem:[%s5785_s7 + $0x10] sm:$0xf] }
  0x89   : > { %724 = vrot.lane.b32.xlu1 %v501_v1, %s5726_s10  ;;  %1097 = vst.msk [vmem:[#allocation2 + $0x270] sm:$0xf] %vm226_vm5, %v1033_v43  ;;  %v6489_v1 = vld [vmem:[%s5785_s7 + $0x80] sm:$0x1]  ;;  %v564_v43 = vshrl.u32 %v290_v34, 16  ;;  %v554_v34 = vshll.u32 %v289_v14, 16 }
  0x8a   : > { %v570_v56 = vshll.u32 %v6489_v1, 16  ;;  %v6531_v5 = vld [vmem:[%s5785_s7 + $0x54] sm:$0xe]  ;;  %v1349_v7 = vshll.u32 %v4738_v57, 16  ;;  %v832_v1 = vld [vmem:[%s5785_s7 + $0x24] sm:$0xe] }
  0x8b   : > { %2632 = vrot.lane.b32.xlu0 %v2321_v61, %s5726_s10  ;;  %v1166_v15 = vpop.permute.xlu1 %1165  ;;  %v4899_v61 = vld [vmem:[%s5785_s7 + $0x60] sm:$0xf]  ;;  %v4692_v42 = vrot.slane %v832_v1, 9  ;;  %v566_v46 = vrot.slane %v564_v43, 4  ;;  %v5629_v43 = vld [vmem:[%s8305_s1 + $0xf0] sm:$0xff]  }
  0x8c   : > { %1260 = vst.msk [vmem:[#allocation2 + $0x18] sm:$0xf] %vm790_vm7, %v1166_v15  ;;  %v2381_v58 = vshrl.u32 %v4899_v61, 16  ;;  %v2384_v44 = vshll.u32 %v4899_v61, 16  ;;  %v4739_v15 = vld [vmem:[%s5785_s7 + $0x14] sm:$0x1] }
  0x8d   : > { %v743_v25 = vpop.permute.xlu0 %742  ;;  %1193 = vrot.lane.b32.xlu1 %v4720_v60, %s5726_s10  ;;  %v947_v60 = vrot.slane %v945_v40, 4  ;;  %v1359_v12 = vshll.u32 %v4739_v15, 16  ;;  %v946_v23 = vsel %vm6002_vm6, %v4692_v42, %v945_v40  ;;  %v6554_v61 = vrot.slane %v533_v45, 4  ;;  %v4722_v40 = vld [vmem:[%s5785_s7 + $0x70] sm:$0xf] }
  0x8e   : > { %815 = vst.msk [vmem:[#allocation2 + $0x1e0] sm:$0xf] %vm790_vm7, %v743_v25  ;;  %v1353_v25 = vshrl.u32 %v4738_v57, 16  ;;  %v2383_v16 = vrot.slane %v2381_v58, 4  ;;  %v4850_v45 = vld [vmem:[%s5785_s7 + $0x1c] sm:$0xf] }
  0x8f   : > { %722 = vrot.lane.b32.xlu0 %v491_v28, %s5726_s10  ;;  %v697_v3 = vpop.permute.xlu1 %696  ;;  %v949_v2 = vsel %vm6002_vm6, %v947_v60, %v948_v55  ;;  %v551_v28 = vshrl.u32 %v289_v14, 16  ;;  %v6548_v55 = vrot.slane %v1349_v7, 5  ;;  %v5628_v60 = vld [vmem:[%s8305_s1 + $0xb8] sm:$0xff]   ;;  %1072 = vst.msk [vmem:[#allocation2 + $0x7c] sm:$0xf] %vm226_vm5, %v946_v23  ;;  %v5630_v1 = vld [vmem:[%s8305_s1 + $0xb0] sm:$0xff]  }
  0x90   : > { %792 = vst.msk [vmem:[#allocation2 + $0x14] sm:$0xf] %vm790_vm7, %v697_v3  ;;  %v1355_v0 = vrot.slane %v1353_v25, 4  ;;  %v2386_v3 = vrot.slane %v2384_v44, 5  ;;  %v5617_v57 = vld [vmem:[#allocation2 + $0x1e4] ss:$20 sps:$4 sm:$0xff]  }
  0x91   : > { %v745_v24 = vpop.permute.xlu0 %744  ;;  %2013 = vrot.lane.b32.xlu1 %v1917_v32, %s5726_s10  ;;  %1073 = vst.msk [vmem:[#allocation2 + $0x90] sm:$0xf] %vm226_vm5, %v949_v2  ;;  %v2397_v32 = vor.u32 %v6503_v59, %v6499_v33  ;;  %v6558_v59 = vrot.slane %v1927_v48, 4  ;;  %v6575_v2 = vrot.slane %v551_v28, 4  ;;  %2157 = vst.msk [vmem:[#allocation2 + $0x20] sm:$0xf] %vm226_vm5, %v4850_v45  ;;  %3981 = vmatprep.mubr.bf16.mxu1 %v5617_v57 }
  0x92   : > { %816 = vst.msk [vmem:[#allocation2 + $0x1f4] sm:$0xf] %vm790_vm7, %v745_v24  ;;  %v1356_v14 = vor.u32 %v1355_v0, %v6548_v55  ;;  %v1361_v24 = vrot.slane %v1359_v12, 5  ;;  %v2387_v28 = vor.u32 %v2386_v3, %v2383_v16  ;;  %v4737_v7 = vld [vmem:[%s5785_s7 + $0xc] sm:$0xf] }
  0x93   : > { %1191 = vrot.lane.b32.xlu0 %v4719_v17, %s5726_s10  ;;  %v749_v49 = vpop.permute.xlu1 %748  ;;  %v6546_v17 = vrot.slane %v560_v21, 5  ;;  %v4839_v21 = vrot.slane %v6531_v5, 9  ;;  %v1340_v12 = vshrl.u32 %v4737_v7, 16  ;;  %v1343_v42 = vshll.u32 %v4737_v7, 16  ;;  %v4721_v3 = vld [vmem:[%s5785_s7 + $0x6c] sm:$0xf] }
  0x94   : > { %818 = vst.msk [vmem:[#allocation2 + $0x21c] sm:$0xf] %vm790_vm7, %v749_v49  ;;  %v1357_v19 = vrot.slane %v1356_v14, 4  ;;  %v6584_v49 = vrot.slane %v570_v56, 5  ;;  %v515_v56 = vsel %vm5816_vm2, %v6430_v9, %v6283_v51  ;;  %v1924_v51 = vsel %vm6002_vm6, %v6400_v38, %v1923_v29 }
  0x95   : > { %v695_v6 = vpop.permute.xlu0 %694  ;;  %2638 = vrot.lane.b32.xlu1 %v2355_v22, %s5726_s10  ;;  %v556_v22 = vrot.slane %v554_v34, 5  ;;  %v567_v15 = vor.u32 %v566_v46, %v6546_v17  ;;  %v6587_v34 = vld [vmem:[%s5785_s7 + $0x64] sm:$0xf]  ;;  %v1342_v16 = vrot.slane %v1340_v12, 4  ;;  %v1345_v29 = vrot.slane %v1343_v42, 5 }
  0x96   : > { %791 = vst.msk [vmem:[#allocation2] sm:$0xf] %vm790_vm7, %v695_v6  ;;  %v6606_v6 = vld [vmem:[%s5785_s7 + $0x70] sm:$0xf]  ;;  %v5620_v46 = vld [vmem:[#allocation2 + $0x4] ss:$20 sps:$4 sm:$0xff]   ;;  %v2379_v7 = vsel %vm5816_vm2, %v6435_v8, %v6437_v47 }
  0x97   : > { %2011 = vrot.lane.b32.xlu0 %v1914_v62, %s5726_s10  ;;  %v1218_v63 = vpop.permute.xlu1 %1217  ;;  %v6569_v62 = vrot.slane %v2400_v18, 5  ;;  %v6581_v18 = vrot.slane %v2397_v32, 4  ;;  %v557_v9 = vor.u32 %v556_v22, %v6575_v2  ;;  %v6617_v23 = vrot.slane %v567_v15, 4  ;;  %3885 = vmatprep.mubr.bf16.mxu0 %v5620_v46  ;;  %v5667_v2 = vld [vmem:[%s8305_s1 + $0x110] sm:$0xff]   ;;  %v5635_v22 = vld [vmem:[%s8305_s1 + $0xe0] sm:$0xff]  }
  0x98   : > { %1286 = vst.msk [vmem:[#allocation2 + $0x220] sm:$0xf] %vm790_vm7, %v1218_v63  ;;  %v6619_v63 = vrot.slane %v2387_v28, 4  ;;  %v1934_v14 = vrot.slane %v6587_v34, 5  ;;  %v1346_v45 = vor.u32 %v1345_v29, %v1342_v16  ;;  %v1937_v15 = vrot.slane %v6622_v27, 5 }
  0x99   : > { %v747_v58 = vpop.permute.xlu0 %746  ;;  %728 = vrot.lane.b32.xlu1 %v525_v54, %s5726_s10  ;;  %v5615_v44 = vld [vmem:[#allocation2 + $0x1e0] ss:$20 sps:$4 sm:$0xff]   ;;  %v1362_v54 = vsel %vm5816_vm2, %v1357_v19, %v1361_v24  ;;  %v6647_v19 = vrot.slane %v557_v9, 4  ;;  %v6651_v28 = vld [vmem:[%s5785_s7 + $0x6c] sm:$0xf] }
  0x9a   : > { %817 = vst.msk [vmem:[#allocation2 + $0x208] sm:$0xf] %vm790_vm7, %v747_v58  ;;  %3982 = vmatmul.mubr.bf16.vlgmr.msra.gmra.mxu1 %v5615_v44  ;;  %v6630_v24 = vld [vmem:[%s5785_s7 + $0x74] sm:$0x1]  ;;  %v6642_v58 = vld [vmem:[%s5785_s7 + $0x88] sm:$0xf] }
  0x9b   : > { %2636 = vrot.lane.b32.xlu0 %v2345_v37, %s5726_s10  ;;  %v701_v25 = vpop.permute.xlu1 %700  ;;  %v5633_v37 = vld [vmem:[%s8305_s1 + $0xe8] sm:$0xff]   ;;  %1756 = vst.msk [vmem:[#allocation2 + $0x1c] sm:$0xf] %vm226_vm5, %v1362_v54  ;;  %5401 = vmatpush3.bf16.msra.mxu1 %v5628_v60  ;;  %v4849_v44 = vld [vmem:[%s5785_s7 + $0x18] sm:$0xf]  ;;  %v1347_v54 = vrot.slane %v1346_v45, 4 }
  0x9c   : > { %794 = vst.msk [vmem:[#allocation2 + $0x3c] sm:$0xf] %vm790_vm7, %v701_v25  ;;  %5402 = vmatprep.subr.bf16.mxu1 %v5629_v43  ;;  %v5634_v60 = vld [vmem:[%s8305_s1 + $0xa8] sm:$0xff]   ;;  %v203_v43 = vld [vmem:[%s5785_s7 + $0x34] sm:$0xf]  ;;  %v1921_v25 = vsel %vm6002_vm6, %v4838_v31, %v1920_v50  ;;  %v6670_v8 = vrot.slane %v1934_v14, 4 }
  0x9d   : > { %v1216_v32 = vpop.permute.xlu0 %1215  ;;  %1197 = vrot.lane.b32.xlu1 %v4722_v40, %s5726_s10  ;;  %v5618_v0 = vld [vmem:[#allocation2] ss:$20 sps:$4 sm:$0xff]   ;;  %v2414_v40 = vshll.u32 %v6606_v6, 16  ;;  %236 = vst.msk [vmem:[#allocation2 + $0xb4] sm:$0xf] %vm226_vm5, %v203_v43  ;;  %v2424_v11 = vshll.u32 %v6630_v24, 16  ;;  %v549_v24 = vsel %vm5816_vm2, %v6461_v20, %v6440_v36 }
  0x9e   : > { %1285 = vst.msk [vmem:[#allocation2 + $0x20c] sm:$0xf] %vm790_vm7, %v1216_v32  ;;  %3886 = vmatmul.mubr.bf16.vlgmr.msra.gmra.mxu0 %v5618_v0  ;;  %v584_v31 = vshll.u32 %v6642_v58, 16  ;;  %v292_v47 = vld [vmem:[%s5785_s7 + $0x84] sm:$0xf]  ;;  %v2405_v32 = vshrl.u32 %v6651_v28, 16 }
  0x9f   : > { %726 = vrot.lane.b32.xlu0 %v515_v56, %s5726_s10  ;;  %v1170_v38 = vpop.permute.xlu1 %1169  ;;  %5403 = vmatpush3.bf16.msra.mxu1 %v5630_v1  ;;  %2156 = vst.msk [vmem:[#allocation2 + $0xc] sm:$0xf] %vm226_vm5, %v4849_v44  ;;  %v2418_v1 = vshrl.u32 %v6606_v6, 16  ;;  %v6675_v50 = vrot.slane %v2414_v40, 5  ;;  %v6682_v42 = vld [vmem:[%s5785_s7 + $0x60] sm:$0xe]  ;;  %v1352_v56 = vsel %vm5816_vm2, %v1347_v54, %v6548_v55 }
  0xa0   : > { %1262 = vst.msk [vmem:[#allocation2 + $0x40] sm:$0xf] %vm790_vm7, %v1170_v38  ;;  %5404 = vmatprep.subr.bf16.mxu1 %v5633_v37  ;;  %5533 = vmatpush3.bf16.msra.mxu0 %v6380_v10  ;;  %v3101_v10 = vld [vmem:[#allocation2 + $0x21c] sm:$0xff]  ;;  %v588_v6 = vshrl.u32 %v6642_v58, 16  ;;  %v2408_v0 = vshll.u32 %v6651_v28, 16  ;;  %v575_v43 = vshrl.u32 %v292_v47, 16 }
  0xa1   : > { %v699_v57 = vpop.permute.xlu0 %698  ;;  %2017 = vrot.lane.b32.xlu1 %v1924_v51, %s5726_s10  ;;  %5534 = vmatprep.subr.bf16.mxu0 %v5667_v2  ;;  %v5639_v37 = vld [vmem:[%s8305_s1 + $0xd8] sm:$0xff]   ;;  %v6694_v46 = vld [vmem:[%s5785_s7 + $0x34] sm:$0xf]  ;;  %1755 = vst.msk [vmem:[#allocation2 + $0x8] sm:$0xf] %vm226_vm5, %v1352_v56  ;;  %v6708_v40 = vrot.slane %v2418_v1, 4 }
  0xa2   : > { %793 = vst.msk [vmem:[#allocation2 + $0x28] sm:$0xf] %vm790_vm7, %v699_v57  ;;  %v6699_v55 = vld [vmem:[%s5785_s7 + $0x8c] sm:$0x1]  ;;  %v952_v29 = vrot.slane %v6694_v46, 5  ;;  %v6712_v58 = vrot.slane %v2424_v11, 5 }
  0xa3   : > { %1195 = vrot.lane.b32.xlu0 %v4721_v3, %s5726_s10  ;;  %v753_v12 = vpop.permute.xlu1 %752  ;;  %5405 = vmatpush3.bf16.msra.mxu1 %v5634_v60  ;;  %v837_v3 = vld [vmem:[%s5785_s7 + $0x38] sm:$0x1]  ;;  %v202_v60 = vld [vmem:[%s5785_s7 + $0x30] sm:$0xf]  ;;  %v578_v57 = vshll.u32 %v292_v47, 16  ;;  %v6727_v28 = vrot.slane %v588_v6, 4 }
  0xa4   : > { %820 = vst.msk [vmem:[#allocation2 + $0x244] sm:$0xf] %vm790_vm7, %v753_v12  ;;  %5406 = vmatprep.subr.bf16.mxu1 %v5635_v22  ;;  %5535 = vmatpush3.bf16.msra.mxu0 %v5667_v2  ;;  %v5640_v44 = vld [vmem:[%s8305_s1 + $0x98] sm:$0xff]   ;;  %v954_v36 = vrot.slane %v952_v29, 4  ;;  %v955_v20 = vrot.slane %v837_v3, 5  ;;  %v2369_v2 = vsel %vm5816_vm2, %v6480_v30, %v6375_v13  ;;  %v6725_v22 = vrot.slane %v584_v31, 5 }
  0xa5   : > { %v1168_v51 = vpop.permute.xlu0 %1167  ;;  %2642 = vrot.lane.b32.xlu1 %v2379_v7, %s5726_s10  ;;  %v3098_v9 = vld [vmem:[#allocation2 + $0x208] sm:$0xff]  ;;  %235 = vst.msk [vmem:[#allocation2 + $0xa0] sm:$0xf] %vm226_vm5, %v202_v60  ;;  %v4840_v1 = vrot.slane %v6682_v42, 9  ;;  %v6732_v54 = vrot.slane %v2405_v32, 4  ;;  %v6734_v12 = vrot.slane %v2408_v0, 5 }
  0xa6   : > { %v5621_v16 = vld [vmem:[#allocation2 + $0x20c] ss:$20 sps:$4 sm:$0xff]   ;;  %1261 = vst.msk [vmem:[#allocation2 + $0x2c] sm:$0xf] %vm790_vm7, %v1168_v51  ;;  %v5058_v38 = vcombine.low %v3098_v9, %v3101_v10  ;;  %v5641_v13 = vld [vmem:[%s8305_s1 + $0xd0] sm:$0xff]   ;;  %v956_v30 = vsel %vm6002_vm6, %v954_v36, %v955_v20  ;;  %v594_v11 = vshll.u32 %v6699_v55, 16  ;;  %v539_v9 = vsel %vm5816_vm2, %v6554_v61, %v6405_v41 }
  0xa7   : > { %2015 = vrot.lane.b32.xlu0 %v1921_v25, %s5726_s10  ;;  %3989 = vmatprep.mubr.bf16.mxu1 %v5621_v16  ;;  %v1222_v45 = vpop.permute.xlu1 %1221  ;;  %v4724_v25 = vld [vmem:[%s5785_s7 + $0x7c] sm:$0xf]  ;;  %1075 = vst.msk [vmem:[#allocation2 + $0xb8] sm:$0xf] %vm226_vm5, %v956_v30  ;;  %v4742_v47 = vld [vmem:[%s5785_s7 + $0x20] sm:$0x1]  ;;  %v2421_v16 = vor.u32 %v6708_v40, %v6675_v50  ;;  %v591_v55 = vor.u32 %v6727_v28, %v6725_v22 }
  0xa8   : > { %1288 = vst.msk [vmem:[#allocation2 + $0x248] sm:$0xf] %vm790_vm7, %v1222_v45  ;;  %3990 = vmatmul.mubr.bf16.gmra.mxu1 %v5058_v38  ;;  %v4741_v31 = vld [vmem:[%s5785_s7 + $0x1c] sm:$0xf]  ;;  %v5642_v56 = vld [vmem:[%s8305_s1 + $0x90] sm:$0xff]   ;;  %v6752_v6 = vrot.slane %v578_v57, 5  ;;  %v2411_v60 = vor.u32 %v6734_v12, %v6732_v54 }
  0xa9   : > { %v751_v7 = vpop.permute.xlu0 %750  ;;  %732 = vrot.lane.b32.xlu1 %v549_v24, %s5726_s10  ;;  %5407 = vmatpush3.bf16.msra.mxu1 %v5636_v26  ;;  %v6743_v26 = vrot.slane %v575_v43, 4  ;;  %v1373_v32 = vshll.u32 %v4741_v31, 16  ;;  %v1377_v0 = vshrl.u32 %v4741_v31, 16  ;;  %v835_v51 = vld [vmem:[%s5785_s7 + $0x30] sm:$0xe]  ;;  %v5645_v3 = vld [vmem:[%s8305_s1 + $0xc8] sm:$0xff]  }
  0xaa   : > { %819 = vst.msk [vmem:[#allocation2 + $0x230] sm:$0xf] %vm790_vm7, %v751_v7  ;;  %5408 = vmatprep.subr.bf16.mxu1 %v5639_v37  ;;  %v1383_v37 = vshll.u32 %v4742_v47, 16  ;;  %v4693_v38 = vrot.slane %v835_v51, 9  ;;  %v5674_v24 = vld [vmem:[%s8305_s1 + $0x108] sm:$0xff]   ;;  %v3029_v61 = vld [vmem:[#allocation2 + $0x3c] sm:$0xff] }
  0xab   : > { %2640 = vrot.lane.b32.xlu0 %v2369_v2, %s5726_s10  ;;  %v705_v10 = vpop.permute.xlu1 %704  ;;  %v6774_v45 = vld [vmem:[%s5785_s7 + $0x70] sm:$0xf]  ;;  %v6776_v57 = vrot.slane %v1373_v32, 5  ;;  %v1379_v36 = vrot.slane %v1377_v0, 4  ;;  %v1931_v2 = vsel %vm6002_vm6, %v6558_v59, %v1930_v4  ;;  %v4723_v28 = vld [vmem:[%s5785_s7 + $0x78] sm:$0xf]  ;;  %5536 = vmatprep.subr.bf16.mxu0 %v5674_v24  ;;  %v581_v31 = vor.u32 %v6752_v6, %v6743_v26 }
  0xac   : > { %796 = vst.msk [vmem:[#allocation2 + $0x64] sm:$0xf] %vm790_vm7, %v705_v10  ;;  %v4906_v7 = vld [vmem:[%s5785_s7 + $0x7c] sm:$0xf]  ;;  %v1385_v59 = vrot.slane %v1383_v37, 5  ;;  %v6800_v12 = vrot.slane %v2421_v16, 4  ;;  %v2403_v0 = vsel %vm5816_vm2, %v6581_v18, %v6569_v62  ;;  %5537 = vmatpush3.bf16.msra.mxu0 %v5674_v24 }
  0xad   : > { %v1220_v43 = vpop.permute.xlu0 %1219  ;;  %1201 = vrot.lane.b32.xlu1 %v4724_v25, %s5726_s10  ;;  %v3026_v41 = vld [vmem:[#allocation2 + $0x28] sm:$0xff]  ;;  %5409 = vmatpush3.bf16.msra.mxu1 %v5640_v44  ;;  %v953_v44 = vsel %vm6002_vm6, %v4693_v38, %v952_v29  ;;  %v1380_v4 = vor.u32 %v1379_v36, %v6776_v57  ;;  %v6797_v46 = vld [vmem:[%s5785_s7 + $0x80] sm:$0x1]  ;;  %v2438_v29 = vshll.u32 %v4906_v7, 16  ;;  %v2442_v54 = vshrl.u32 %v4906_v7, 16 }
  0xae   : > { %v5623_v40 = vld [vmem:[#allocation2 + $0x2c] ss:$20 sps:$4 sm:$0xff]   ;;  %1287 = vst.msk [vmem:[#allocation2 + $0x234] sm:$0xf] %vm790_vm7, %v1220_v43  ;;  %v4998_v20 = vcombine.low %v3026_v41, %v3029_v61  ;;  %5410 = vmatprep.subr.bf16.mxu1 %v5641_v13  ;;  %v6802_v13 = vrot.slane %v591_v55, 4  ;;  %v6804_v30 = vrot.slane %v594_v11, 5  ;;  %v1928_v55 = vsel %vm6002_vm6, %v4839_v21, %v1927_v48 }
  0xaf   : > { %730 = vrot.lane.b32.xlu0 %v539_v9, %s5726_s10  ;;  %3893 = vmatprep.mubr.bf16.mxu0 %v5623_v40  ;;  %v1174_v25 = vpop.permute.xlu1 %1173  ;;  %1074 = vst.msk [vmem:[#allocation2 + $0xa4] sm:$0xf] %vm226_vm5, %v953_v44  ;;  %v5647_v47 = vld [vmem:[%s8305_s1 + $0xc0] sm:$0xff]   ;;  %v4852_v10 = vld [vmem:[%s5785_s7 + $0x28] sm:$0xf]  ;;  %v6817_v37 = vrot.slane %v2411_v60, 4  ;;  %v2393_v44 = vsel %vm5816_vm2, %v6619_v63, %v6499_v33 }
  0xb0   : > { %1264 = vst.msk [vmem:[#allocation2 + $0x68] sm:$0xf] %vm790_vm7, %v1174_v25  ;;  %3894 = vmatmul.mubr.bf16.gmra.mxu0 %v4998_v20  ;;  %v6820_v11 = vld [vmem:[%s5785_s7 + $0x74] sm:$0x1]  ;;  %v1381_v26 = vrot.slane %v1380_v4, 4  ;;  %v1941_v51 = vrot.slane %v6774_v45, 5 }
  0xb1   : > { %v703_v32 = vpop.permute.xlu0 %702  ;;  %2021 = vrot.lane.b32.xlu1 %v1931_v2, %s5726_s10  ;;  %5411 = vmatpush3.bf16.msra.mxu1 %v5642_v56  ;;  %2159 = vst.msk [vmem:[#allocation2 + $0x48] sm:$0xf] %vm226_vm5, %v4852_v10  ;;  %v4740_v6 = vld [vmem:[%s5785_s7 + $0x18] sm:$0xf]  ;;  %v2448_v9 = vshll.u32 %v6797_v46, 16  ;;  %v5648_v38 = vld [vmem:[%s8305_s1 + $0x80] sm:$0xff]  }
  0xb2   : > { %795 = vst.msk [vmem:[#allocation2 + $0x50] sm:$0xf] %vm790_vm7, %v703_v32  ;;  %5412 = vmatprep.subr.bf16.mxu1 %v5645_v3  ;;  %v6828_v16 = vld [vmem:[%s5785_s7 + $0x6c] sm:$0xe]  ;;  %v1364_v62 = vshrl.u32 %v4740_v6, 16  ;;  %v1367_v18 = vshll.u32 %v4740_v6, 16  ;;  %v1386_v3 = vsel %vm5816_vm2, %v1381_v26, %v1385_v59 }
  0xb3   : > { %1199 = vrot.lane.b32.xlu0 %v4723_v28, %s5726_s10  ;;  %v757_v56 = vpop.permute.xlu1 %756  ;;  %v6842_v43 = vrot.slane %v2438_v29, 5  ;;  %v2444_v24 = vrot.slane %v2442_v54, 4  ;;  %v6845_v41 = vld [vmem:[%s5785_s7 + $0x7c] sm:$0xf]  ;;  %v4905_v61 = vld [vmem:[%s5785_s7 + $0x78] sm:$0xf]  ;;  %v573_v28 = vsel %vm5816_vm2, %v6617_v23, %v6584_v49 }
  0xb4   : > { %822 = vst.msk [vmem:[#allocation2 + $0x26c] sm:$0xf] %vm790_vm7, %v757_v56  ;;  %v6849_v52 = vrot.slane %v581_v31, 4  ;;  %v1366_v48 = vrot.slane %v1364_v62, 4  ;;  %v1369_v5 = vrot.slane %v1367_v18, 5  ;;  %v2429_v21 = vshrl.u32 %v4905_v61, 16 }
  0xb5   : > { %1758 = vst.msk [vmem:[#allocation2 + $0x44] sm:$0xf] %vm226_vm5, %v1386_v3  ;;  %v205_v40 = vld [vmem:[%s5785_s7 + $0x40] sm:$0xf]  ;;  %v1172_v60 = vpop.permute.xlu0 %1171  ;;  %2646 = vrot.lane.b32.xlu1 %v2403_v0, %s5726_s10  ;;  %v3104_v36 = vld [vmem:[#allocation2 + $0x230] sm:$0xff]  ;;  %v3107_v20 = vld [vmem:[#allocation2 + $0x244] sm:$0xff]  ;;  %5413 = vmatpush3.bf16.msra.mxu1 %v5646_v53  ;;  %v2445_v46 = vor.u32 %v2444_v24, %v6842_v43 }
  0xb6   : > { %v5625_v2 = vld [vmem:[#allocation2 + $0x234] ss:$20 sps:$4 sm:$0xff]   ;;  %v1944_v7 = vrot.slane %v6820_v11, 5  ;;  %v2432_v25 = vshll.u32 %v4905_v61, 16  ;;  %238 = vst.msk [vmem:[#allocation2 + $0xdc] sm:$0xf] %vm226_vm5, %v205_v40  ;;  %v5063_v4 = vcombine.low %v3104_v36, %v3107_v20  ;;  %5414 = vmatprep.subr.bf16.mxu1 %v5647_v47  ;;  %v1370_v23 = vor.u32 %v1369_v5, %v1366_v48 }
  0xb7   : > { %1263 = vst.msk [vmem:[#allocation2 + $0x54] sm:$0xf] %vm790_vm7, %v1172_v60  ;;  %v6867_v59 = vrot.slane %v1941_v51, 4  ;;  %v4841_v49 = vrot.slane %v6828_v16, 9  ;;  %v4851_v33 = vld [vmem:[%s5785_s7 + $0x24] sm:$0xf]  ;;  %2019 = vrot.lane.b32.xlu0 %v1928_v55, %s5726_s10  ;;  %3997 = vmatprep.mubr.bf16.mxu1 %v5625_v2  ;;  %v1226_v53 = vpop.permute.xlu1 %1225  ;;  %v563_v36 = vsel %vm5816_vm2, %v6647_v19, %v6546_v17  ;;  %v1938_v2 = vsel %vm6002_vm6, %v6670_v8, %v1937_v15 }
  0xb8   : > { %v4909_v63 = vld [vmem:[%s5785_s7 + $0x88] sm:$0xf]  ;;  %v6874_v29 = vrot.slane %v2448_v9, 5  ;;  %v1948_v54 = vrot.slane %v6845_v41, 5  ;;  %2158 = vst.msk [vmem:[#allocation2 + $0x34] sm:$0xf] %vm226_vm5, %v4851_v33  ;;  %3998 = vmatmul.mubr.bf16.gmra.mxu1 %v5063_v4 }
  0xb9   : > { %v2462_v31 = vshll.u32 %v4909_v63, 16  ;;  %1290 = vst.msk [vmem:[#allocation2 + $0x270] sm:$0xf] %vm790_vm7, %v1226_v53  ;;  %v4726_v47 = vld [vmem:[%s5785_s7 + $0x88] sm:$0xf]  ;;  %v1371_v10 = vrot.slane %v1370_v23, 4  ;;  %v755_v9 = vpop.permute.xlu0 %754  ;;  %736 = vrot.lane.b32.xlu1 %v573_v28, %s5726_s10  ;;  %5415 = vmatpush3.bf16.msra.mxu1 %v5648_v38 }
  0xba   : > { %v6881_v32 = vld [vmem:[%s5785_s7 + $0x80] sm:$0x1]  ;;  %v6883_v0 = vrot.slane %v2429_v21, 4  ;;  %v6885_v26 = vrot.slane %v2432_v25, 5  ;;  %v2466_v6 = vshrl.u32 %v4909_v63, 16  ;;  %v6904_v5 = vrot.slane %v2445_v46, 4 }
  0xbb   : > { %v4910_v62 = vld [vmem:[%s5785_s7 + $0x8c] sm:$0x1]  ;;  %v6890_v18 = vld [vmem:[%s5785_s7 + $0x40] sm:$0xf]  ;;  %v840_v56 = vld [vmem:[%s5785_s7 + $0x44] sm:$0x1]  ;;  %v1376_v55 = vsel %vm5816_vm2, %v1371_v10, %v6776_v57  ;;  %2644 = vrot.lane.b32.xlu0 %v2393_v44, %s5726_s10  ;;  %v709_v38 = vpop.permute.xlu1 %708 }
  0xbc   : > { %821 = vst.msk [vmem:[#allocation2 + $0x258] sm:$0xf] %vm790_vm7, %v755_v9  ;;  %v6897_v3 = vrot.slane %v2462_v31, 5  ;;  %v6899_v24 = vrot.slane %v2466_v6, 4  ;;  %v959_v61 = vrot.slane %v6890_v18, 5  ;;  %v6909_v21 = vrot.slane %v1948_v54, 4 }
  0xbd   : > { %v204_v48 = vld [vmem:[%s5785_s7 + $0x3c] sm:$0xf]  ;;  %1757 = vst.msk [vmem:[#allocation2 + $0x30] sm:$0xf] %vm226_vm5, %v1376_v55  ;;  %v1951_v57 = vrot.slane %v6881_v32, 5  ;;  %v962_v60 = vrot.slane %v840_v56, 5  ;;  %v1224_v4 = vpop.permute.xlu0 %1223  ;;  %1205 = vrot.lane.b32.xlu1 %v4726_v47, %s5726_s10  ;;  %v2435_v27 = vor.u32 %v6885_v26, %v6883_v0  ;;  %v2427_v55 = vsel %vm5816_vm2, %v6800_v12, %v6712_v58 }
  0xbe   : > { %v6913_v40 = vld [vmem:[%s5785_s7 + $0x78] sm:$0xe]  ;;  %237 = vst.msk [vmem:[#allocation2 + $0xc8] sm:$0xf] %vm226_vm5, %v204_v48  ;;  %v3035_v20 = vld [vmem:[#allocation2 + $0x64] sm:$0xff]  ;;  %v961_v28 = vrot.slane %v959_v61, 4  ;;  %v2469_v53 = vor.u32 %v6899_v24, %v6897_v3  ;;  %v1935_v24 = vsel %vm6002_vm6, %v4840_v1, %v1934_v14 }
  0xbf   : > { %798 = vst.msk [vmem:[#allocation2 + $0x8c] sm:$0xf] %vm790_vm7, %v709_v38  ;;  %v6929_v44 = vld [vmem:[%s5785_s7 + $0x88] sm:$0xf]  ;;  %v4908_v25 = vld [vmem:[%s5785_s7 + $0x84] sm:$0xf]  ;;  %734 = vrot.lane.b32.xlu0 %v563_v36, %s5726_s10  ;;  %v1178_v0 = vpop.permute.xlu1 %1177 }
  0xc0   : > { %v3032_v17 = vld [vmem:[#allocation2 + $0x50] sm:$0xff]  ;;  %v2472_v23 = vshll.u32 %v4910_v62, 16  ;;  %v2453_v33 = vshrl.u32 %v4908_v25, 16  ;;  %v2456_v15 = vshll.u32 %v4908_v25, 16  ;;  %1289 = vst.msk [vmem:[#allocation2 + $0x25c] sm:$0xf] %vm790_vm7, %v1224_v4  ;;  %v963_v31 = vsel %vm6002_vm6, %v961_v28, %v962_v60 }
  0xc1   : > { %v5631_v19 = vld [vmem:[#allocation2 + $0x54] ss:$20 sps:$4 sm:$0xff]   ;;  %v5003_v8 = vcombine.low %v3032_v17, %v3035_v20  ;;  %v4725_v63 = vld [vmem:[%s5785_s7 + $0x84] sm:$0xf]  ;;  %v4842_v46 = vrot.slane %v6913_v40, 9  ;;  %v1955_v6 = vrot.slane %v6929_v44, 5  ;;  %v707_v20 = vpop.permute.xlu0 %706  ;;  %2025 = vrot.lane.b32.xlu1 %v1938_v2, %s5726_s10 }
  0xc2   : > { %v4744_v47 = vld [vmem:[%s5785_s7 + $0x28] sm:$0xf]  ;;  %v4745_v10 = vld [vmem:[%s5785_s7 + $0x2c] sm:$0x1]  ;;  %3901 = vmatprep.mubr.bf16.mxu0 %v5631_v19  ;;  %1077 = vst.msk [vmem:[#allocation2 + $0xe0] sm:$0xf] %vm226_vm5, %v963_v31 }
  0xc3   : > { %v6947_v26 = vld [vmem:[%s5785_s7 + $0x8c] sm:$0x1]  ;;  %v6950_v9 = vrot.slane %v2453_v33, 4  ;;  %v1397_v62 = vshll.u32 %v4744_v47, 16  ;;  %v1401_v56 = vshrl.u32 %v4744_v47, 16  ;;  %3902 = vmatmul.mubr.bf16.gmra.mxu0 %v5003_v8  ;;  %v2458_v48 = vrot.slane %v2456_v15, 5  ;;  %1203 = vrot.lane.b32.xlu0 %v4725_v63, %s5726_s10  ;;  %v1998_v2 = vpop.permute.xlu1 %1997 }
  0xc4   : > { %1266 = vst.msk [vmem:[#allocation2 + $0x90] sm:$0xf] %vm790_vm7, %v1178_v0  ;;  %v1407_v38 = vshll.u32 %v4745_v10, 16  ;;  %v838_v60 = vld [vmem:[%s5785_s7 + $0x3c] sm:$0xe]  ;;  %v6966_v28 = vrot.slane %v2472_v23, 5 }
  0xc5   : > { %v4912_v36 = vld [vmem:[%s5785_s7 + $0x94] sm:$0xf]  ;;  %v6968_v25 = vrot.slane %v1397_v62, 5  ;;  %v1403_v58 = vrot.slane %v1401_v56, 4  ;;  %v4694_v34 = vrot.slane %v838_v60, 9  ;;  %v6972_v42 = vrot.slane %v2435_v27, 4  ;;  %2650 = vrot.lane.b32.xlu1 %v2427_v55, %s5726_s10 }
  0xc6   : > { %v4913_v12 = vld [vmem:[%s5785_s7 + $0x98] sm:$0x1]  ;;  %797 = vst.msk [vmem:[#allocation2 + $0x78] sm:$0xf] %vm790_vm7, %v707_v20  ;;  %v1958_v14 = vrot.slane %v6947_v26, 5  ;;  %v2486_v1 = vshll.u32 %v4912_v36, 16  ;;  %v2459_v63 = vor.u32 %v2458_v48, %v6950_v9  ;;  %v597_v62 = vsel %vm5816_vm2, %v6802_v13, %v6804_v30 }
  0xc7   : > { %v2490_v4 = vshrl.u32 %v4912_v36, 16  ;;  %v6976_v17 = vrot.slane %v2469_v53, 4  ;;  %v1404_v19 = vor.u32 %v1403_v58, %v6968_v25  ;;  %v1409_v23 = vrot.slane %v1407_v38, 5  ;;  %v4854_v27 = vld [vmem:[%s5785_s7 + $0x34] sm:$0xf]  ;;  %v3113_v8 = vld [vmem:[#allocation2 + $0x26c] sm:$0xff]  ;;  %2023 = vrot.lane.b32.xlu0 %v1935_v24, %s5726_s10  ;;  %v2623_v13 = vpop.permute.xlu1 %2622 }
  0xc8   : > { %v960_v33 = vsel %vm6002_vm6, %v4694_v34, %v959_v61  ;;  %v4743_v15 = vld [vmem:[%s5785_s7 + $0x24] sm:$0xf]  ;;  %2092 = vst.msk [vmem:[#allocation2 + $0x1c] sm:$0xf] %vm790_vm7, %v1998_v2  ;;  %v6988_v31 = vrot.slane %v1955_v6, 4  ;;  %v2496_v53 = vshll.u32 %v4913_v12, 16  ;;  %v1176_v61 = vpop.permute.xlu0 %1175  ;;  %v2417_v30 = vsel %vm5816_vm2, %v6817_v37, %v6675_v50 }
  0xc9   : > { %1076 = vst.msk [vmem:[#allocation2 + $0xcc] sm:$0xf] %vm226_vm5, %v960_v33  ;;  %v6993_v47 = vld [vmem:[%s5785_s7 + $0x84] sm:$0xe]  ;;  %2161 = vst.msk [vmem:[#allocation2 + $0x70] sm:$0xf] %vm226_vm5, %v4854_v27  ;;  %740 = vrot.lane.b32.xlu1 %v597_v62, %s5726_s10 }
  0xca   : > { %v1388_v18 = vshrl.u32 %v4743_v15, 16  ;;  %v3110_v10 = vld [vmem:[#allocation2 + $0x258] sm:$0xff]  ;;  %v1405_v9 = vrot.slane %v1404_v19, 4  ;;  %v1391_v56 = vshll.u32 %v4743_v15, 16  ;;  %v5681_v48 = vld [vmem:[%s8305_s1 + $0x100] sm:$0xff]   ;;  %v7005_v55 = vrot.slane %v2486_v1, 5 }
  0xcb   : > { %v5637_v0 = vld [vmem:[#allocation2 + $0x25c] ss:$20 sps:$4 sm:$0xff]   ;;  %1265 = vst.msk [vmem:[#allocation2 + $0x7c] sm:$0xf] %vm790_vm7, %v1176_v61  ;;  %v5068_v38 = vcombine.low %v3110_v10, %v3113_v8  ;;  %v7007_v60 = vrot.slane %v2490_v4, 4  ;;  %v7023_v2 = vrot.slane %v2459_v63, 4  ;;  %5538 = vmatprep.subr.bf16.mxu0 %v5681_v48  ;;  %2648 = vrot.lane.b32.xlu0 %v2417_v30, %s5726_s10  ;;  %v713_v62 = vpop.permute.xlu1 %712 }
  0xcc   : > { %v1390_v36 = vrot.slane %v1388_v18, 4  ;;  %v4911_v20 = vld [vmem:[%s5785_s7 + $0x90] sm:$0xf]  ;;  %4005 = vmatprep.mubr.bf16.mxu1 %v5637_v0  ;;  %v1410_v58 = vsel %vm5816_vm2, %v1405_v9, %v1409_v23  ;;  %v1393_v34 = vrot.slane %v1391_v56, 5  ;;  %v7018_v12 = vld [vmem:[%s5785_s7 + $0x94] sm:$0xf]  ;;  %v1996_v33 = vpop.permute.xlu0 %1995  ;;  %5539 = vmatpush3.bf16.msra.mxu0 %v5681_v48 }
  0xcd   : > { %v2477_v1 = vshrl.u32 %v4911_v20, 16  ;;  %v207_v4 = vld [vmem:[%s5785_s7 + $0x4c] sm:$0xf]  ;;  %2717 = vst.msk [vmem:[#allocation2 + $0x20] sm:$0xf] %vm790_vm7, %v2623_v13  ;;  %4006 = vmatmul.mubr.bf16.gmra.mxu1 %v5068_v38  ;;  %v7026_v50 = vrot.slane %v2496_v53, 5  ;;  %v2493_v53 = vor.u32 %v7007_v60, %v7005_v55  ;;  %v587_v60 = vsel %vm5816_vm2, %v6849_v52, %v6725_v22 }
  0xce   : > { %v4728_v24 = vld [vmem:[%s5785_s7 + $0x94] sm:$0xf]  ;;  %1760 = vst.msk [vmem:[#allocation2 + $0x6c] sm:$0xf] %vm226_vm5, %v1410_v58  ;;  %v4843_v37 = vrot.slane %v6993_v47, 9  ;;  %v2480_v19 = vshll.u32 %v4911_v20, 16  ;;  %v1394_v27 = vor.u32 %v1393_v34, %v1390_v36  ;;  %v1945_v22 = vsel %vm6002_vm6, %v6867_v59, %v1944_v7 }
  0xcf   : > { %240 = vst.msk [vmem:[#allocation2 + $0x104] sm:$0xf] %vm226_vm5, %v207_v4  ;;  %v4853_v23 = vld [vmem:[%s5785_s7 + $0x30] sm:$0xf]  ;;  %v7033_v15 = vld [vmem:[%s5785_s7 + $0x98] sm:$0x1]  ;;  %1209 = vrot.lane.b32.xlu1 %v4728_v24, %s5726_s10  ;;  %738 = vrot.lane.b32.xlu0 %v587_v60, %s5726_s10 }
  0xd0   : > { %2160 = vst.msk [vmem:[#allocation2 + $0x5c] sm:$0xf] %vm226_vm5, %v4853_v23  ;;  %v4915_v8 = vld [vmem:[%s5785_s7 + $0xa0] sm:$0xf]  ;;  %v4916_v63 = vld [vmem:[%s5785_s7 + $0xa4] sm:$0x1]  ;;  %v2621_v34 = vpop.permute.xlu0 %2620 }
  0xd1   : > { %2091 = vst.msk [vmem:[#allocation2 + $0x8] sm:$0xf] %vm790_vm7, %v1996_v33  ;;  %v1962_v18 = vrot.slane %v7018_v12, 5  ;;  %v7042_v61 = vrot.slane %v2477_v1, 4  ;;  %v2510_v10 = vshll.u32 %v4915_v8, 16  ;;  %v1395_v9 = vrot.slane %v1394_v27, 4 }
  0xd2   : > { %v7045_v0 = vld [vmem:[%s5785_s7 + $0x4c] sm:$0xf]  ;;  %v7048_v56 = vrot.slane %v2480_v19, 5  ;;  %v2514_v48 = vshrl.u32 %v4915_v8, 16  ;;  %v2520_v38 = vshll.u32 %v4916_v63, 16  ;;  %v3038_v1 = vld [vmem:[#allocation2 + $0x78] sm:$0xff]  ;;  %v1182_v8 = vpop.permute.xlu1 %1181  ;;  %v2451_v63 = vsel %vm5816_vm2, %v6904_v5, %v6874_v29 }
  0xd3   : > { %v843_v36 = vld [vmem:[%s5785_s7 + $0x50] sm:$0x1]  ;;  %800 = vst.msk [vmem:[#allocation2 + $0xb4] sm:$0xf] %vm790_vm7, %v713_v62  ;;  %v7057_v20 = vld [vmem:[%s5785_s7 + $0x90] sm:$0xe]  ;;  %v1400_v52 = vsel %vm5816_vm2, %v1395_v9, %v6968_v25  ;;  %2029 = vrot.lane.b32.xlu1 %v1945_v22, %s5726_s10 }
  0xd4   : > { %v966_v13 = vrot.slane %v7045_v0, 5  ;;  %v969_v30 = vrot.slane %v843_v36, 5  ;;  %v206_v58 = vld [vmem:[%s5785_s7 + $0x48] sm:$0xf]  ;;  %v3041_v4 = vld [vmem:[#allocation2 + $0x8c] sm:$0xff]  ;;  %v7070_v23 = vrot.slane %v2510_v10, 5  ;;  %v2441_v0 = vsel %vm5816_vm2, %v6972_v42, %v6842_v43 }
  0xd5   : > { %v5643_v19 = vld [vmem:[#allocation2 + $0x7c] ss:$20 sps:$4 sm:$0xff]   ;;  %v7072_v33 = vrot.slane %v2514_v48, 4  ;;  %239 = vst.msk [vmem:[#allocation2 + $0xf0] sm:$0xf] %vm226_vm5, %v206_v58  ;;  %v5008_v24 = vcombine.low %v3038_v1, %v3041_v4  ;;  %v7077_v11 = vrot.slane %v2493_v53, 4  ;;  %v2483_v48 = vor.u32 %v7048_v56, %v7042_v61 }
  0xd6   : > { %2716 = vst.msk [vmem:[#allocation2 + $0xc] sm:$0xf] %vm790_vm7, %v2621_v34  ;;  %v4727_v27 = vld [vmem:[%s5785_s7 + $0x90] sm:$0xf]  ;;  %v1965_v7 = vrot.slane %v7033_v15, 5  ;;  %v968_v59 = vrot.slane %v966_v13, 4  ;;  %3909 = vmatprep.mubr.bf16.mxu0 %v5643_v19 }
  0xd7   : > { %1759 = vst.msk [vmem:[#allocation2 + $0x58] sm:$0xf] %vm226_vm5, %v1400_v52  ;;  %v7084_v25 = vld [vmem:[%s5785_s7 + $0xa0] sm:$0xf]  ;;  %v7093_v53 = vrot.slane %v1962_v18, 4  ;;  %v7095_v10 = vrot.slane %v2520_v38, 5  ;;  %3910 = vmatmul.mubr.bf16.gmra.mxu0 %v5008_v24  ;;  %v711_v38 = vpop.permute.xlu0 %710  ;;  %v2517_v34 = vor.u32 %v7072_v33, %v7070_v23  ;;  %1207 = vrot.lane.b32.xlu0 %v4727_v27, %s5726_s10 }
  0xd8   : > { %v4844_v62 = vrot.slane %v7057_v20, 9  ;;  %v4914_v9 = vld [vmem:[%s5785_s7 + $0x9c] sm:$0xf]  ;;  %1268 = vst.msk [vmem:[#allocation2 + $0xb8] sm:$0xf] %vm790_vm7, %v1182_v8  ;;  %v970_v29 = vsel %vm6002_vm6, %v968_v59, %v969_v30  ;;  %v1969_v61 = vrot.slane %v7084_v25, 5  ;;  %v2002_v59 = vpop.permute.xlu1 %2001  ;;  %v1942_v8 = vsel %vm6002_vm6, %v4841_v49, %v1941_v51  ;;  %2654 = vrot.lane.b32.xlu1 %v2451_v63, %s5726_s10 }
  0xd9   : > { %v2501_v5 = vshrl.u32 %v4914_v9, 16  ;;  %v2504_v36 = vshll.u32 %v4914_v9, 16  ;;  %v4747_v60 = vld [vmem:[%s5785_s7 + $0x34] sm:$0xf]  ;;  %v4748_v58 = vld [vmem:[%s5785_s7 + $0x38] sm:$0x1] }
  0xda   : > { %1079 = vst.msk [vmem:[#allocation2 + $0x108] sm:$0xf] %vm226_vm5, %v970_v29  ;;  %v7111_v1 = vld [vmem:[%s5785_s7 + $0xa4] sm:$0x1]  ;;  %v1421_v56 = vshll.u32 %v4747_v60, 16  ;;  %v1425_v30 = vshrl.u32 %v4747_v60, 16 }
  0xdb   : > { %v841_v4 = vld [vmem:[%s5785_s7 + $0x48] sm:$0xe]  ;;  %799 = vst.msk [vmem:[#allocation2 + $0xa0] sm:$0xf] %vm790_vm7, %v711_v38  ;;  %v2503_v19 = vrot.slane %v2501_v5, 4  ;;  %v2506_v52 = vrot.slane %v2504_v36, 5  ;;  %2027 = vrot.lane.b32.xlu0 %v1942_v8, %s5726_s10 }
  0xdc   : > { %v1431_v22 = vshll.u32 %v4748_v58, 16  ;;  %v4695_v24 = vrot.slane %v841_v4, 9  ;;  %v4918_v33 = vld [vmem:[%s5785_s7 + $0xac] sm:$0xf]  ;;  %v7124_v9 = vrot.slane %v1421_v56, 5  ;;  %v1427_v29 = vrot.slane %v1425_v30, 4  ;;  %v1180_v4 = vpop.permute.xlu0 %1179  ;;  %v2627_v43 = vpop.permute.xlu1 %2626 }
  0xdd   : > { %v4919_v5 = vld [vmem:[%s5785_s7 + $0xb0] sm:$0x1]  ;;  %v7128_v36 = vld [vmem:[%s5785_s7 + $0x9c] sm:$0xe]  ;;  %2094 = vst.msk [vmem:[#allocation2 + $0x44] sm:$0xf] %vm790_vm7, %v2002_v59  ;;  %v2507_v60 = vor.u32 %v2506_v52, %v2503_v19  ;;  %v1952_v56 = vsel %vm6002_vm6, %v6909_v21, %v1951_v57 }
  0xde   : > { %v1433_v58 = vrot.slane %v1431_v22, 5  ;;  %v967_v45 = vsel %vm6002_vm6, %v4695_v24, %v966_v13  ;;  %v2534_v27 = vshll.u32 %v4918_v33, 16  ;;  %v4856_v16 = vld [vmem:[%s5785_s7 + $0x40] sm:$0xf]  ;;  %v4746_v38 = vld [vmem:[%s5785_s7 + $0x30] sm:$0xf]  ;;  %v1428_v13 = vor.u32 %v1427_v29, %v7124_v9  ;;  %2033 = vrot.lane.b32.xlu1 %v1952_v56, %s5726_s10 }
  0xdf   : > { %v5649_v51 = vld [vmem:[#allocation2 + $0x8] ss:$20 sps:$4 sm:$0xff]   ;;  %v5651_v49 = vld [vmem:[#allocation2 + $0xc] ss:$20 sps:$4 sm:$0xff]   ;;  %1078 = vst.msk [vmem:[#allocation2 + $0xf4] sm:$0xf] %vm226_vm5, %v967_v45  ;;  %2652 = vrot.lane.b32.xlu0 %v2441_v0, %s5726_s10 }
  0xe0   : > { %v2538_v30 = vshrl.u32 %v4918_v33, 16  ;;  %2163 = vst.msk [vmem:[#allocation2 + $0x98] sm:$0xf] %vm226_vm5, %v4856_v16  ;;  %v7151_v32 = vrot.slane %v2483_v48, 4  ;;  %v7153_v63 = vrot.slane %v2517_v34, 4  ;;  %v1972_v21 = vrot.slane %v7111_v1, 5  ;;  %4046 = vmatprep.mubr.bf16.mxu1 %v5651_v49  ;;  %v2000_v29 = vpop.permute.xlu0 %1999 }
  0xe1   : > { %1267 = vst.msk [vmem:[#allocation2 + $0xa4] sm:$0xf] %vm790_vm7, %v1180_v4  ;;  %v2544_v57 = vshll.u32 %v4919_v5, 16  ;;  %v7159_v42 = vrot.slane %v1969_v61, 4  ;;  %v1429_v19 = vrot.slane %v1428_v13, 4  ;;  %v1412_v52 = vshrl.u32 %v4746_v38, 16  ;;  %4047 = vmatmul.mubr.bf16.vlgmr.msra.gmra.mxu1 %v5649_v51 }
  0xe2   : > { %v1415_v22 = vshll.u32 %v4746_v38, 16  ;;  %v7162_v24 = vld [vmem:[%s5785_s7 + $0xac] sm:$0xf]  ;;  %2719 = vst.msk [vmem:[#allocation2 + $0x48] sm:$0xf] %vm790_vm7, %v2627_v43  ;;  %v7165_v48 = vrot.slane %v2507_v60, 4  ;;  %v2475_v5 = vsel %vm5816_vm2, %v6976_v17, %v6966_v28  ;;  %v717_v28 = vpop.permute.xlu1 %716  ;;  %v1949_v17 = vsel %vm6002_vm6, %v4842_v46, %v1948_v54 }
  0xe3   : > { %v7167_v34 = vrot.slane %v2534_v27, 5  ;;  %v2540_v33 = vrot.slane %v2538_v30, 4  ;;  %v4845_v59 = vrot.slane %v7128_v36, 9  ;;  %v4917_v8 = vld [vmem:[%s5785_s7 + $0xa8] sm:$0xf]  ;;  %v1434_v60 = vsel %vm5816_vm2, %v1429_v19, %v1433_v58  ;;  %2658 = vrot.lane.b32.xlu1 %v2475_v5, %s5726_s10  ;;  %2031 = vrot.lane.b32.xlu0 %v1949_v17, %s5726_s10 }
  0xe4   : > { %v1414_v45 = vrot.slane %v1412_v52, 4  ;;  %v1417_v27 = vrot.slane %v1415_v22, 5  ;;  %2093 = vst.msk [vmem:[#allocation2 + $0x30] sm:$0xf] %vm790_vm7, %v2000_v29  ;;  %v7180_v16 = vrot.slane %v2544_v57, 5  ;;  %v1976_v38 = vrot.slane %v7162_v24, 5  ;;  %v2625_v54 = vpop.permute.xlu0 %2624 }
  0xe5   : > { %1762 = vst.msk [vmem:[#allocation2 + $0x94] sm:$0xf] %vm226_vm5, %v1434_v60  ;;  %v2525_v4 = vshrl.u32 %v4917_v8, 16  ;;  %v2528_v51 = vshll.u32 %v4917_v8, 16  ;;  %v209_v49 = vld [vmem:[%s5785_s7 + $0x58] sm:$0xf]  ;;  %v2541_v0 = vor.u32 %v2540_v33, %v7167_v34  ;;  %v1959_v22 = vsel %vm6002_vm6, %v6988_v31, %v1958_v14 }
  0xe6   : > { %v1418_v58 = vor.u32 %v1417_v27, %v1414_v45  ;;  %v7192_v56 = vld [vmem:[%s5785_s7 + $0xb0] sm:$0x1]  ;;  %242 = vst.msk [vmem:[#allocation2 + $0x12c] sm:$0xf] %vm226_vm5, %v209_v49  ;;  %v4855_v13 = vld [vmem:[%s5785_s7 + $0x3c] sm:$0xf]  ;;  %v1186_v14 = vpop.permute.xlu1 %1185  ;;  %v2465_v31 = vsel %vm5816_vm2, %v7023_v2, %v6897_v3 }
  0xe7   : > { %v4921_v30 = vld [vmem:[%s5785_s7 + $0xb8] sm:$0xf]  ;;  %802 = vst.msk [vmem:[#allocation2 + $0xdc] sm:$0xf] %vm790_vm7, %v717_v28  ;;  %v2527_v43 = vrot.slane %v2525_v4, 4  ;;  %v2530_v19 = vrot.slane %v2528_v51, 5  ;;  %2037 = vrot.lane.b32.xlu1 %v1959_v22, %s5726_s10  ;;  %2656 = vrot.lane.b32.xlu0 %v2465_v31, %s5726_s10 }
  0xe8   : > { %v3047_v57 = vld [vmem:[#allocation2 + $0xb4] sm:$0xff]  ;;  %2162 = vst.msk [vmem:[#allocation2 + $0x84] sm:$0xf] %vm226_vm5, %v4855_v13  ;;  %v4922_v41 = vld [vmem:[%s5785_s7 + $0xbc] sm:$0x1]  ;;  %v2558_v40 = vshll.u32 %v4921_v30, 16 }
  0xe9   : > { %v3044_v46 = vld [vmem:[#allocation2 + $0xa0] sm:$0xff]  ;;  %v1419_v8 = vrot.slane %v1418_v58, 4  ;;  %v2562_v33 = vshrl.u32 %v4921_v30, 16  ;;  %v2568_v29 = vshll.u32 %v4922_v41, 16  ;;  %2718 = vst.msk [vmem:[#allocation2 + $0x34] sm:$0xf] %vm790_vm7, %v2625_v54  ;;  %v2531_v5 = vor.u32 %v2530_v19, %v2527_v43  ;;  %v715_v30 = vpop.permute.xlu0 %714 }
  0xea   : > { %v5652_v52 = vld [vmem:[#allocation2 + $0xa4] ss:$20 sps:$4 sm:$0xff]   ;;  %v5013_v60 = vcombine.low %v3044_v46, %v3047_v57  ;;  %v7210_v45 = vrot.slane %v1976_v38, 4  ;;  %v7212_v27 = vrot.slane %v2558_v40, 5  ;;  %v1979_v51 = vrot.slane %v7192_v56, 5 }
  0xeb   : > { %v7215_v26 = vld [vmem:[%s5785_s7 + $0x58] sm:$0xf]  ;;  %3917 = vmatprep.mubr.bf16.mxu0 %v5652_v52  ;;  %v1424_v4 = vsel %vm5816_vm2, %v1419_v8, %v7124_v9  ;;  %v2564_v49 = vrot.slane %v2562_v33, 4  ;;  %v7227_v28 = vld [vmem:[%s5785_s7 + $0xa8] sm:$0xe]  ;;  %v7231_v58 = vrot.slane %v2541_v0, 4  ;;  %v2499_v57 = vsel %vm5816_vm2, %v7077_v11, %v7026_v50 }
  0xec   : > { %v846_v17 = vld [vmem:[%s5785_s7 + $0x5c] sm:$0x1]  ;;  %1270 = vst.msk [vmem:[#allocation2 + $0xe0] sm:$0xf] %vm790_vm7, %v1186_v14  ;;  %3918 = vmatmul.mubr.bf16.gmra.mxu0 %v5013_v60  ;;  %v7234_v3 = vrot.slane %v2568_v29, 5  ;;  %v973_v2 = vrot.slane %v7215_v26, 5  ;;  %v1956_v0 = vsel %vm6002_vm6, %v4843_v37, %v1955_v6  ;;  %v2006_v37 = vpop.permute.xlu1 %2005  ;;  %2662 = vrot.lane.b32.xlu1 %v2499_v57, %s5726_s10 }
  0xed   : > { %1761 = vst.msk [vmem:[#allocation2 + $0x80] sm:$0xf] %vm226_vm5, %v1424_v4  ;;  %v976_v9 = vrot.slane %v846_v17, 5  ;;  %v208_v13 = vld [vmem:[%s5785_s7 + $0x54] sm:$0xf]  ;;  %v7258_v40 = vrot.slane %v2531_v5, 4  ;;  %v2565_v50 = vor.u32 %v2564_v49, %v7212_v27  ;;  %v1184_v31 = vpop.permute.xlu0 %1183  ;;  %2035 = vrot.lane.b32.xlu0 %v1956_v0, %s5726_s10 }
  0xee   : > { %241 = vst.msk [vmem:[#allocation2 + $0x118] sm:$0xf] %vm226_vm5, %v208_v13  ;;  %v7251_v43 = vld [vmem:[%s5785_s7 + $0xb8] sm:$0xf]  ;;  %v7254_v19 = vld [vmem:[%s5785_s7 + $0xbc] sm:$0x1] }
  0xef   : > { %v4920_v41 = vld [vmem:[%s5785_s7 + $0xb4] sm:$0xf]  ;;  %801 = vst.msk [vmem:[#allocation2 + $0xc8] sm:$0xf] %vm790_vm7, %v715_v30  ;;  %v4846_v44 = vrot.slane %v7227_v28, 9  ;;  %v975_v6 = vrot.slane %v973_v2, 4 }
  0xf0   : > { %v4750_v47 = vld [vmem:[%s5785_s7 + $0x40] sm:$0xf]  ;;  %v1983_v11 = vrot.slane %v7251_v43, 5  ;;  %v2549_v54 = vshrl.u32 %v4920_v41, 16  ;;  %v2552_v46 = vshll.u32 %v4920_v41, 16  ;;  %v3030_v8 = vld [vmem:[#allocation2 + $0x44] sm:$0xff]  ;;  %v1966_v41 = vsel %vm6002_vm6, %v7093_v53, %v1965_v7 }
  0xf1   : > { %v4751_v52 = vld [vmem:[%s5785_s7 + $0x44] sm:$0x1]  ;;  %v1445_v22 = vshll.u32 %v4750_v47, 16  ;;  %2096 = vst.msk [vmem:[#allocation2 + $0x6c] sm:$0xf] %vm790_vm7, %v2006_v37  ;;  %v977_v33 = vsel %vm6002_vm6, %v975_v6, %v976_v9  ;;  %v1986_v29 = vrot.slane %v7254_v19, 5  ;;  %v2489_v7 = vsel %vm5816_vm2, %v7151_v32, %v7005_v55  ;;  %2041 = vrot.lane.b32.xlu1 %v1966_v41, %s5726_s10 }
  0xf2   : > { %v1449_v60 = vshrl.u32 %v4750_v47, 16  ;;  %v1455_v5 = vshll.u32 %v4751_v52, 16  ;;  %v844_v14 = vld [vmem:[%s5785_s7 + $0x54] sm:$0xe]  ;;  %1081 = vst.msk [vmem:[#allocation2 + $0x130] sm:$0xf] %vm226_vm5, %v977_v33  ;;  %v2523_v53 = vsel %vm5816_vm2, %v7153_v63, %v7095_v10  ;;  %2660 = vrot.lane.b32.xlu0 %v2489_v7, %s5726_s10 }
  0xf3   : > { %v3027_v4 = vld [vmem:[#allocation2 + $0x30] sm:$0xff]  ;;  %v2551_v17 = vrot.slane %v2549_v54, 4  ;;  %v2554_v13 = vrot.slane %v2552_v46, 5  ;;  %v7275_v30 = vrot.slane %v1445_v22, 5  ;;  %1269 = vst.msk [vmem:[#allocation2 + $0xcc] sm:$0xf] %vm790_vm7, %v1184_v31  ;;  %v2631_v54 = vpop.permute.xlu1 %2630 }
  0xf4   : > { %v5654_v49 = vld [vmem:[#allocation2 + $0x34] ss:$20 sps:$4 sm:$0xff]   ;;  %v5000_v9 = vcombine.low %v3027_v4, %v3030_v8  ;;  %v7283_v6 = vrot.slane %v2565_v50, 4  ;;  %v1451_v57 = vrot.slane %v1449_v60, 4  ;;  %v4924_v47 = vld [vmem:[%s5785_s7 + $0xc4] sm:$0xf]  ;;  %v2004_v60 = vpop.permute.xlu0 %2003 }
  0xf5   : > { %v7287_v37 = vld [vmem:[%s5785_s7 + $0xc8] sm:$0x1]  ;;  %4054 = vmatprep.mubr.bf16.mxu1 %v5654_v49  ;;  %v1457_v46 = vrot.slane %v1455_v5, 5  ;;  %v4696_v52 = vrot.slane %v844_v14, 9  ;;  %v2582_v15 = vshll.u32 %v4924_v47, 16  ;;  %v2586_v22 = vshrl.u32 %v4924_v47, 16  ;;  %2666 = vrot.lane.b32.xlu1 %v2523_v53, %s5726_s10 }
  0xf6   : > { %2721 = vst.msk [vmem:[#allocation2 + $0x70] sm:$0xf] %vm790_vm7, %v2631_v54  ;;  %4055 = vmatmul.mubr.bf16.gmra.mxu1 %v5000_v9  ;;  %v1452_v0 = vor.u32 %v1451_v57, %v7275_v30  ;;  %v7301_v50 = vld [vmem:[%s5785_s7 + $0xb4] sm:$0xe]  ;;  %v4858_v8 = vld [vmem:[%s5785_s7 + $0x4c] sm:$0xf]  ;;  %v2555_v55 = vor.u32 %v2554_v13, %v2551_v17  ;;  %v1963_v57 = vsel %vm6002_vm6, %v4844_v62, %v1962_v18 }
  0xf7   : > { %v4749_v33 = vld [vmem:[%s5785_s7 + $0x3c] sm:$0xf]  ;;  %v7308_v5 = vrot.slane %v1983_v11, 4  ;;  %v974_v10 = vsel %vm6002_vm6, %v4696_v52, %v973_v2  ;;  %v2592_v32 = vshll.u32 %v7287_v37, 16  ;;  %2165 = vst.msk [vmem:[#allocation2 + $0xc0] sm:$0xf] %vm226_vm5, %v4858_v8  ;;  %v721_v2 = vpop.permute.xlu1 %720  ;;  %v1973_v18 = vsel %vm6002_vm6, %v7159_v42, %v1972_v21  ;;  %2039 = vrot.lane.b32.xlu0 %v1963_v57, %s5726_s10 }
  0xf8   : > { %2095 = vst.msk [vmem:[#allocation2 + $0x58] sm:$0xf] %vm790_vm7, %v2004_v60  ;;  %v1453_v63 = vrot.slane %v1452_v0, 4  ;;  %v7318_v14 = vrot.slane %v2582_v15, 5  ;;  %v2588_v31 = vrot.slane %v2586_v22, 4  ;;  %v1436_v4 = vshrl.u32 %v4749_v33, 16  ;;  %v2629_v22 = vpop.permute.xlu0 %2628 }
  0xf9   : > { %1080 = vst.msk [vmem:[#allocation2 + $0x11c] sm:$0xf] %vm226_vm5, %v974_v10  ;;  %v7321_v26 = vld [vmem:[%s5785_s7 + $0xc4] sm:$0xf]  ;;  %v3053_v49 = vld [vmem:[#allocation2 + $0xdc] sm:$0xff]  ;;  %v4847_v17 = vrot.slane %v7301_v50, 9  ;;  %2045 = vrot.lane.b32.xlu1 %v1973_v18, %s5726_s10 }
  0xfa   : > { %v1439_v13 = vshll.u32 %v4749_v33, 16  ;;  %v4923_v9 = vld [vmem:[%s5785_s7 + $0xc0] sm:$0xf]  ;;  %v211_v41 = vld [vmem:[%s5785_s7 + $0x64] sm:$0xf]  ;;  %v1458_v47 = vsel %vm5816_vm2, %v1453_v63, %v1457_v46  ;;  %v1438_v37 = vrot.slane %v1436_v4, 4  ;;  %v2589_v0 = vor.u32 %v2588_v31, %v7318_v14 }
  0xfb   : > { %804 = vst.msk [vmem:[#allocation2 + $0x104] sm:$0xf] %vm790_vm7, %v721_v2  ;;  %v7337_v54 = vld [vmem:[%s5785_s7 + $0xc8] sm:$0x1]  ;;  %v2573_v52 = vshrl.u32 %v4923_v9, 16  ;;  %v7347_v62 = vrot.slane %v2555_v55, 4  ;;  %v1190_v42 = vpop.permute.xlu1 %1189  ;;  %v2513_v31 = vsel %vm5816_vm2, %v7165_v48, %v7070_v23  ;;  %v2547_v23 = vsel %vm5816_vm2, %v7231_v58, %v7180_v16 }
  0xfc   : > { %244 = vst.msk [vmem:[#allocation2 + $0x154] sm:$0xf] %vm226_vm5, %v211_v41  ;;  %v4857_v15 = vld [vmem:[%s5785_s7 + $0x48] sm:$0xf]  ;;  %v5656_v20 = vld [vmem:[#allocation2 + $0xcc] ss:$20 sps:$4 sm:$0xff]   ;;  %2664 = vrot.lane.b32.xlu0 %v2513_v31, %s5726_s10 }
  0xfd   : > { %v3050_v12 = vld [vmem:[#allocation2 + $0xc8] sm:$0xff]  ;;  %1764 = vst.msk [vmem:[#allocation2 + $0xbc] sm:$0xf] %vm226_vm5, %v1458_v47  ;;  %v1441_v46 = vrot.slane %v1439_v13, 5  ;;  %v1990_v7 = vrot.slane %v7321_v26, 5  ;;  %v2575_v1 = vrot.slane %v2573_v52, 4  ;;  %3925 = vmatprep.mubr.bf16.mxu0 %v5656_v20  ;;  %2670 = vrot.lane.b32.xlu1 %v2547_v23, %s5726_s10 }
  0xfe   : > { %2164 = vst.msk [vmem:[#allocation2 + $0xac] sm:$0xf] %vm226_vm5, %v4857_v15  ;;  %v5018_v53 = vcombine.low %v3050_v12, %v3053_v49  ;;  %v2576_v8 = vshll.u32 %v4923_v9, 16  ;;  %v4927_v33 = vld [vmem:[%s5785_s7 + $0xd0] sm:$0xf]  ;;  %v7357_v60 = vrot.slane %v2592_v32, 5  ;;  %v719_v9 = vpop.permute.xlu0 %718 }
  0xff   : > { %2720 = vst.msk [vmem:[#allocation2 + $0x5c] sm:$0xf] %vm790_vm7, %v2629_v22  ;;  %v4928_v21 = vld [vmem:[%s5785_s7 + $0xd4] sm:$0x1]  ;;  %v1442_v55 = vor.u32 %v1441_v46, %v1438_v37  ;;  %v1993_v10 = vrot.slane %v7337_v54, 5  ;;  %v2606_v63 = vshll.u32 %v4927_v33, 16  ;;  %v2010_v20 = vpop.permute.xlu1 %2009 }
 0x100   : > { %v7361_v4 = vld [vmem:[%s5785_s7 + $0x64] sm:$0xf]  ;;  %1272 = vst.msk [vmem:[#allocation2 + $0x108] sm:$0xf] %vm790_vm7, %v1190_v42  ;;  %3926 = vmatmul.mubr.bf16.gmra.mxu0 %v5018_v53  ;;  %v2578_v2 = vrot.slane %v2576_v8, 5  ;;  %v2610_v49 = vshrl.u32 %v4927_v33, 16 }
 0x101   : > { %v7369_v32 = vld [vmem:[%s5785_s7 + $0xc0] sm:$0xe]  ;;  %v849_v13 = vld [vmem:[%s5785_s7 + $0x68] sm:$0x1]  ;;  %v1443_v41 = vrot.slane %v1442_v55, 4  ;;  %v2616_v57 = vshll.u32 %v4928_v21, 16  ;;  %v2537_v55 = vsel %vm5816_vm2, %v7258_v40, %v7167_v34 }
 0x102   : > { %v980_v47 = vrot.slane %v7361_v4, 5  ;;  %v983_v37 = vrot.slane %v849_v13, 5  ;;  %v210_v52 = vld [vmem:[%s5785_s7 + $0x60] sm:$0xf]  ;;  %803 = vst.msk [vmem:[#allocation2 + $0xf0] sm:$0xf] %vm790_vm7, %v719_v9  ;;  %v2579_v22 = vor.u32 %v2578_v2, %v2575_v1  ;;  %v1188_v25 = vpop.permute.xlu0 %1187 }
 0x103   : > { %v7380_v48 = vrot.slane %v2589_v0, 4  ;;  %v7384_v15 = vrot.slane %v1990_v7, 4  ;;  %243 = vst.msk [vmem:[#allocation2 + $0x140] sm:$0xf] %vm226_vm5, %v210_v52  ;;  %v4926_v12 = vld [vmem:[%s5785_s7 + $0xcc] sm:$0xf]  ;;  %v1448_v16 = vsel %vm5816_vm2, %v1443_v41, %v7275_v30  ;;  %v1970_v0 = vsel %vm6002_vm6, %v4845_v59, %v1969_v61  ;;  %v2635_v13 = vpop.permute.xlu1 %2634 }
 0x104   : > { %v3036_v18 = vld [vmem:[#allocation2 + $0x6c] sm:$0xff]  ;;  %v7392_v58 = vrot.slane %v2606_v63, 5  ;;  %v7394_v46 = vrot.slane %v2610_v49, 4  ;;  %v982_v53 = vrot.slane %v980_v47, 4  ;;  %2098 = vst.msk [vmem:[#allocation2 + $0x94] sm:$0xf] %vm790_vm7, %v2010_v20  ;;  %v1980_v30 = vsel %vm6002_vm6, %v7210_v45, %v1979_v51  ;;  %2043 = vrot.lane.b32.xlu0 %v1970_v0, %s5726_s10 }
 0x105   : > { %1763 = vst.msk [vmem:[#allocation2 + $0xa8] sm:$0xf] %vm226_vm5, %v1448_v16  ;;  %v4848_v1 = vrot.slane %v7369_v32, 9  ;;  %v2597_v8 = vshrl.u32 %v4926_v12, 16  ;;  %v4753_v33 = vld [vmem:[%s5785_s7 + $0x4c] sm:$0xf]  ;;  %2049 = vrot.lane.b32.xlu1 %v1980_v30, %s5726_s10 }
 0x106   : > { %v4754_v21 = vld [vmem:[%s5785_s7 + $0x50] sm:$0x1]  ;;  %v3033_v36 = vld [vmem:[#allocation2 + $0x58] sm:$0xff]  ;;  %v7415_v59 = vrot.slane %v2616_v57, 5  ;;  %v984_v56 = vsel %vm6002_vm6, %v982_v53, %v983_v37  ;;  %v2600_v45 = vshll.u32 %v4926_v12, 16  ;;  %v1469_v51 = vshll.u32 %v4753_v33, 16  ;;  %v2008_v20 = vpop.permute.xlu0 %2007 }
 0x107   : > { %v5658_v61 = vld [vmem:[#allocation2 + $0x5c] ss:$20 sps:$4 sm:$0xff]   ;;  %1271 = vst.msk [vmem:[#allocation2 + $0xf4] sm:$0xf] %vm790_vm7, %v1188_v25  ;;  %v5005_v42 = vcombine.low %v3033_v36, %v3036_v18  ;;  %v7424_v63 = vrot.slane %v2579_v22, 4  ;;  %v1473_v31 = vshrl.u32 %v4753_v33, 16  ;;  %v2613_v9 = vor.u32 %v7394_v46, %v7392_v58 }
 0x108   : > { %1083 = vst.msk [vmem:[#allocation2 + $0x158] sm:$0xf] %vm226_vm5, %v984_v56  ;;  %v847_v2 = vld [vmem:[%s5785_s7 + $0x60] sm:$0xe]  ;;  %v4860_v49 = vld [vmem:[%s5785_s7 + $0x58] sm:$0xf]  ;;  %4062 = vmatprep.mubr.bf16.mxu1 %v5658_v61  ;;  %v2571_v18 = vsel %vm5816_vm2, %v7283_v6, %v7234_v3  ;;  %2668 = vrot.lane.b32.xlu0 %v2537_v55, %s5726_s10 }
 0x109   : > { %v7432_v41 = vrot.slane %v1469_v51, 5  ;;  %v1479_v57 = vshll.u32 %v4754_v21, 16  ;;  %v4697_v37 = vrot.slane %v847_v2, 9  ;;  %2167 = vst.msk [vmem:[#allocation2 + $0xe8] sm:$0xf] %vm226_vm5, %v4860_v49  ;;  %4063 = vmatmul.mubr.bf16.gmra.mxu1 %v5005_v42  ;;  %v7437_v40 = vrot.slane %v2597_v8, 4  ;;  %2674 = vrot.lane.b32.xlu1 %v2571_v18, %s5726_s10 }
 0x10a   : > { %v4752_v34 = vld [vmem:[%s5785_s7 + $0x48] sm:$0xf]  ;;  %2723 = vst.msk [vmem:[#allocation2 + $0x98] sm:$0xf] %vm790_vm7, %v2635_v13  ;;  %v1475_v52 = vrot.slane %v1473_v31, 4  ;;  %v7445_v16 = vrot.slane %v2600_v45, 5  ;;  %v1977_v21 = vsel %vm6002_vm6, %v4846_v44, %v1976_v38  ;;  %v2633_v28 = vpop.permute.xlu0 %2632  ;;  %v1987_v2 = vsel %vm6002_vm6, %v7308_v5, %v1986_v29 }
 0x10b   : > { %v1460_v23 = vshrl.u32 %v4752_v34, 16  ;;  %v1463_v22 = vshll.u32 %v4752_v34, 16  ;;  %v213_v12 = vld [vmem:[%s5785_s7 + $0x70] sm:$0xf]  ;;  %v1481_v46 = vrot.slane %v1479_v57, 5  ;;  %v981_v53 = vsel %vm6002_vm6, %v4697_v37, %v980_v47  ;;  %v725_v47 = vpop.permute.xlu1 %724  ;;  %v3059_v44 = vld [vmem:[#allocation2 + $0x104] sm:$0xff] }
 0x10c   : > { %246 = vst.msk [vmem:[#allocation2 + $0x17c] sm:$0xf] %vm226_vm5, %v213_v12  ;;  %v4859_v0 = vld [vmem:[%s5785_s7 + $0x54] sm:$0xf]  ;;  %v851_v8 = vld [vmem:[%s5785_s7 + $0x70] sm:$0xf]  ;;  %v1476_v30 = vor.u32 %v1475_v52, %v7432_v41  ;;  %2047 = vrot.lane.b32.xlu0 %v1977_v21, %s5726_s10  ;;  %v2603_v18 = vor.u32 %v7445_v16, %v7437_v40 }
 0x10d   : > { %2097 = vst.msk [vmem:[#allocation2 + $0x80] sm:$0xf] %vm790_vm7, %v2008_v20  ;;  %v1462_v3 = vrot.slane %v1460_v23, 4  ;;  %v1465_v6 = vrot.slane %v1463_v22, 5  ;;  %v852_v4 = vld [vmem:[%s5785_s7 + $0x74] sm:$0x1]  ;;  %v2561_v20 = vsel %vm5816_vm2, %v7347_v62, %v7212_v27  ;;  %2053 = vrot.lane.b32.xlu1 %v1987_v2, %s5726_s10  ;;  %v1994_v2 = vsel %vm6002_vm6, %v7384_v15, %v1993_v10 }
 0x10e   : > { %1082 = vst.msk [vmem:[#allocation2 + $0x144] sm:$0xf] %vm226_vm5, %v981_v53  ;;  %2166 = vst.msk [vmem:[#allocation2 + $0xd4] sm:$0xf] %vm226_vm5, %v4859_v0  ;;  %v987_v33 = vrot.slane %v851_v8, 5  ;;  %v7466_v25 = vrot.slane %v2613_v9, 4  ;;  %v723_v0 = vpop.permute.xlu0 %722  ;;  %v2585_v15 = vsel %vm5816_vm2, %v7424_v63, %v7318_v14 }
 0x10f   : > { %v990_v36 = vrot.slane %v852_v4, 5  ;;  %v212_v61 = vld [vmem:[%s5785_s7 + $0x6c] sm:$0xf]  ;;  %v4756_v56 = vld [vmem:[%s5785_s7 + $0x58] sm:$0xf]  ;;  %v1477_v45 = vrot.slane %v1476_v30, 4  ;;  %v1466_v51 = vor.u32 %v1465_v6, %v1462_v3  ;;  %v1194_v19 = vpop.permute.xlu1 %1193  ;;  %v1984_v3 = vsel %vm6002_vm6, %v4847_v17, %v1983_v11 }
 0x110   : > { %806 = vst.msk [vmem:[#allocation2 + $0x12c] sm:$0xf] %vm790_vm7, %v725_v47  ;;  %v989_v42 = vrot.slane %v987_v33, 4  ;;  %v4757_v55 = vld [vmem:[%s5785_s7 + $0x5c] sm:$0x1]  ;;  %v1493_v24 = vshll.u32 %v4756_v56, 16  ;;  %2672 = vrot.lane.b32.xlu0 %v2561_v20, %s5726_s10 }
 0x111   : > { %245 = vst.msk [vmem:[#allocation2 + $0x168] sm:$0xf] %vm226_vm5, %v212_v61  ;;  %v3056_v38 = vld [vmem:[#allocation2 + $0xf0] sm:$0xff]  ;;  %v1497_v49 = vshrl.u32 %v4756_v56, 16  ;;  %v1503_v13 = vshll.u32 %v4757_v55, 16  ;;  %v1482_v57 = vsel %vm5816_vm2, %v1477_v45, %v1481_v46  ;;  %v1467_v37 = vrot.slane %v1466_v51, 4 }
 0x112   : > { %v5661_v31 = vld [vmem:[#allocation2 + $0xf4] ss:$20 sps:$4 sm:$0xff]   ;;  %2722 = vst.msk [vmem:[#allocation2 + $0x84] sm:$0xf] %vm790_vm7, %v2633_v28  ;;  %v5023_v9 = vcombine.low %v3056_v38, %v3059_v44  ;;  %v991_v34 = vsel %vm6002_vm6, %v989_v42, %v990_v36  ;;  %v850_v52 = vld [vmem:[%s5785_s7 + $0x6c] sm:$0xe]  ;;  %v1192_v45 = vpop.permute.xlu0 %1191 }
 0x113   : > { %v4862_v23 = vld [vmem:[%s5785_s7 + $0x64] sm:$0xf]  ;;  %3933 = vmatprep.mubr.bf16.mxu0 %v5661_v31  ;;  %1766 = vst.msk [vmem:[#allocation2 + $0xe4] sm:$0xf] %vm226_vm5, %v1482_v57  ;;  %1085 = vst.msk [vmem:[#allocation2 + $0x180] sm:$0xf] %vm226_vm5, %v991_v34  ;;  %v1472_v46 = vsel %vm5816_vm2, %v1467_v37, %v7432_v41  ;;  %v2595_v41 = vsel %vm5816_vm2, %v7380_v48, %v7357_v60  ;;  %v2014_v60 = vpop.permute.xlu1 %2013 }
 0x114   : > { %v7489_v29 = vrot.slane %v1493_v24, 5  ;;  %v1499_v5 = vrot.slane %v1497_v49, 4  ;;  %v1505_v22 = vrot.slane %v1503_v13, 5  ;;  %v4698_v12 = vrot.slane %v850_v52, 9  ;;  %2169 = vst.msk [vmem:[#allocation2 + $0x110] sm:$0xf] %vm226_vm5, %v4862_v23  ;;  %3934 = vmatmul.mubr.bf16.gmra.mxu0 %v5023_v9  ;;  %2678 = vrot.lane.b32.xlu1 %v2595_v41, %s5726_s10 }
 0x115   : > { %1274 = vst.msk [vmem:[#allocation2 + $0x130] sm:$0xf] %vm790_vm7, %v1194_v19  ;;  %v4755_v53 = vld [vmem:[%s5785_s7 + $0x54] sm:$0xf]  ;;  %v215_v16 = vld [vmem:[%s5785_s7 + $0x7c] sm:$0xf]  ;;  %2051 = vrot.lane.b32.xlu0 %v1984_v3, %s5726_s10 }
 0x116   : > { %1765 = vst.msk [vmem:[#allocation2 + $0xd0] sm:$0xf] %vm226_vm5, %v1472_v46  ;;  %v1500_v8 = vor.u32 %v1499_v5, %v7489_v29  ;;  %v988_v27 = vsel %vm6002_vm6, %v4698_v12, %v987_v33  ;;  %v1484_v62 = vshrl.u32 %v4755_v53, 16  ;;  %v1487_v40 = vshll.u32 %v4755_v53, 16  ;;  %v4861_v30 = vld [vmem:[%s5785_s7 + $0x60] sm:$0xf] }
 0x117   : > { %805 = vst.msk [vmem:[#allocation2 + $0x118] sm:$0xf] %vm790_vm7, %v723_v0  ;;  %v854_v6 = vld [vmem:[%s5785_s7 + $0x7c] sm:$0xf]  ;;  %v855_v4 = vld [vmem:[%s5785_s7 + $0x80] sm:$0x1]  ;;  %v2639_v37 = vpop.permute.xlu1 %2638  ;;  %v2619_v46 = vsel %vm5816_vm2, %v7466_v25, %v7415_v59 }
 0x118   : > { %1084 = vst.msk [vmem:[#allocation2 + $0x16c] sm:$0xf] %vm226_vm5, %v988_v27  ;;  %248 = vst.msk [vmem:[#allocation2 + $0x1a4] sm:$0xf] %vm226_vm5, %v215_v16  ;;  %v214_v33 = vld [vmem:[%s5785_s7 + $0x78] sm:$0xf]  ;;  %2057 = vrot.lane.b32.xlu1 %v1994_v2, %s5726_s10 }
 0x119   : > { %2168 = vst.msk [vmem:[#allocation2 + $0xfc] sm:$0xf] %vm226_vm5, %v4861_v30  ;;  %v1501_v48 = vrot.slane %v1500_v8, 4  ;;  %v1486_v43 = vrot.slane %v1484_v62, 4  ;;  %v1489_v47 = vrot.slane %v1487_v40, 5  ;;  %v994_v50 = vrot.slane %v854_v6, 5  ;;  %2676 = vrot.lane.b32.xlu0 %v2585_v15, %s5726_s10 }
 0x11a   : > { %247 = vst.msk [vmem:[#allocation2 + $0x190] sm:$0xf] %vm226_vm5, %v214_v33  ;;  %v4759_v11 = vld [vmem:[%s5785_s7 + $0x64] sm:$0xf]  ;;  %v7531_v17 = vrot.slane %v2603_v18, 4  ;;  %v997_v21 = vrot.slane %v855_v4, 5  ;;  %v2012_v18 = vpop.permute.xlu0 %2011  ;;  %v1991_v40 = vsel %vm6002_vm6, %v4848_v1, %v1990_v7 }
 0x11b   : > { %2100 = vst.msk [vmem:[#allocation2 + $0xbc] sm:$0xf] %vm790_vm7, %v2014_v60  ;;  %v4760_v36 = vld [vmem:[%s5785_s7 + $0x68] sm:$0x1]  ;;  %v1517_v61 = vshll.u32 %v4759_v11, 16  ;;  %v1521_v56 = vshrl.u32 %v4759_v11, 16  ;;  %v1506_v24 = vsel %vm5816_vm2, %v1501_v48, %v1505_v22  ;;  %v1490_v28 = vor.u32 %v1489_v47, %v1486_v43  ;;  %v729_v62 = vpop.permute.xlu1 %728 }
 0x11c   : > { %v3039_v51 = vld [vmem:[#allocation2 + $0x80] sm:$0xff]  ;;  %v3042_v42 = vld [vmem:[#allocation2 + $0x94] sm:$0xff]  ;;  %v996_v38 = vrot.slane %v994_v50, 4  ;;  %v1527_v44 = vshll.u32 %v4760_v36, 16  ;;  %1273 = vst.msk [vmem:[#allocation2 + $0x11c] sm:$0xf] %vm790_vm7, %v1192_v45  ;;  %2682 = vrot.lane.b32.xlu1 %v2619_v46, %s5726_s10  ;;  %v2609_v1 = vsel %vm5816_vm2, %v7531_v17, %v7392_v58 }
 0x11d   : > { %v5663_v55 = vld [vmem:[#allocation2 + $0x84] ss:$20 sps:$4 sm:$0xff]   ;;  %v5010_v31 = vcombine.low %v3039_v51, %v3042_v42  ;;  %1768 = vst.msk [vmem:[#allocation2 + $0x10c] sm:$0xf] %vm226_vm5, %v1506_v24  ;;  %v7544_v49 = vrot.slane %v1517_v61, 5  ;;  %v1523_v13 = vrot.slane %v1521_v56, 4  ;;  %2055 = vrot.lane.b32.xlu0 %v1991_v40, %s5726_s10 }
 0x11e   : > { %v853_v9 = vld [vmem:[%s5785_s7 + $0x78] sm:$0xe]  ;;  %v4864_v57 = vld [vmem:[%s5785_s7 + $0x70] sm:$0xf]  ;;  %4070 = vmatprep.mubr.bf16.mxu1 %v5663_v55  ;;  %v1491_v34 = vrot.slane %v1490_v28, 4  ;;  %v998_v54 = vsel %vm6002_vm6, %v996_v38, %v997_v21  ;;  %v1529_v52 = vrot.slane %v1527_v44, 5  ;;  %v2637_v26 = vpop.permute.xlu0 %2636 }
 0x11f   : > { %v4699_v23 = vrot.slane %v853_v9, 9  ;;  %2171 = vst.msk [vmem:[#allocation2 + $0x138] sm:$0xf] %vm226_vm5, %v4864_v57  ;;  %v4758_v10 = vld [vmem:[%s5785_s7 + $0x60] sm:$0xf]  ;;  %4071 = vmatmul.mubr.bf16.gmra.mxu1 %v5010_v31  ;;  %v1524_v19 = vor.u32 %v1523_v13, %v7544_v49  ;;  %v3065_v16 = vld [vmem:[#allocation2 + $0x12c] sm:$0xff]  ;;  %v1198_v58 = vpop.permute.xlu1 %1197 }
 0x120   : > { %2725 = vst.msk [vmem:[#allocation2 + $0xc0] sm:$0xf] %vm790_vm7, %v2639_v37  ;;  %v1508_v5 = vshrl.u32 %v4758_v10, 16  ;;  %v1511_v22 = vshll.u32 %v4758_v10, 16  ;;  %v217_v12 = vld [vmem:[%s5785_s7 + $0x88] sm:$0xf]  ;;  %v1496_v14 = vsel %vm5816_vm2, %v1491_v34, %v7489_v29 }
 0x121   : > { %1087 = vst.msk [vmem:[#allocation2 + $0x1a8] sm:$0xf] %vm226_vm5, %v998_v54  ;;  %v4863_v20 = vld [vmem:[%s5785_s7 + $0x6c] sm:$0xf]  ;;  %v995_v63 = vsel %vm6002_vm6, %v4699_v23, %v994_v50  ;;  %250 = vst.msk [vmem:[#allocation2 + $0x1cc] sm:$0xf] %vm226_vm5, %v217_v12  ;;  %2680 = vrot.lane.b32.xlu0 %v2609_v1, %s5726_s10 }
 0x122   : > { %2170 = vst.msk [vmem:[#allocation2 + $0x124] sm:$0xf] %vm226_vm5, %v4863_v20  ;;  %v857_v53 = vld [vmem:[%s5785_s7 + $0x88] sm:$0xf]  ;;  %v858_v0 = vld [vmem:[%s5785_s7 + $0x8c] sm:$0x1]  ;;  %v727_v13 = vpop.permute.xlu0 %726 }
 0x123   : > { %v216_v8 = vld [vmem:[%s5785_s7 + $0x84] sm:$0xf]  ;;  %2099 = vst.msk [vmem:[#allocation2 + $0xa8] sm:$0xf] %vm790_vm7, %v2012_v18  ;;  %v1525_v59 = vrot.slane %v1524_v19, 4  ;;  %v1510_v25 = vrot.slane %v1508_v5, 4  ;;  %v2018_v15 = vpop.permute.xlu1 %2017 }
 0x124   : > { %1767 = vst.msk [vmem:[#allocation2 + $0xf8] sm:$0xf] %vm226_vm5, %v1496_v14  ;;  %1086 = vst.msk [vmem:[#allocation2 + $0x194] sm:$0xf] %vm226_vm5, %v995_v63  ;;  %v1513_v29 = vrot.slane %v1511_v22, 5  ;;  %v1001_v27 = vrot.slane %v857_v53, 5 }
 0x125   : > { %249 = vst.msk [vmem:[#allocation2 + $0x1b8] sm:$0xf] %vm226_vm5, %v216_v8  ;;  %v1004_v30 = vrot.slane %v858_v0, 5  ;;  %v4762_v41 = vld [vmem:[%s5785_s7 + $0x70] sm:$0xf]  ;;  %v1530_v3 = vsel %vm5816_vm2, %v1525_v59, %v1529_v52  ;;  %v3062_v32 = vld [vmem:[#allocation2 + $0x118] sm:$0xff] }
 0x126   : > { %808 = vst.msk [vmem:[#allocation2 + $0x154] sm:$0xf] %vm790_vm7, %v729_v62  ;;  %v1514_v6 = vor.u32 %v1513_v29, %v1510_v25  ;;  %v1003_v4 = vrot.slane %v1001_v27, 4  ;;  %v4763_v33 = vld [vmem:[%s5785_s7 + $0x74] sm:$0x1]  ;;  %v1541_v60 = vshll.u32 %v4762_v41, 16  ;;  %v5028_v11 = vcombine.low %v3062_v32, %v3065_v16  ;;  %v1196_v59 = vpop.permute.xlu0 %1195 }
 0x127   : > { %v856_v48 = vld [vmem:[%s5785_s7 + $0x84] sm:$0xe]  ;;  %v5665_v7 = vld [vmem:[#allocation2 + $0x11c] ss:$20 sps:$4 sm:$0xff]   ;;  %1770 = vst.msk [vmem:[#allocation2 + $0x134] sm:$0xf] %vm226_vm5, %v1530_v3 }
 0x128   : > { %v1545_v43 = vshrl.u32 %v4762_v41, 16  ;;  %v1551_v47 = vshll.u32 %v4763_v33, 16  ;;  %v4700_v50 = vrot.slane %v856_v48, 9  ;;  %2724 = vst.msk [vmem:[#allocation2 + $0xac] sm:$0xf] %vm790_vm7, %v2637_v26  ;;  %v1515_v21 = vrot.slane %v1514_v6, 4  ;;  %3941 = vmatprep.mubr.bf16.mxu0 %v5665_v7  ;;  %v2643_v33 = vpop.permute.xlu1 %2642 }
 0x129   : > { %v1005_v36 = vsel %vm6002_vm6, %v1003_v4, %v1004_v30  ;;  %v7603_v61 = vrot.slane %v1541_v60, 5  ;;  %v4866_v56 = vld [vmem:[%s5785_s7 + $0x7c] sm:$0xf]  ;;  %v4761_v45 = vld [vmem:[%s5785_s7 + $0x6c] sm:$0xf]  ;;  %3942 = vmatmul.mubr.bf16.gmra.mxu0 %v5028_v11 }
 0x12a   : > { %1089 = vst.msk [vmem:[#allocation2 + $0x1d0] sm:$0xf] %vm226_vm5, %v1005_v36  ;;  %v1547_v17 = vrot.slane %v1545_v43, 4  ;;  %v1553_v51 = vrot.slane %v1551_v47, 5  ;;  %v1002_v42 = vsel %vm6002_vm6, %v4700_v50, %v1001_v27  ;;  %2173 = vst.msk [vmem:[#allocation2 + $0x160] sm:$0xf] %vm226_vm5, %v4866_v56  ;;  %v1520_v28 = vsel %vm5816_vm2, %v1515_v21, %v7544_v49  ;;  %v2016_v21 = vpop.permute.xlu0 %2015 }
 0x12b   : > { %v1532_v55 = vshrl.u32 %v4761_v45, 16  ;;  %v4765_v24 = vld [vmem:[%s5785_s7 + $0x7c] sm:$0xf]  ;;  %1276 = vst.msk [vmem:[#allocation2 + $0x158] sm:$0xf] %vm790_vm7, %v1198_v58  ;;  %v1535_v38 = vshll.u32 %v4761_v45, 16 }
 0x12c   : > { %1088 = vst.msk [vmem:[#allocation2 + $0x1bc] sm:$0xf] %vm226_vm5, %v1002_v42  ;;  %v4766_v44 = vld [vmem:[%s5785_s7 + $0x80] sm:$0x1]  ;;  %v1565_v31 = vshll.u32 %v4765_v24, 16  ;;  %v1569_v2 = vshrl.u32 %v4765_v24, 16  ;;  %v1548_v9 = vor.u32 %v1547_v17, %v7603_v61 }
 0x12d   : > { %1769 = vst.msk [vmem:[#allocation2 + $0x120] sm:$0xf] %vm226_vm5, %v1520_v28  ;;  %v1534_v57 = vrot.slane %v1532_v55, 4  ;;  %v1575_v37 = vshll.u32 %v4766_v44, 16  ;;  %v4865_v34 = vld [vmem:[%s5785_s7 + $0x78] sm:$0xf]  ;;  %v733_v28 = vpop.permute.xlu1 %732 }
 0x12e   : > { %v4868_v54 = vld [vmem:[%s5785_s7 + $0x88] sm:$0xf]  ;;  %807 = vst.msk [vmem:[#allocation2 + $0x140] sm:$0xf] %vm790_vm7, %v727_v13  ;;  %v1537_v49 = vrot.slane %v1535_v38, 5  ;;  %v7624_v52 = vrot.slane %v1565_v31, 5 }
 0x12f   : > { %v1571_v23 = vrot.slane %v1569_v2, 4  ;;  %2172 = vst.msk [vmem:[#allocation2 + $0x14c] sm:$0xf] %vm226_vm5, %v4865_v34  ;;  %2175 = vst.msk [vmem:[#allocation2 + $0x188] sm:$0xf] %vm226_vm5, %v4868_v54  ;;  %v3048_v19 = vld [vmem:[#allocation2 + $0xbc] sm:$0xff] }
 0x130   : > { %v4764_v10 = vld [vmem:[%s5785_s7 + $0x78] sm:$0xf]  ;;  %v1549_v5 = vrot.slane %v1548_v9, 4  ;;  %v1577_v22 = vrot.slane %v1575_v37, 5  ;;  %v4768_v18 = vld [vmem:[%s5785_s7 + $0x88] sm:$0xf]  ;;  %v1538_v46 = vor.u32 %v1537_v49, %v1534_v57 }
 0x131   : > { %v1556_v12 = vshrl.u32 %v4764_v10, 16  ;;  %v1559_v20 = vshll.u32 %v4764_v10, 16  ;;  %2102 = vst.msk [vmem:[#allocation2 + $0xe4] sm:$0xf] %vm790_vm7, %v2018_v15  ;;  %v1572_v14 = vor.u32 %v1571_v23, %v7624_v52  ;;  %v4769_v63 = vld [vmem:[%s5785_s7 + $0x8c] sm:$0x1] }
 0x132   : > { %v1589_v53 = vshll.u32 %v4768_v18, 16  ;;  %v1593_v0 = vshrl.u32 %v4768_v18, 16  ;;  %v4867_v8 = vld [vmem:[%s5785_s7 + $0x84] sm:$0xf]  ;;  %v3045_v25 = vld [vmem:[#allocation2 + $0xa8] sm:$0xff]  ;;  %v1554_v27 = vsel %vm5816_vm2, %v1549_v5, %v1553_v51  ;;  %v1599_v16 = vshll.u32 %v4769_v63, 16 }
 0x133   : > { %v5668_v29 = vld [vmem:[#allocation2 + $0xac] ss:$20 sps:$4 sm:$0xff]   ;;  %v1558_v62 = vrot.slane %v1556_v12, 4  ;;  %v1561_v40 = vrot.slane %v1559_v20, 5  ;;  %2174 = vst.msk [vmem:[#allocation2 + $0x174] sm:$0xf] %vm226_vm5, %v4867_v8  ;;  %v5015_v30 = vcombine.low %v3045_v25, %v3048_v19 }
 0x134   : > { %1275 = vst.msk [vmem:[#allocation2 + $0x144] sm:$0xf] %vm790_vm7, %v1196_v59  ;;  %v1539_v41 = vrot.slane %v1538_v46, 4  ;;  %v1573_v3 = vrot.slane %v1572_v14, 4  ;;  %v7640_v6 = vrot.slane %v1589_v53, 5  ;;  %4078 = vmatprep.mubr.bf16.mxu1 %v5668_v29  ;;  %v1595_v48 = vrot.slane %v1593_v0, 4  ;;  %v1202_v53 = vpop.permute.xlu1 %1201 }
 0x135   : > { %1772 = vst.msk [vmem:[#allocation2 + $0x15c] sm:$0xf] %vm226_vm5, %v1554_v27  ;;  %v4929_v4 = vld [vmem:[%s5785_s7 + $0x18] sm:$0xe]  ;;  %v1562_v60 = vor.u32 %v1561_v40, %v1558_v62  ;;  %v4930_v26 = vld [vmem:[%s5785_s7 + $0x1c] sm:$0xf]  ;;  %4079 = vmatmul.mubr.bf16.gmra.mxu1 %v5015_v30 }
 0x136   : > { %v4977_v32 = vrot.slane %v4929_v4, 9  ;;  %2727 = vst.msk [vmem:[#allocation2 + $0xe8] sm:$0xf] %vm790_vm7, %v2643_v33  ;;  %v1544_v7 = vsel %vm5816_vm2, %v1539_v41, %v7603_v61  ;;  %v1578_v1 = vsel %vm5816_vm2, %v1573_v3, %v1577_v22  ;;  %v1601_v43 = vrot.slane %v1599_v16, 5  ;;  %v4931_v47 = vld [vmem:[%s5785_s7 + $0x20] sm:$0x1] }
 0x137   : > { %v2846_v50 = vrot.slane %v4930_v26, 5  ;;  %v4870_v11 = vld [vmem:[%s5785_s7 + $0x94] sm:$0xf]  ;;  %1771 = vst.msk [vmem:[#allocation2 + $0x148] sm:$0xf] %vm226_vm5, %v1544_v7  ;;  %v1563_v36 = vrot.slane %v1562_v60, 4  ;;  %v1596_v56 = vor.u32 %v1595_v48, %v7640_v6 }
 0x138   : > { %1774 = vst.msk [vmem:[#allocation2 + $0x184] sm:$0xf] %vm226_vm5, %v1578_v1  ;;  %v2849_v45 = vrot.slane %v4931_v47, 5  ;;  %2177 = vst.msk [vmem:[#allocation2 + $0x1b0] sm:$0xf] %vm226_vm5, %v4870_v11  ;;  %v3071_v9 = vld [vmem:[#allocation2 + $0x154] sm:$0xff]  ;;  %v2022_v1 = vpop.permute.xlu1 %2021 }
 0x139   : > { %v4767_v61 = vld [vmem:[%s5785_s7 + $0x84] sm:$0xf]  ;;  %2101 = vst.msk [vmem:[#allocation2 + $0xd0] sm:$0xf] %vm790_vm7, %v2016_v21  ;;  %v2847_v17 = vsel %vm6002_vm6, %v4977_v32, %v2846_v50  ;;  %v2848_v51 = vrot.slane %v2846_v50, 4  ;;  %v1568_v38 = vsel %vm5816_vm2, %v1563_v36, %v7624_v52  ;;  %v1597_v44 = vrot.slane %v1596_v56, 4  ;;  %v2641_v52 = vpop.permute.xlu0 %2640 }
 0x13a   : > { %v4932_v58 = vld [vmem:[%s5785_s7 + $0x24] sm:$0xe]  ;;  %v1580_v42 = vshrl.u32 %v4767_v61, 16  ;;  %v1583_v55 = vshll.u32 %v4767_v61, 16  ;;  %v4933_v24 = vld [vmem:[%s5785_s7 + $0x28] sm:$0xf] }
 0x13b   : > { %2988 = vst.msk [vmem:[#allocation2 + $0x10] sm:$0xf] %vm226_vm5, %v2847_v17  ;;  %v4934_v31 = vld [vmem:[%s5785_s7 + $0x2c] sm:$0x1]  ;;  %v4978_v2 = vrot.slane %v4932_v58, 9  ;;  %v2853_v13 = vrot.slane %v4933_v24, 5  ;;  %v2850_v57 = vsel %vm6002_vm6, %v2848_v51, %v2849_v45  ;;  %v1602_v15 = vsel %vm5816_vm2, %v1597_v44, %v1601_v43 }
 0x13c   : > { %810 = vst.msk [vmem:[#allocation2 + $0x17c] sm:$0xf] %vm790_vm7, %v733_v28  ;;  %v1582_v37 = vrot.slane %v1580_v42, 4  ;;  %v1585_v34 = vrot.slane %v1583_v55, 5  ;;  %v2856_v54 = vrot.slane %v4934_v31, 5  ;;  %v3068_v23 = vld [vmem:[#allocation2 + $0x140] sm:$0xff]  ;;  %v2647_v31 = vpop.permute.xlu1 %2646 }
 0x13d   : > { %1773 = vst.msk [vmem:[#allocation2 + $0x170] sm:$0xf] %vm226_vm5, %v1568_v38  ;;  %v4771_v49 = vld [vmem:[%s5785_s7 + $0x94] sm:$0xf]  ;;  %v5670_v10 = vld [vmem:[#allocation2 + $0x144] ss:$20 sps:$4 sm:$0xff]   ;;  %v2854_v19 = vsel %vm6002_vm6, %v4978_v2, %v2853_v13  ;;  %v5033_v12 = vcombine.low %v3068_v23, %v3071_v9  ;;  %v731_v30 = vpop.permute.xlu0 %730 }
 0x13e   : > { %2989 = vst.msk [vmem:[#allocation2 + $0x24] sm:$0xf] %vm226_vm5, %v2850_v57  ;;  %v2855_v5 = vrot.slane %v2853_v13, 4  ;;  %v4772_v22 = vld [vmem:[%s5785_s7 + $0x98] sm:$0x1]  ;;  %v1586_v20 = vor.u32 %v1585_v34, %v1582_v37  ;;  %v1613_v18 = vshll.u32 %v4771_v49, 16  ;;  %3949 = vmatprep.mubr.bf16.mxu0 %v5670_v10 }
 0x13f   : > { %2726 = vst.msk [vmem:[#allocation2 + $0xd4] sm:$0xf] %vm790_vm7, %v2641_v52  ;;  %v1617_v46 = vshrl.u32 %v4771_v49, 16  ;;  %v4869_v14 = vld [vmem:[%s5785_s7 + $0x90] sm:$0xf]  ;;  %v1623_v8 = vshll.u32 %v4772_v22, 16  ;;  %3950 = vmatmul.mubr.bf16.gmra.mxu0 %v5033_v12 }
 0x140   : > { %1776 = vst.msk [vmem:[#allocation2 + $0x1ac] sm:$0xf] %vm226_vm5, %v1602_v15  ;;  %2990 = vst.msk [vmem:[#allocation2 + $0x38] sm:$0xf] %vm226_vm5, %v2854_v19  ;;  %v4935_v63 = vld [vmem:[%s5785_s7 + $0x30] sm:$0xe]  ;;  %v2857_v0 = vsel %vm6002_vm6, %v2855_v5, %v2856_v54 }
 0x141   : > { %2176 = vst.msk [vmem:[#allocation2 + $0x19c] sm:$0xf] %vm226_vm5, %v4869_v14  ;;  %v4936_v59 = vld [vmem:[%s5785_s7 + $0x34] sm:$0xf]  ;;  %v4937_v25 = vld [vmem:[%s5785_s7 + $0x38] sm:$0x1]  ;;  %v1200_v45 = vpop.permute.xlu0 %1199 }
 0x142   : > { %1278 = vst.msk [vmem:[#allocation2 + $0x180] sm:$0xf] %vm790_vm7, %v1202_v53  ;;  %v1587_v29 = vrot.slane %v1586_v20, 4  ;;  %v7690_v27 = vrot.slane %v1613_v18, 5  ;;  %v1619_v62 = vrot.slane %v1617_v46, 4  ;;  %v4979_v40 = vrot.slane %v4935_v63, 9  ;;  %v737_v18 = vpop.permute.xlu1 %736 }
 0x143   : > { %2991 = vst.msk [vmem:[#allocation2 + $0x4c] sm:$0xf] %vm226_vm5, %v2857_v0  ;;  %v4872_v16 = vld [vmem:[%s5785_s7 + $0xa0] sm:$0xf]  ;;  %v1625_v41 = vrot.slane %v1623_v8, 5  ;;  %v2860_v3 = vrot.slane %v4936_v59, 5 }
 0x144   : > { %v2863_v4 = vrot.slane %v4937_v25, 5  ;;  %2179 = vst.msk [vmem:[#allocation2 + $0x1d8] sm:$0xf] %vm226_vm5, %v4872_v16  ;;  %v4770_v33 = vld [vmem:[%s5785_s7 + $0x90] sm:$0xf]  ;;  %v1592_v60 = vsel %vm5816_vm2, %v1587_v29, %v7640_v6  ;;  %v1620_v48 = vor.u32 %v1619_v62, %v7690_v27  ;;  %v3054_v21 = vld [vmem:[#allocation2 + $0xe4] sm:$0xff] }
 0x145   : > { %809 = vst.msk [vmem:[#allocation2 + $0x168] sm:$0xf] %vm790_vm7, %v731_v30  ;;  %v1604_v26 = vshrl.u32 %v4770_v33, 16  ;;  %v1607_v32 = vshll.u32 %v4770_v33, 16  ;;  %v4938_v7 = vld [vmem:[%s5785_s7 + $0x3c] sm:$0xe]  ;;  %v2861_v43 = vsel %vm6002_vm6, %v4979_v40, %v2860_v3  ;;  %v2020_v49 = vpop.permute.xlu0 %2019 }
 0x146   : > { %1775 = vst.msk [vmem:[#allocation2 + $0x198] sm:$0xf] %vm226_vm5, %v1592_v60  ;;  %v2862_v47 = vrot.slane %v2860_v3, 4  ;;  %v4939_v50 = vld [vmem:[%s5785_s7 + $0x40] sm:$0xf]  ;;  %v1621_v36 = vrot.slane %v1620_v48, 4  ;;  %v1206_v60 = vpop.permute.xlu1 %1205 }
 0x147   : > { %v4940_v11 = vld [vmem:[%s5785_s7 + $0x44] sm:$0x1]  ;;  %2104 = vst.msk [vmem:[#allocation2 + $0x10c] sm:$0xf] %vm790_vm7, %v2022_v1  ;;  %v1606_v6 = vrot.slane %v1604_v26, 4  ;;  %v4980_v56 = vrot.slane %v4938_v7, 9 }
 0x148   : > { %2992 = vst.msk [vmem:[#allocation2 + $0x60] sm:$0xf] %vm226_vm5, %v2861_v43  ;;  %v3051_v61 = vld [vmem:[#allocation2 + $0xd0] sm:$0xff]  ;;  %v2864_v17 = vsel %vm6002_vm6, %v2862_v47, %v2863_v4  ;;  %v1609_v51 = vrot.slane %v1607_v32, 5  ;;  %v1626_v55 = vsel %vm5816_vm2, %v1621_v36, %v1625_v41  ;;  %v2867_v24 = vrot.slane %v4939_v50, 5 }
 0x149   : > { %v5672_v58 = vld [vmem:[#allocation2 + $0xd4] ss:$20 sps:$4 sm:$0xff]   ;;  %1277 = vst.msk [vmem:[#allocation2 + $0x16c] sm:$0xf] %vm790_vm7, %v1200_v45  ;;  %v5020_v42 = vcombine.low %v3051_v61, %v3054_v21  ;;  %v2870_v28 = vrot.slane %v4940_v11, 5  ;;  %v3077_v46 = vld [vmem:[#allocation2 + $0x17c] sm:$0xff]  ;;  %v2645_v62 = vpop.permute.xlu0 %2644 }
 0x14a   : > { %2993 = vst.msk [vmem:[#allocation2 + $0x74] sm:$0xf] %vm226_vm5, %v2864_v17  ;;  %v4774_v38 = vld [vmem:[%s5785_s7 + $0xa0] sm:$0xf]  ;;  %v4775_v44 = vld [vmem:[%s5785_s7 + $0xa4] sm:$0x1]  ;;  %4086 = vmatprep.mubr.bf16.mxu1 %v5672_v58  ;;  %v1610_v2 = vor.u32 %v1609_v51, %v1606_v6  ;;  %v2868_v9 = vsel %vm6002_vm6, %v4980_v56, %v2867_v24  ;;  %v2026_v17 = vpop.permute.xlu1 %2025 }
 0x14b   : > { %1778 = vst.msk [vmem:[#allocation2 + $0x1d4] sm:$0xf] %vm226_vm5, %v1626_v55  ;;  %v1637_v13 = vshll.u32 %v4774_v38, 16  ;;  %4087 = vmatmul.mubr.bf16.gmra.mxu1 %v5020_v42  ;;  %v2869_v57 = vrot.slane %v2867_v24, 4  ;;  %v1641_v37 = vshrl.u32 %v4774_v38, 16  ;;  %v1647_v34 = vshll.u32 %v4775_v44, 16 }
 0x14c   : > { %2729 = vst.msk [vmem:[#allocation2 + $0x110] sm:$0xf] %vm790_vm7, %v2647_v31  ;;  %v4871_v54 = vld [vmem:[%s5785_s7 + $0x9c] sm:$0xf]  ;;  %v1611_v52 = vrot.slane %v1610_v2, 4 }
 0x14d   : > { %2994 = vst.msk [vmem:[#allocation2 + $0x88] sm:$0xf] %vm226_vm5, %v2868_v9  ;;  %v7722_v23 = vrot.slane %v1637_v13, 5  ;;  %2178 = vst.msk [vmem:[#allocation2 + $0x1c4] sm:$0xf] %vm226_vm5, %v4871_v54  ;;  %v2871_v19 = vsel %vm6002_vm6, %v2869_v57, %v2870_v28  ;;  %v1643_v5 = vrot.slane %v1641_v37, 4  ;;  %v735_v11 = vpop.permute.xlu0 %734 }
 0x14e   : > { %v4941_v10 = vld [vmem:[%s5785_s7 + $0x48] sm:$0xe]  ;;  %v4942_v15 = vld [vmem:[%s5785_s7 + $0x4c] sm:$0xf]  ;;  %2103 = vst.msk [vmem:[#allocation2 + $0xf8] sm:$0xf] %vm790_vm7, %v2020_v49  ;;  %v1616_v14 = vsel %vm5816_vm2, %v1611_v52, %v7690_v27 }
 0x14f   : > { %v1649_v22 = vrot.slane %v1647_v34, 5  ;;  %v4943_v12 = vld [vmem:[%s5785_s7 + $0x50] sm:$0x1]  ;;  %v4981_v20 = vrot.slane %v4941_v10, 9  ;;  %2995 = vst.msk [vmem:[#allocation2 + $0x9c] sm:$0xf] %vm226_vm5, %v2871_v19  ;;  %v1644_v8 = vor.u32 %v1643_v5, %v7722_v23  ;;  %v2651_v5 = vpop.permute.xlu1 %2650 }
 0x150   : > { %v2874_v63 = vrot.slane %v4942_v15, 5  ;;  %v2877_v53 = vrot.slane %v4943_v12, 5  ;;  %v4874_v0 = vld [vmem:[%s5785_s7 + $0xac] sm:$0xf]  ;;  %812 = vst.msk [vmem:[#allocation2 + $0x1a4] sm:$0xf] %vm790_vm7, %v737_v18 }
 0x151   : > { %1777 = vst.msk [vmem:[#allocation2 + $0x1c0] sm:$0xf] %vm226_vm5, %v1616_v14  ;;  %2181 = vst.msk [vmem:[#allocation2 + $0x200] sm:$0xf] %vm226_vm5, %v4874_v0  ;;  %v4773_v59 = vld [vmem:[%s5785_s7 + $0x9c] sm:$0xf]  ;;  %v1204_v9 = vpop.permute.xlu0 %1203 }
 0x152   : > { %v4944_v25 = vld [vmem:[%s5785_s7 + $0x54] sm:$0xe]  ;;  %v4945_v29 = vld [vmem:[%s5785_s7 + $0x58] sm:$0xf]  ;;  %v3074_v40 = vld [vmem:[#allocation2 + $0x168] sm:$0xff]  ;;  %v2875_v16 = vsel %vm6002_vm6, %v4981_v20, %v2874_v63  ;;  %v2876_v30 = vrot.slane %v2874_v63, 4 }
 0x153   : > { %v5675_v27 = vld [vmem:[#allocation2 + $0x16c] ss:$20 sps:$4 sm:$0xff]   ;;  %2728 = vst.msk [vmem:[#allocation2 + $0xfc] sm:$0xf] %vm790_vm7, %v2645_v62  ;;  %v5038_v41 = vcombine.low %v3074_v40, %v3077_v46  ;;  %v1645_v3 = vrot.slane %v1644_v8, 4  ;;  %v1628_v4 = vshrl.u32 %v4773_v59, 16 }
 0x154   : > { %2996 = vst.msk [vmem:[#allocation2 + $0xb0] sm:$0xf] %vm226_vm5, %v2875_v16  ;;  %v1631_v33 = vshll.u32 %v4773_v59, 16  ;;  %3957 = vmatprep.mubr.bf16.mxu0 %v5675_v27  ;;  %v2878_v48 = vsel %vm6002_vm6, %v2876_v30, %v2877_v53  ;;  %v4946_v26 = vld [vmem:[%s5785_s7 + $0x5c] sm:$0x1]  ;;  %v4982_v32 = vrot.slane %v4944_v25, 9  ;;  %v741_v27 = vpop.permute.xlu1 %740 }
 0x155   : > { %v2881_v7 = vrot.slane %v4945_v29, 5  ;;  %1280 = vst.msk [vmem:[#allocation2 + $0x1a8] sm:$0xf] %vm790_vm7, %v1206_v60  ;;  %3958 = vmatmul.mubr.bf16.gmra.mxu0 %v5038_v41  ;;  %v1650_v1 = vsel %vm5816_vm2, %v1645_v3, %v1649_v22  ;;  %v1630_v43 = vrot.slane %v1628_v4, 4  ;;  %v2884_v50 = vrot.slane %v4946_v26, 5  ;;  %v3060_v51 = vld [vmem:[#allocation2 + $0x10c] sm:$0xff]  ;;  %v2024_v14 = vpop.permute.xlu0 %2023 }
 0x156   : > { %2997 = vst.msk [vmem:[#allocation2 + $0xc4] sm:$0xf] %vm226_vm5, %v2878_v48  ;;  %v1633_v47 = vrot.slane %v1631_v33, 5  ;;  %1780 = vst.msk [vmem:[#allocation2 + $0x1fc] sm:$0xf] %vm226_vm5, %v1650_v1 }
 0x157   : > { %v2882_v21 = vsel %vm6002_vm6, %v4982_v32, %v2881_v7  ;;  %v2883_v36 = vrot.slane %v2881_v7, 4  ;;  %v4777_v6 = vld [vmem:[%s5785_s7 + $0xac] sm:$0xf]  ;;  %v4778_v56 = vld [vmem:[%s5785_s7 + $0xb0] sm:$0x1] }
 0x158   : > { %811 = vst.msk [vmem:[#allocation2 + $0x190] sm:$0xf] %vm790_vm7, %v735_v11  ;;  %v1634_v45 = vor.u32 %v1633_v47, %v1630_v43  ;;  %v1661_v61 = vshll.u32 %v4777_v6, 16  ;;  %v1665_v58 = vshrl.u32 %v4777_v6, 16  ;;  %v1671_v55 = vshll.u32 %v4778_v56, 16  ;;  %v1210_v56 = vpop.permute.xlu1 %1209 }
 0x159   : > { %2998 = vst.msk [vmem:[#allocation2 + $0xd8] sm:$0xf] %vm226_vm5, %v2882_v21  ;;  %v2885_v42 = vsel %vm6002_vm6, %v2883_v36, %v2884_v50  ;;  %v4873_v24 = vld [vmem:[%s5785_s7 + $0xa8] sm:$0xf]  ;;  %v4947_v28 = vld [vmem:[%s5785_s7 + $0x60] sm:$0xe]  ;;  %v2649_v48 = vpop.permute.xlu0 %2648 }
 0x15a   : > { %2106 = vst.msk [vmem:[#allocation2 + $0x134] sm:$0xf] %vm790_vm7, %v2026_v17  ;;  %v1635_v38 = vrot.slane %v1634_v45, 4  ;;  %v7767_v44 = vrot.slane %v1661_v61, 5  ;;  %v1667_v31 = vrot.slane %v1665_v58, 4  ;;  %v4983_v13 = vrot.slane %v4947_v28, 9 }
 0x15b   : > { %2999 = vst.msk [vmem:[#allocation2 + $0xec] sm:$0xf] %vm226_vm5, %v2885_v42  ;;  %2180 = vst.msk [vmem:[#allocation2 + $0x1ec] sm:$0xf] %vm226_vm5, %v4873_v24  ;;  %v4948_v2 = vld [vmem:[%s5785_s7 + $0x64] sm:$0xf] }
 0x15c   : > { %v3057_v57 = vld [vmem:[#allocation2 + $0xf8] sm:$0xff]  ;;  %v1673_v34 = vrot.slane %v1671_v55, 5  ;;  %1279 = vst.msk [vmem:[#allocation2 + $0x194] sm:$0xf] %vm790_vm7, %v1204_v9  ;;  %v1640_v49 = vsel %vm5816_vm2, %v1635_v38, %v7722_v23  ;;  %v1668_v52 = vor.u32 %v1667_v31, %v7767_v44  ;;  %v4949_v10 = vld [vmem:[%s5785_s7 + $0x68] sm:$0x1] }
 0x15d   : > { %v5677_v37 = vld [vmem:[#allocation2 + $0xfc] ss:$20 sps:$4 sm:$0xff]   ;;  %v5025_v54 = vcombine.low %v3057_v57, %v3060_v51  ;;  %v2888_v15 = vrot.slane %v4948_v2, 5  ;;  %v4876_v19 = vld [vmem:[%s5785_s7 + $0xb8] sm:$0xf]  ;;  %v2891_v22 = vrot.slane %v4949_v10, 5  ;;  %v739_v55 = vpop.permute.xlu0 %738 }
 0x15e   : > { %4094 = vmatprep.mubr.bf16.mxu1 %v5677_v37  ;;  %1779 = vst.msk [vmem:[#allocation2 + $0x1e8] sm:$0xf] %vm226_vm5, %v1640_v49  ;;  %2183 = vst.msk [vmem:[#allocation2 + $0x228] sm:$0xf] %vm226_vm5, %v4876_v19  ;;  %v1669_v12 = vrot.slane %v1668_v52, 4  ;;  %v3083_v32 = vld [vmem:[#allocation2 + $0x1a4] sm:$0xff]  ;;  %v2030_v37 = vpop.permute.xlu1 %2029 }
 0x15f   : > { %2731 = vst.msk [vmem:[#allocation2 + $0x138] sm:$0xf] %vm790_vm7, %v2651_v5  ;;  %4095 = vmatmul.mubr.bf16.gmra.mxu1 %v5025_v54  ;;  %v2889_v23 = vsel %vm6002_vm6, %v4983_v13, %v2888_v15  ;;  %v2890_v20 = vrot.slane %v2888_v15, 4  ;;  %v4776_v18 = vld [vmem:[%s5785_s7 + $0xa8] sm:$0xf] }
 0x160   : > { %v4950_v46 = vld [vmem:[%s5785_s7 + $0x6c] sm:$0xe]  ;;  %3000 = vst.msk [vmem:[#allocation2 + $0x100] sm:$0xf] %vm226_vm5, %v2889_v23  ;;  %v1652_v63 = vshrl.u32 %v4776_v18, 16  ;;  %v1655_v53 = vshll.u32 %v4776_v18, 16  ;;  %v1674_v8 = vsel %vm5816_vm2, %v1669_v12, %v1673_v34 }
 0x161   : > { %v4951_v0 = vld [vmem:[%s5785_s7 + $0x70] sm:$0xf]  ;;  %2105 = vst.msk [vmem:[#allocation2 + $0x120] sm:$0xf] %vm790_vm7, %v2024_v14  ;;  %v2892_v59 = vsel %vm6002_vm6, %v2890_v20, %v2891_v22  ;;  %v4952_v25 = vld [vmem:[%s5785_s7 + $0x74] sm:$0x1]  ;;  %v1208_v12 = vpop.permute.xlu0 %1207 }
 0x162   : > { %v4984_v29 = vrot.slane %v4950_v46, 9  ;;  %v2895_v62 = vrot.slane %v4951_v0, 5  ;;  %v4780_v40 = vld [vmem:[%s5785_s7 + $0xb8] sm:$0xf]  ;;  %1782 = vst.msk [vmem:[#allocation2 + $0x224] sm:$0xf] %vm226_vm5, %v1674_v8  ;;  %v2655_v8 = vpop.permute.xlu1 %2654 }
 0x163   : > { %3001 = vst.msk [vmem:[#allocation2 + $0x114] sm:$0xf] %vm226_vm5, %v2892_v59  ;;  %v1654_v16 = vrot.slane %v1652_v63, 4  ;;  %v1657_v30 = vrot.slane %v1655_v53, 5  ;;  %v2898_v4 = vrot.slane %v4952_v25, 5  ;;  %v1685_v60 = vshll.u32 %v4780_v40, 16 }
 0x164   : > { %814 = vst.msk [vmem:[#allocation2 + $0x1cc] sm:$0xf] %vm790_vm7, %v741_v27  ;;  %v2896_v41 = vsel %vm6002_vm6, %v4984_v29, %v2895_v62  ;;  %v2897_v3 = vrot.slane %v2895_v62, 4  ;;  %v4781_v33 = vld [vmem:[%s5785_s7 + $0xbc] sm:$0x1]  ;;  %v3080_v26 = vld [vmem:[#allocation2 + $0x190] sm:$0xff] }
 0x165   : > { %v5679_v7 = vld [vmem:[#allocation2 + $0x194] ss:$20 sps:$4 sm:$0xff]   ;;  %v1658_v1 = vor.u32 %v1657_v30, %v1654_v16  ;;  %3002 = vst.msk [vmem:[#allocation2 + $0x128] sm:$0xf] %vm226_vm5, %v2896_v41  ;;  %v1689_v43 = vshrl.u32 %v4780_v40, 16  ;;  %v1695_v47 = vshll.u32 %v4781_v33, 16  ;;  %v5043_v50 = vcombine.low %v3080_v26, %v3083_v32 }
 0x166   : > { %2730 = vst.msk [vmem:[#allocation2 + $0x124] sm:$0xf] %vm790_vm7, %v2649_v48  ;;  %v2899_v11 = vsel %vm6002_vm6, %v2897_v3, %v2898_v4  ;;  %v7804_v21 = vrot.slane %v1685_v60, 5  ;;  %v4875_v36 = vld [vmem:[%s5785_s7 + $0xb4] sm:$0xf]  ;;  %3965 = vmatprep.mubr.bf16.mxu0 %v5679_v7  ;;  %v2028_v3 = vpop.permute.xlu0 %2027 }
 0x167   : > { %v4953_v6 = vld [vmem:[%s5785_s7 + $0x78] sm:$0xe]  ;;  %v1659_v45 = vrot.slane %v1658_v1, 4  ;;  %3003 = vst.msk [vmem:[#allocation2 + $0x13c] sm:$0xf] %vm226_vm5, %v2899_v11  ;;  %v1691_v61 = vrot.slane %v1689_v43, 4  ;;  %3966 = vmatmul.mubr.bf16.gmra.mxu0 %v5043_v50  ;;  %v2034_v43 = vpop.permute.xlu1 %2033 }
 0x168   : > { %2182 = vst.msk [vmem:[#allocation2 + $0x214] sm:$0xf] %vm226_vm5, %v4875_v36  ;;  %v4954_v58 = vld [vmem:[%s5785_s7 + $0x7c] sm:$0xf]  ;;  %v4955_v17 = vld [vmem:[%s5785_s7 + $0x80] sm:$0x1] }
 0x169   : > { %1282 = vst.msk [vmem:[#allocation2 + $0x1d0] sm:$0xf] %vm790_vm7, %v1210_v56  ;;  %v4985_v51 = vrot.slane %v4953_v6, 9  ;;  %v2902_v42 = vrot.slane %v4954_v58, 5  ;;  %v1664_v24 = vsel %vm5816_vm2, %v1659_v45, %v7767_v44  ;;  %v1692_v28 = vor.u32 %v1691_v61, %v7804_v21  ;;  %v4878_v2 = vld [vmem:[%s5785_s7 + $0xc4] sm:$0xf] }
 0x16a   : > { %v1697_v38 = vrot.slane %v1695_v47, 5  ;;  %v2905_v31 = vrot.slane %v4955_v17, 5  ;;  %v4779_v13 = vld [vmem:[%s5785_s7 + $0xb4] sm:$0xf]  ;;  %813 = vst.msk [vmem:[#allocation2 + $0x1b8] sm:$0xf] %vm790_vm7, %v739_v55 }
 0x16b   : > { %1781 = vst.msk [vmem:[#allocation2 + $0x210] sm:$0xf] %vm226_vm5, %v1664_v24  ;;  %v2903_v9 = vsel %vm6002_vm6, %v4985_v51, %v2902_v42  ;;  %v2904_v57 = vrot.slane %v2902_v42, 4  ;;  %2185 = vst.msk [vmem:[#allocation2 + $0x250] sm:$0xf] %vm226_vm5, %v4878_v2  ;;  %v1676_v44 = vshrl.u32 %v4779_v13, 16  ;;  %v2653_v51 = vpop.permute.xlu0 %2652 }
 0x16c   : > { %v3066_v34 = vld [vmem:[#allocation2 + $0x134] sm:$0xff]  ;;  %v1693_v54 = vrot.slane %v1692_v28, 4  ;;  %3004 = vst.msk [vmem:[#allocation2 + $0x150] sm:$0xf] %vm226_vm5, %v2903_v9  ;;  %v1679_v49 = vshll.u32 %v4779_v13, 16 }
 0x16d   : > { %v4956_v52 = vld [vmem:[%s5785_s7 + $0x84] sm:$0xe]  ;;  %v4957_v10 = vld [vmem:[%s5785_s7 + $0x88] sm:$0xf]  ;;  %2108 = vst.msk [vmem:[#allocation2 + $0x15c] sm:$0xf] %vm790_vm7, %v2030_v37  ;;  %v2906_v15 = vsel %vm6002_vm6, %v2904_v57, %v2905_v31 }
 0x16e   : > { %v1678_v19 = vrot.slane %v1676_v44, 4  ;;  %v4958_v5 = vld [vmem:[%s5785_s7 + $0x8c] sm:$0x1]  ;;  %v4986_v22 = vrot.slane %v4956_v52, 9  ;;  %v3063_v23 = vld [vmem:[#allocation2 + $0x120] sm:$0xff]  ;;  %v1698_v18 = vsel %vm5816_vm2, %v1693_v54, %v1697_v38  ;;  %v1681_v46 = vrot.slane %v1679_v49, 5  ;;  %v2659_v44 = vpop.permute.xlu1 %2658 }
 0x16f   : > { %v5682_v20 = vld [vmem:[#allocation2 + $0x124] ss:$20 sps:$4 sm:$0xff]   ;;  %3005 = vst.msk [vmem:[#allocation2 + $0x164] sm:$0xf] %vm226_vm5, %v2906_v15  ;;  %v2909_v14 = vrot.slane %v4957_v10, 5  ;;  %v2912_v63 = vrot.slane %v4958_v5, 5  ;;  %v5030_v53 = vcombine.low %v3063_v23, %v3066_v34 }
 0x170   : > { %1281 = vst.msk [vmem:[#allocation2 + $0x1bc] sm:$0xf] %vm790_vm7, %v1208_v12  ;;  %v4783_v0 = vld [vmem:[%s5785_s7 + $0xc4] sm:$0xf]  ;;  %4102 = vmatprep.mubr.bf16.mxu1 %v5682_v20  ;;  %v1682_v59 = vor.u32 %v1681_v46, %v1678_v19  ;;  %v4784_v62 = vld [vmem:[%s5785_s7 + $0xc8] sm:$0x1]  ;;  %v2032_v19 = vpop.permute.xlu0 %2031 }
 0x171   : > { %1784 = vst.msk [vmem:[#allocation2 + $0x24c] sm:$0xf] %vm226_vm5, %v1698_v18  ;;  %v2910_v25 = vsel %vm6002_vm6, %v4986_v22, %v2909_v14  ;;  %v2911_v29 = vrot.slane %v2909_v14, 4  ;;  %v1709_v40 = vshll.u32 %v4783_v0, 16  ;;  %4103 = vmatmul.mubr.bf16.gmra.mxu1 %v5030_v53  ;;  %v1713_v27 = vshrl.u32 %v4783_v0, 16  ;;  %v3089_v45 = vld [vmem:[#allocation2 + $0x1cc] sm:$0xff] }
 0x172   : > { %2733 = vst.msk [vmem:[#allocation2 + $0x160] sm:$0xf] %vm790_vm7, %v2655_v8  ;;  %v1719_v16 = vshll.u32 %v4784_v62, 16  ;;  %v4877_v30 = vld [vmem:[%s5785_s7 + $0xc0] sm:$0xf]  ;;  %v1683_v4 = vrot.slane %v1682_v59, 4 }
 0x173   : > { %3006 = vst.msk [vmem:[#allocation2 + $0x178] sm:$0xf] %vm226_vm5, %v2910_v25  ;;  %v4959_v41 = vld [vmem:[%s5785_s7 + $0x90] sm:$0xe]  ;;  %v2913_v33 = vsel %vm6002_vm6, %v2911_v29, %v2912_v63  ;;  %v7846_v60 = vrot.slane %v1709_v40, 5  ;;  %v1715_v32 = vrot.slane %v1713_v27, 4  ;;  %v2038_v63 = vpop.permute.xlu1 %2037 }
 0x174   : > { %2184 = vst.msk [vmem:[#allocation2 + $0x23c] sm:$0xf] %vm226_vm5, %v4877_v30  ;;  %v4960_v48 = vld [vmem:[%s5785_s7 + $0x94] sm:$0xf]  ;;  %v4961_v26 = vld [vmem:[%s5785_s7 + $0x98] sm:$0x1]  ;;  %v1688_v50 = vsel %vm5816_vm2, %v1683_v4, %v7804_v21 }
 0x175   : > { %2107 = vst.msk [vmem:[#allocation2 + $0x148] sm:$0xf] %vm790_vm7, %v2028_v3  ;;  %v4987_v7 = vrot.slane %v4959_v41, 9  ;;  %v2916_v1 = vrot.slane %v4960_v48, 5  ;;  %v5688_v47 = vld [vmem:[#allocation2 + $0x10] ss:$20 sps:$4 sm:$0xff]   ;;  %v1716_v61 = vor.u32 %v1715_v32, %v7846_v60 }
 0x176   : > { %3007 = vst.msk [vmem:[#allocation2 + $0x18c] sm:$0xf] %vm226_vm5, %v2913_v33  ;;  %v1721_v11 = vrot.slane %v1719_v16, 5  ;;  %v2919_v36 = vrot.slane %v4961_v26, 5  ;;  %v4880_v6 = vld [vmem:[%s5785_s7 + $0xd0] sm:$0xf]  ;;  %v2657_v16 = vpop.permute.xlu0 %2656 }
 0x177   : > { %v4782_v56 = vld [vmem:[%s5785_s7 + $0xc0] sm:$0xf]  ;;  %2110 = vst.msk [vmem:[#allocation2 + $0x184] sm:$0xf] %vm790_vm7, %v2034_v43  ;;  %v2917_v58 = vsel %vm6002_vm6, %v4987_v7, %v2916_v1  ;;  %v2918_v17 = vrot.slane %v2916_v1, 4  ;;  %v3086_v42 = vld [vmem:[#allocation2 + $0x1b8] sm:$0xff] }
 0x178   : > { %1783 = vst.msk [vmem:[#allocation2 + $0x238] sm:$0xf] %vm226_vm5, %v1688_v50  ;;  %2187 = vst.msk [vmem:[#allocation2 + $0x278] sm:$0xf] %vm226_vm5, %v4880_v6  ;;  %v1700_v21 = vshrl.u32 %v4782_v56, 16  ;;  %v1703_v24 = vshll.u32 %v4782_v56, 16  ;;  %v5048_v38 = vcombine.low %v3086_v42, %v3089_v45 }
 0x179   : > { %v5684_v55 = vld [vmem:[#allocation2 + $0x1bc] ss:$20 sps:$4 sm:$0xff]   ;;  %3008 = vst.msk [vmem:[#allocation2 + $0x1a0] sm:$0xf] %vm226_vm5, %v2917_v58  ;;  %v1717_v31 = vrot.slane %v1716_v61, 4  ;;  %v2920_v2 = vsel %vm6002_vm6, %v2918_v17, %v2919_v36 }
 0x17a   : > { %v4962_v28 = vld [vmem:[%s5785_s7 + $0x9c] sm:$0xe]  ;;  %2732 = vst.msk [vmem:[#allocation2 + $0x14c] sm:$0xf] %vm790_vm7, %v2653_v51  ;;  %v1702_v13 = vrot.slane %v1700_v21, 4  ;;  %3973 = vmatprep.mubr.bf16.mxu0 %v5684_v55  ;;  %v1705_v37 = vrot.slane %v1703_v24, 5  ;;  %v2036_v45 = vpop.permute.xlu0 %2035 }
 0x17b   : > { %v4963_v9 = vld [vmem:[%s5785_s7 + $0xa0] sm:$0xf]  ;;  %v4964_v57 = vld [vmem:[%s5785_s7 + $0xa4] sm:$0x1]  ;;  %3009 = vst.msk [vmem:[#allocation2 + $0x1b4] sm:$0xf] %vm226_vm5, %v2920_v2  ;;  %3974 = vmatmul.mubr.bf16.gmra.mxu0 %v5048_v38  ;;  %v1722_v49 = vsel %vm5816_vm2, %v1717_v31, %v1721_v11  ;;  %v5376_v38 = vpop.f32.mrf.mxu1 }
 0x17c   : > { %v4988_v34 = vrot.slane %v4962_v28, 9  ;;  %v2923_v54 = vrot.slane %v4963_v9, 5  ;;  %2735 = vst.msk [vmem:[#allocation2 + $0x188] sm:$0xf] %vm790_vm7, %v2659_v44  ;;  %v2926_v52 = vrot.slane %v4964_v57, 5  ;;  %5540 = vmatprep.mubr.msk.bf16.mxu0 %vm3804_vm8, %v5688_v47  ;;  %v1706_v5 = vor.u32 %v1705_v37, %v1702_v13  ;;  %v3072_v41 = vld [vmem:[#allocation2 + $0x15c] sm:$0xff] }
 0x17d   : > { %v4879_v10 = vld [vmem:[%s5785_s7 + $0xcc] sm:$0xf]  ;;  %v4965_v15 = vld [vmem:[%s5785_s7 + $0xa8] sm:$0xe]  ;;  %1786 = vst.msk [vmem:[#allocation2 + $0x274] sm:$0xf] %vm226_vm5, %v1722_v49  ;;  %v5377_v49 = vpop.f32.mrf.mxu1 }
 0x17e   : > { %v2924_v22 = vsel %vm6002_vm6, %v4988_v34, %v2923_v54  ;;  %v2925_v12 = vrot.slane %v2923_v54, 4  ;;  %2186 = vst.msk [vmem:[#allocation2 + $0x264] sm:$0xf] %vm226_vm5, %v4879_v10  ;;  %v4989_v23 = vrot.slane %v4965_v15, 9  ;;  %v5689_v20 = vld [vmem:[#allocation2 + $0x38] ss:$20 sps:$4 sm:$0xff]   ;;  %v2661_v37 = vpop.permute.xlu0 %2660  ;;  %v7933_v15 = vadd.f32 %v5377_v49, %v5376_v38 }
 0x17f   : > { %2109 = vst.msk [vmem:[#allocation2 + $0x170] sm:$0xf] %vm790_vm7, %v2032_v19  ;;  %v4966_v18 = vld [vmem:[%s5785_s7 + $0xac] sm:$0xf]  ;;  %v4967_v46 = vld [vmem:[%s5785_s7 + $0xb0] sm:$0x1] }
 0x180   : > { %3010 = vst.msk [vmem:[#allocation2 + $0x1c8] sm:$0xf] %vm226_vm5, %v2924_v22  ;;  %v4968_v14 = vld [vmem:[%s5785_s7 + $0xb4] sm:$0xe]  ;;  %v1707_v0 = vrot.slane %v1706_v5, 4  ;;  %v2927_v8 = vsel %vm6002_vm6, %v2925_v12, %v2926_v52  ;;  %v2930_v59 = vrot.slane %v4966_v18, 5  ;;  %v5304_v5 = vpop.f32.mrf.mxu0  ;;  %v5379_v22 = vpop.f32.mrf.mxu1 }
 0x181   : > { %v5692_v53 = vld [vmem:[#allocation2 + $0x60] ss:$20 sps:$4 sm:$0xff]   ;;  %v2933_v25 = vrot.slane %v4967_v46, 5  ;;  %v4969_v29 = vld [vmem:[%s5785_s7 + $0xb8] sm:$0xf]  ;;  %v4990_v40 = vrot.slane %v4968_v14, 9 }
 0x182   : > { %2112 = vst.msk [vmem:[#allocation2 + $0x1ac] sm:$0xf] %vm790_vm7, %v2038_v63  ;;  %v4970_v62 = vld [vmem:[%s5785_s7 + $0xbc] sm:$0x1]  ;;  %v2937_v27 = vrot.slane %v4969_v29, 5  ;;  %v3069_v30 = vld [vmem:[#allocation2 + $0x148] sm:$0xff]  ;;  %v1712_v4 = vsel %vm5816_vm2, %v1707_v0, %v7846_v60  ;;  %v2931_v33 = vsel %vm6002_vm6, %v4989_v23, %v2930_v59  ;;  %v2663_v60 = vpop.permute.xlu1 %2662  ;;  %v2040_v12 = vpop.permute.xlu0 %2039 }
 0x183   : > { %3011 = vst.msk [vmem:[#allocation2 + $0x1dc] sm:$0xf] %vm226_vm5, %v2927_v8  ;;  %v5686_v3 = vld [vmem:[#allocation2 + $0x14c] ss:$20 sps:$4 sm:$0xff]   ;;  %v2932_v48 = vrot.slane %v2930_v59, 4  ;;  %v2940_v26 = vrot.slane %v4970_v62, 5  ;;  %v5035_v32 = vcombine.low %v3069_v30, %v3072_v41  ;;  %5541 = vmatmul.mubr.msk.bf16.vlgmr.msra.gmra.mxu0 %vm3804_vm8, %v5689_v20  ;;  %v5305_v39 = vpop.f32.mrf.mxu0  ;;  %v5380_v23 = vpop.f32.mrf.mxu1 }
 0x184   : > { %2734 = vst.msk [vmem:[#allocation2 + $0x174] sm:$0xf] %vm790_vm7, %v2657_v16  ;;  %v2938_v7 = vsel %vm6002_vm6, %v4990_v40, %v2937_v27  ;;  %v2939_v35 = vrot.slane %v2937_v27, 4  ;;  %4110 = vmatprep.mubr.bf16.mxu1 %v5686_v3  ;;  %v4971_v43 = vld [vmem:[%s5785_s7 + $0xc0] sm:$0xe]  ;;  %5544 = vmatprep.mubr.msk.bf16.mxu0 %vm3804_vm8, %v5692_v53  ;;  %v3078_v31 = vld [vmem:[#allocation2 + $0x184] sm:$0xff]  ;;  %v7940_v20 = vadd.f32 %v5305_v39, %v5304_v5 }
 0x185   : > { %1785 = vst.msk [vmem:[#allocation2 + $0x260] sm:$0xf] %vm226_vm5, %v1712_v4  ;;  %3012 = vst.msk [vmem:[#allocation2 + $0x1f0] sm:$0xf] %vm226_vm5, %v2931_v33  ;;  %v2934_v1 = vsel %vm6002_vm6, %v2932_v48, %v2933_v25  ;;  %v4972_v47 = vld [vmem:[%s5785_s7 + $0xc4] sm:$0xf]  ;;  %4111 = vmatmul.mubr.bf16.gmra.mxu1 %v5035_v32  ;;  %v7942_v18 = vadd.f32 %v5380_v23, %v5379_v22  ;;  %v5307_v63 = vpop.f32.mrf.mxu0  ;;  %v5382_v16 = vpop.f32.mrf.mxu1 }
 0x186   : > { %3014 = vst.msk [vmem:[#allocation2 + $0x218] sm:$0xf] %vm226_vm5, %v2938_v7  ;;  %3013 = vst.msk [vmem:[#allocation2 + $0x204] sm:$0xf] %vm226_vm5, %v2934_v1  ;;  %v2941_v50 = vsel %vm6002_vm6, %v2939_v35, %v2940_v26  ;;  %v4973_v11 = vld [vmem:[%s5785_s7 + $0xc8] sm:$0x1]  ;;  %v2042_v24 = vpop.permute.xlu1 %2041  ;;  %v2665_v0 = vpop.permute.xlu0 %2664 }
 0x187   : > { %2737 = vst.msk [vmem:[#allocation2 + $0x1b0] sm:$0xf] %vm790_vm7, %v2663_v60  ;;  %v4991_v36 = vrot.slane %v4971_v43, 9  ;;  %v2944_v6 = vrot.slane %v4972_v47, 5  ;;  %v4974_v56 = vld [vmem:[%s5785_s7 + $0xcc] sm:$0xe]  ;;  %v5308_v29 = vpop.f32.mrf.mxu0  ;;  %v5383_v41 = vpop.f32.mrf.mxu1 }
 0x188   : > { %3015 = vst.msk [vmem:[#allocation2 + $0x22c] sm:$0xf] %vm226_vm5, %v2941_v50  ;;  %v2947_v61 = vrot.slane %v4973_v11, 5  ;;  %v4975_v58 = vld [vmem:[%s5785_s7 + $0xd0] sm:$0xf]  ;;  %v4992_v17 = vrot.slane %v4974_v56, 9  ;;  %v7946_v40 = vadd.f32 %v5308_v29, %v5307_v63  ;;  %v7952_v3 = vadd.f32 %v5383_v41, %v5382_v16 }
 0x189   : > { %2111 = vst.msk [vmem:[#allocation2 + $0x198] sm:$0xf] %vm790_vm7, %v2036_v45  ;;  %v2945_v21 = vsel %vm6002_vm6, %v4991_v36, %v2944_v6  ;;  %v2946_v51 = vrot.slane %v2944_v6, 4  ;;  %v4976_v42 = vld [vmem:[%s5785_s7 + $0xd4] sm:$0x1]  ;;  %v2951_v55 = vrot.slane %v4975_v58, 5  ;;  %v5385_v33 = vpop.f32.mrf.mxu1  ;;  %v5310_v11 = vpop.f32.mrf.mxu0 }
 0x18a   : > { %3016 = vst.msk [vmem:[#allocation2 + $0x240] sm:$0xf] %vm226_vm5, %v2945_v21  ;;  %v2954_v28 = vrot.slane %v4976_v42, 5  ;;  %v5693_v2 = vld [vmem:[#allocation2 + $0x88] ss:$20 sps:$4 sm:$0xff]   ;;  %v2667_v19 = vpop.permute.xlu1 %2666  ;;  %v2044_v30 = vpop.permute.xlu0 %2043 }
 0x18b   : > { %2114 = vst.msk [vmem:[#allocation2 + $0x1d4] sm:$0xf] %vm790_vm7, %v2042_v24  ;;  %v5696_v13 = vld [vmem:[#allocation2 + $0xb0] ss:$20 sps:$4 sm:$0xff]   ;;  %v2948_v9 = vsel %vm6002_vm6, %v2946_v51, %v2947_v61  ;;  %v2952_v57 = vsel %vm6002_vm6, %v4992_v17, %v2951_v55  ;;  %v2953_v44 = vrot.slane %v2951_v55, 4  ;;  %5545 = vmatmul.mubr.msk.bf16.gmra.mxu0 %vm3804_vm8, %v5693_v2  ;;  %v5386_v1 = vpop.f32.mrf.mxu1  ;;  %v5311_v6 = vpop.f32.mrf.mxu0 }
 0x18c   : > { %v3075_v34 = vld [vmem:[#allocation2 + $0x170] sm:$0xff]  ;;  %3017 = vst.msk [vmem:[#allocation2 + $0x254] sm:$0xf] %vm226_vm5, %v2948_v9  ;;  %3018 = vst.msk [vmem:[#allocation2 + $0x268] sm:$0xf] %vm226_vm5, %v2952_v57  ;;  %5548 = vmatprep.mubr.msk.bf16.mxu0 %vm3804_vm8, %v5696_v13  ;;  %v7956_v47 = vadd.f32 %v5386_v1, %v5385_v33  ;;  %v7962_v56 = vadd.f32 %v5311_v6, %v5310_v11 }
 0x18d   : > { %v5690_v54 = vld [vmem:[#allocation2 + $0x174] ss:$20 sps:$4 sm:$0xff]   ;;  %2736 = vst.msk [vmem:[#allocation2 + $0x19c] sm:$0xf] %vm790_vm7, %v2661_v37  ;;  %v5040_v52 = vcombine.low %v3075_v34, %v3078_v31  ;;  %v2955_v10 = vsel %vm6002_vm6, %v2953_v44, %v2954_v28  ;;  %2739 = vst.msk [vmem:[#allocation2 + $0x1d8] sm:$0xf] %vm790_vm7, %v2667_v19  ;;  %v5313_v61 = vpop.f32.mrf.mxu0  ;;  %v5388_v2 = vpop.f32.mrf.mxu1 }
 0x18e   : > { %4118 = vmatprep.mubr.bf16.mxu1 %v5690_v54  ;;  %3019 = vst.msk [vmem:[#allocation2 + $0x27c] sm:$0xf] %vm226_vm5, %v2955_v10  ;;  %v2046_v46 = vpop.permute.xlu1 %2045  ;;  %v5697_v14 = vld [vmem:[#allocation2 + $0xd8] ss:$20 sps:$4 sm:$0xff]   ;;  %v5700_v53 = vld [vmem:[#allocation2 + $0x100] ss:$20 sps:$4 sm:$0xff]   ;;  %v2669_v32 = vpop.permute.xlu0 %2668 }
 0x18f   : > { %4119 = vmatmul.mubr.bf16.gmra.mxu1 %v5040_v52  ;;  %2113 = vst.msk [vmem:[#allocation2 + $0x1c0] sm:$0xf] %vm790_vm7, %v2040_v12  ;;  %2116 = vst.msk [vmem:[#allocation2 + $0x1fc] sm:$0xf] %vm790_vm7, %v2046_v46  ;;  %v3084_v59 = vld [vmem:[#allocation2 + $0x1ac] sm:$0xff]  ;;  %v5314_v24 = vpop.f32.mrf.mxu0  ;;  %v5389_v9 = vpop.f32.mrf.mxu1 }
 0x190   : > { %2738 = vst.msk [vmem:[#allocation2 + $0x1c4] sm:$0xf] %vm790_vm7, %v2665_v0  ;;  %2115 = vst.msk [vmem:[#allocation2 + $0x1e8] sm:$0xf] %vm790_vm7, %v2044_v30  ;;  %v5701_v48 = vld [vmem:[#allocation2 + $0x128] ss:$20 sps:$4 sm:$0xff]   ;;  %v7966_v38 = vadd.f32 %v5314_v24, %v5313_v61  ;;  %v7972_v57 = vadd.f32 %v5389_v9, %v5388_v2 }
 0x191   : > { %v5704_v26 = vld [vmem:[#allocation2 + $0x150] ss:$20 sps:$4 sm:$0xff]   ;;  %2740 = vst.msk [vmem:[#allocation2 + $0x1ec] sm:$0xf] %vm790_vm7, %v2669_v32  ;;  %v5705_v58 = vld [vmem:[#allocation2 + $0x178] ss:$20 sps:$4 sm:$0xff]   ;;  %v5391_v37 = vpop.f32.mrf.mxu1  ;;  %v5316_v23 = vpop.f32.mrf.mxu0 }
 0x192   : > { %v2671_v27 = vpop.permute.xlu1 %2670  ;;  %v2048_v36 = vpop.permute.xlu0 %2047  ;;  %v5708_v17 = vld [vmem:[#allocation2 + $0x1a0] ss:$20 sps:$4 sm:$0xff]   ;;  %v5709_v34 = vld [vmem:[#allocation2 + $0x1c8] ss:$20 sps:$4 sm:$0xff]   ;;  %v5712_v54 = vld [vmem:[#allocation2 + $0x1f0] ss:$20 sps:$4 sm:$0xff]  }
 0x193   : > { %2741 = vst.msk [vmem:[#allocation2 + $0x200] sm:$0xf] %vm790_vm7, %v2671_v27  ;;  %5549 = vmatmul.mubr.msk.bf16.gmra.mxu0 %vm3804_vm8, %v5697_v14  ;;  %2117 = vst.msk [vmem:[#allocation2 + $0x210] sm:$0xf] %vm790_vm7, %v2048_v36  ;;  %v5392_v5 = vpop.f32.mrf.mxu1  ;;  %v5317_v14 = vpop.f32.mrf.mxu0  ;;  %v5713_v0 = vld [vmem:[#allocation2 + $0x218] ss:$20 sps:$4 sm:$0xff]  }
 0x194   : > { %v3081_v8 = vld [vmem:[#allocation2 + $0x198] sm:$0xff]  ;;  %5552 = vmatprep.mubr.msk.bf16.mxu0 %vm3804_vm8, %v5700_v53  ;;  %v7976_v12 = vadd.f32 %v5392_v5, %v5391_v37  ;;  %v7982_v63 = vadd.f32 %v5317_v14, %v5316_v23 }
 0x195   : > { %v5694_v25 = vld [vmem:[#allocation2 + $0x19c] ss:$20 sps:$4 sm:$0xff]   ;;  %v5045_v62 = vcombine.low %v3081_v8, %v3084_v59  ;;  %v3090_v35 = vld [vmem:[#allocation2 + $0x1d4] sm:$0xff]  ;;  %v5319_v53 = vpop.f32.mrf.mxu0  ;;  %v5394_v41 = vpop.f32.mrf.mxu1 }
 0x196   : > { %4126 = vmatprep.mubr.bf16.mxu1 %v5694_v25  ;;  %v2050_v4 = vpop.permute.xlu1 %2049  ;;  %v2673_v21 = vpop.permute.xlu0 %2672  ;;  %v5716_v8 = vld [vmem:[#allocation2 + $0x240] ss:$20 sps:$4 sm:$0xff]  }
 0x197   : > { %4127 = vmatmul.mubr.bf16.gmra.mxu1 %v5045_v62  ;;  %2118 = vst.msk [vmem:[#allocation2 + $0x224] sm:$0xf] %vm790_vm7, %v2050_v4  ;;  %v3087_v7 = vld [vmem:[#allocation2 + $0x1c0] sm:$0xff]  ;;  %2742 = vst.msk [vmem:[#allocation2 + $0x214] sm:$0xf] %vm790_vm7, %v2673_v21  ;;  %v5320_v27 = vpop.f32.mrf.mxu0  ;;  %v5395_v4 = vpop.f32.mrf.mxu1 }
 0x198   : > { %v5698_v60 = vld [vmem:[#allocation2 + $0x1c4] ss:$20 sps:$4 sm:$0xff]   ;;  %v5050_v43 = vcombine.low %v3087_v7, %v3090_v35  ;;  %v3093_v51 = vld [vmem:[#allocation2 + $0x1e8] sm:$0xff]  ;;  %v5321_v30 = vadd.f32 %v5320_v27, %v5319_v53  ;;  %v7987_v33 = vadd.f32 %v5395_v4, %v5394_v41 }
 0x199   : > { %4134 = vmatprep.mubr.bf16.mxu1 %v5698_v60 }
 0x19a   : > { %v2675_v50 = vpop.permute.xlu1 %2674  ;;  %v3096_v42 = vld [vmem:[#allocation2 + $0x1fc] sm:$0xff]  ;;  %v2052_v13 = vpop.permute.xlu0 %2051 }
 0x19b   : > { %2743 = vst.msk [vmem:[#allocation2 + $0x228] sm:$0xf] %vm790_vm7, %v2675_v50  ;;  %5553 = vmatmul.mubr.msk.bf16.gmra.mxu0 %vm3804_vm8, %v5701_v48  ;;  %v5702_v55 = vld [vmem:[#allocation2 + $0x1ec] ss:$20 sps:$4 sm:$0xff]   ;;  %v5055_v28 = vcombine.low %v3093_v51, %v3096_v42  ;;  %2119 = vst.msk [vmem:[#allocation2 + $0x238] sm:$0xf] %vm790_vm7, %v2052_v13  ;;  %v5397_v48 = vpop.f32.mrf.mxu1  ;;  %v5322_v50 = vpop.f32.mrf.mxu0 }
 0x19c   : > { %5556 = vmatprep.mubr.msk.bf16.mxu0 %vm3804_vm8, %v5704_v26  ;;  %v5717_v26 = vld [vmem:[#allocation2 + $0x268] ss:$20 sps:$4 sm:$0xff]  }
 0x19d   : > { %v5398_v60 = vpop.f32.mrf.mxu1  ;;  %v5323_v11 = vpop.f32.mrf.mxu0 }
 0x19e   : > { %v2054_v45 = vpop.permute.xlu1 %2053  ;;  %v2677_v49 = vpop.permute.xlu0 %2676  ;;  %v3099_v52 = vld [vmem:[#allocation2 + $0x210] sm:$0xff]  ;;  %v5324_v36 = vadd.f32 %v5323_v11, %v5322_v50 }
 0x19f   : > { %4135 = vmatmul.mubr.bf16.gmra.mxu1 %v5050_v43  ;;  %2120 = vst.msk [vmem:[#allocation2 + $0x24c] sm:$0xf] %vm790_vm7, %v2054_v45  ;;  %2744 = vst.msk [vmem:[#allocation2 + $0x23c] sm:$0xf] %vm790_vm7, %v2677_v49  ;;  %v7989_v43 = vadd.f32 %v5398_v60, %v5397_v48  ;;  %v5325_v6 = vpop.f32.mrf.mxu0 }
 0x1a0   : > { %4142 = vmatprep.mubr.bf16.mxu1 %v5702_v55 }
 0x1a1   : > { %v5326_v45 = vpop.f32.mrf.mxu0 }
 0x1a2   : > { %v2679_v31 = vpop.permute.xlu1 %2678  ;;  %v3102_v10 = vld [vmem:[#allocation2 + $0x224] sm:$0xff]  ;;  %v2056_v46 = vpop.permute.xlu0 %2055  ;;  %v5327_v61 = vadd.f32 %v5326_v45, %v5325_v6 }
 0x1a3   : > { %2745 = vst.msk [vmem:[#allocation2 + $0x250] sm:$0xf] %vm790_vm7, %v2679_v31  ;;  %5557 = vmatmul.mubr.msk.bf16.gmra.mxu0 %vm3804_vm8, %v5705_v58  ;;  %v5706_v19 = vld [vmem:[#allocation2 + $0x214] ss:$20 sps:$4 sm:$0xff]   ;;  %v5060_v22 = vcombine.low %v3099_v52, %v3102_v10  ;;  %2121 = vst.msk [vmem:[#allocation2 + $0x260] sm:$0xf] %vm790_vm7, %v2056_v46  ;;  %v5416_v58 = vpop.f32.mrf.mxu1 }
 0x1a4   : > { %5560 = vmatprep.mubr.msk.bf16.mxu0 %vm3804_vm8, %v5708_v17 }
 0x1a5   : > { %v5417_v17 = vpop.f32.mrf.mxu1 }
 0x1a6   : > { %v2058_v44 = vpop.permute.xlu1 %2057  ;;  %v2681_v59 = vpop.permute.xlu0 %2680  ;;  %v3105_v25 = vld [vmem:[#allocation2 + $0x238] sm:$0xff]  ;;  %v5418_v21 = vadd.f32 %v5417_v17, %v5416_v58 }
 0x1a7   : > { %4143 = vmatmul.mubr.bf16.gmra.mxu1 %v5055_v28  ;;  %2122 = vst.msk [vmem:[#allocation2 + $0x274] sm:$0xf] %vm790_vm7, %v2058_v44  ;;  %2746 = vst.msk [vmem:[#allocation2 + $0x264] sm:$0xf] %vm790_vm7, %v2681_v59  ;;  %v5419_v51 = vpop.f32.mrf.mxu1 }
 0x1a8   : > { %4150 = vmatprep.mubr.bf16.mxu1 %v5706_v19  ;;  %v7993_v42 = vadd.f32 %v5418_v21, %v7940_v20 }
 0x1a9   : > { %v5420_v55 = vpop.f32.mrf.mxu1 }
 0x1aa   : > { %v2683_v39 = vpop.permute.xlu1 %2682  ;;  %v3108_v29 = vld [vmem:[#allocation2 + $0x24c] sm:$0xff]  ;;  %v5421_v24 = vadd.f32 %v5420_v55, %v5419_v51 }
 0x1ab   : > { %2747 = vst.msk [vmem:[#allocation2 + $0x278] sm:$0xf] %vm790_vm7, %v2683_v39  ;;  %5561 = vmatmul.mubr.msk.bf16.gmra.mxu0 %vm3804_vm8, %v5709_v34  ;;  %v5710_v62 = vld [vmem:[#allocation2 + $0x23c] ss:$20 sps:$4 sm:$0xff]   ;;  %v5065_v16 = vcombine.low %v3105_v25, %v3108_v29 }
 0x1ac   : > { %5564 = vmatprep.mubr.msk.bf16.mxu0 %vm3804_vm8, %v5712_v54  ;;  %v5328_v28 = vpop.f32.mrf.mxu0  ;;  %v7996_v31 = vadd.f32 %v5421_v24, %v7946_v40 }
 0x1ae   : > { %v3111_v32 = vld [vmem:[#allocation2 + $0x260] sm:$0xff]  ;;  %v5329_v2 = vpop.f32.mrf.mxu0 }
 0x1af   : > { %4151 = vmatmul.mubr.bf16.gmra.mxu1 %v5060_v22  ;;  %v5330_v13 = vadd.f32 %v5329_v2, %v5328_v28 }
 0x1b0   : > { %4158 = vmatprep.mubr.bf16.mxu1 %v5710_v62  ;;  %v5331_v9 = vpop.f32.mrf.mxu0 }
 0x1b2   : > { %v3114_v7 = vld [vmem:[#allocation2 + $0x274] sm:$0xff]  ;;  %v5332_v44 = vpop.f32.mrf.mxu0 }
 0x1b3   : > { %5565 = vmatmul.mubr.msk.bf16.gmra.mxu0 %vm3804_vm8, %v5713_v0  ;;  %v5714_v35 = vld [vmem:[#allocation2 + $0x264] ss:$20 sps:$4 sm:$0xff]   ;;  %v5070_v1 = vcombine.low %v3111_v32, %v3114_v7  ;;  %v5333_v37 = vadd.f32 %v5332_v44, %v5331_v9 }
 0x1b4   : > { %5568 = vmatprep.mubr.msk.bf16.mxu0 %vm3804_vm8, %v5716_v8 }
 0x1b6   : > { %v5422_v34 = vpop.f32.mrf.mxu1 }
 0x1b7   : > { %4159 = vmatmul.mubr.bf16.gmra.mxu1 %v5065_v16 }
 0x1b8   : > { %4166 = vmatprep.mubr.bf16.mxu1 %v5714_v35  ;;  %v5423_v54 = vpop.f32.mrf.mxu1 }
 0x1b9   : > { %v5424_v49 = vadd.f32 %v5423_v54, %v5422_v34 }
 0x1ba   : > { %v5425_v52 = vpop.f32.mrf.mxu1 }
 0x1bb   : > { %5569 = vmatmul.mubr.msk.bf16.gmra.mxu0 %vm3804_vm8, %v5717_v26  ;;  %v7999_v10 = vadd.f32 %v5424_v49, %v7962_v56 }
 0x1bc   : > { %v5426_v20 = vpop.f32.mrf.mxu1 }
 0x1bd   : > { %v5427_v19 = vadd.f32 %v5426_v20, %v5425_v52 }
 0x1bf   : > { %4167 = vmatmul.mubr.bf16.gmra.mxu1 %v5070_v1  ;;  %v8002_v22 = vadd.f32 %v5427_v19, %v7966_v38 }
 0x1c0   : > { %v5334_v5 = vpop.f32.mrf.mxu0 }
 0x1c2   : > { %v5335_v40 = vpop.f32.mrf.mxu0 }
 0x1c3   : > { %v5336_v39 = vadd.f32 %v5335_v40, %v5334_v5 }
 0x1c4   : > { %v5337_v23 = vpop.f32.mrf.mxu0 }
 0x1c6   : > { %v5338_v46 = vpop.f32.mrf.mxu0 }
 0x1c7   : > { %v5339_v14 = vadd.f32 %v5338_v46, %v5337_v23 }
 0x1c9   : > { %v5428_v53 = vpop.f32.mrf.mxu1 }
 0x1cb   : > { %v5429_v0 = vpop.f32.mrf.mxu1 }
 0x1cc   : > { %v5430_v8 = vadd.f32 %v5429_v0, %v5428_v53 }
 0x1cd   : > { %v5431_v59 = vpop.f32.mrf.mxu1 }
 0x1ce   : > { %v8005_v25 = vadd.f32 %v5430_v8, %v7982_v63 }
 0x1cf   : > { %v5432_v56 = vpop.f32.mrf.mxu1 }
 0x1d0   : > { %v5433_v29 = vadd.f32 %v5432_v56, %v5431_v59 }
 0x1d2   : > { %v8007_v27 = vadd.f32 %v5433_v29, %v5321_v30 }
 0x1d4   : > { %v5340_v62 = vpop.f32.mrf.mxu0 }
 0x1d6   : > { %v5341_v16 = vpop.f32.mrf.mxu0 }
 0x1d7   : > { %v5342_v38 = vadd.f32 %v5341_v16, %v5340_v62 }
 0x1d8   : > { %v5343_v41 = vpop.f32.mrf.mxu0 }
 0x1da   : > { %v5344_v4 = vpop.f32.mrf.mxu0 }
 0x1db   : > { %v5345_v48 = vadd.f32 %v5344_v4, %v5343_v41 }
 0x1df   : > { %v5434_v26 = vpop.f32.mrf.mxu1 }
 0x1e1   : > { %v5435_v32 = vpop.f32.mrf.mxu1 }
 0x1e2   : > { %v5436_v7 = vadd.f32 %v5435_v32, %v5434_v26 }
 0x1e3   : > { %v5437_v35 = vpop.f32.mrf.mxu1 }
 0x1e4   : > { %v8009_v60 = vadd.f32 %v5436_v7, %v5324_v36 }
 0x1e5   : > { %v5438_v1 = vpop.f32.mrf.mxu1 }
 0x1e6   : > { %v5439_v50 = vadd.f32 %v5438_v1, %v5437_v35 }
 0x1e8   : > { %v8011_v11 = vadd.f32 %v5439_v50, %v5327_v61 }
 0x1e9   : > { %v5346_v63 = vpop.f32.mrf.mxu0 }
 0x1eb   : > { %v5347_v6 = vpop.f32.mrf.mxu0 }
 0x1ec   : > { %v5348_v45 = vadd.f32 %v5347_v6, %v5346_v63 }
 0x1ed   : > { %v5349_v30 = vpop.f32.mrf.mxu0 }
 0x1ef   : > { %v5350_v58 = vpop.f32.mrf.mxu0 }
 0x1f0   : > { %v5351_v17 = vadd.f32 %v5350_v58, %v5349_v30 }
 0x1f5   : > { %v5440_v21 = vpop.f32.mrf.mxu1 }
 0x1f7   : > { %v5441_v51 = vpop.f32.mrf.mxu1 }
 0x1f8   : > { %v5442_v55 = vadd.f32 %v5441_v51, %v5440_v21 }
 0x1f9   : > { %v5443_v24 = vpop.f32.mrf.mxu1 }
 0x1fa   : > { %v8013_v28 = vadd.f32 %v5442_v55, %v5330_v13 }
 0x1fb   : > { %v5444_v2 = vpop.f32.mrf.mxu1 }
 0x1fc   : > { %v5445_v9 = vadd.f32 %v5444_v2, %v5443_v24 }
 0x1fe   : > { %v8015_v44 = vadd.f32 %v5445_v9, %v5333_v37 }
 0x1ff   : > { %v5352_v36 = vpop.f32.mrf.mxu0 }
 0x201   : > { %v5353_v34 = vpop.f32.mrf.mxu0 }
 0x202   : > { %v8017_v54 = vadd.f32 %v5353_v34, %v5352_v36 }
 0x203   : > { %v5355_v61 = vpop.f32.mrf.mxu0 }
 0x205   : > { %v5356_v49 = vpop.f32.mrf.mxu0 }
 0x206   : > { %v8019_v52 = vadd.f32 %v5356_v49, %v5355_v61 }
 0x20b   : > { %v5446_v20 = vpop.f32.mrf.mxu1 }
 0x20d   : > { %v5447_v19 = vpop.f32.mrf.mxu1 }
 0x20e   : > { %v5448_v5 = vadd.f32 %v5447_v19, %v5446_v20 }
 0x20f   : > { %v5449_v40 = vpop.f32.mrf.mxu1 }
 0x210   : > { %v8021_v23 = vadd.f32 %v5448_v5, %v5336_v39 }
 0x211   : > { %v5450_v13 = vpop.f32.mrf.mxu1 }
 0x212   : > { %v5451_v46 = vadd.f32 %v5450_v13, %v5449_v40 }
 0x214   : > { %v8023_v0 = vadd.f32 %v5451_v46, %v5339_v14 }
 0x215   : > { %v5358_v53 = vpop.f32.mrf.mxu0 }
 0x217   : > { %v5359_v37 = vpop.f32.mrf.mxu0 }
 0x218   : > { %v8025_v8 = vadd.f32 %v5359_v37, %v5358_v53 }
 0x219   : > { %v5361_v59 = vpop.f32.mrf.mxu0 }
 0x21b   : > { %v5362_v56 = vpop.f32.mrf.mxu0 }
 0x21c   : > { %v8027_v29 = vadd.f32 %v5362_v56, %v5361_v59 }
 0x21f   : > { %v5452_v62 = vpop.f32.mrf.mxu1 }
 0x221   : > { %v5453_v16 = vpop.f32.mrf.mxu1 }
 0x222   : > { %v5454_v41 = vadd.f32 %v5453_v16, %v5452_v62 }
 0x223   : > { %v5455_v4 = vpop.f32.mrf.mxu1 }
 0x224   : > { %v8029_v26 = vadd.f32 %v5454_v41, %v5342_v38 }
 0x225   : > { %v5456_v39 = vpop.f32.mrf.mxu1 }
 0x226   : > { %v5457_v32 = vadd.f32 %v5456_v39, %v5455_v4 }
 0x227   : > { %v5364_v7 = vpop.f32.mrf.mxu0 }
 0x228   : > { %v8031_v35 = vadd.f32 %v5457_v32, %v5345_v48 }
 0x229   : > { %v5365_v14 = vpop.f32.mrf.mxu0 }
 0x22a   : > { %v8033_v1 = vadd.f32 %v5365_v14, %v5364_v7 }
 0x22b   : > { %v5367_v50 = vpop.f32.mrf.mxu0 }
 0x22d   : > { %v5368_v63 = vpop.f32.mrf.mxu0 }
 0x22e   : > { %v8035_v6 = vadd.f32 %v5368_v63, %v5367_v50 }
 0x231   : > { %v5458_v30 = vpop.f32.mrf.mxu1 }
 0x233   : > { %v5459_v58 = vpop.f32.mrf.mxu1 }
 0x234   : > { %v5460_v21 = vadd.f32 %v5459_v58, %v5458_v30 }
 0x235   : > { %v5461_v51 = vpop.f32.mrf.mxu1 }
 0x236   : > { %v4105_v55 = vadd.f32 %v5460_v21, %v5348_v45 }
 0x237   : > { %v5462_v24 = vpop.f32.mrf.mxu1 }
 0x238   : > { %v5463_v38 = vadd.f32 %v5462_v24, %v5461_v51 }
 0x23a   : > { %v4108_v9 = vadd.f32 %v5463_v38, %v5351_v17 }
 0x23b   : > { %v5370_v2 = vpop.f32.mrf.mxu0 }
 0x23d   : > { %v5371_v36 = vpop.f32.mrf.mxu0 }
 0x23e   : > { %v8037_v34 = vadd.f32 %v5371_v36, %v5370_v2 }
 0x23f   : > { %v8039_v48 = vpop.f32.mrf.mxu0 }
 0x241   : > { %v8041_v61 = vpop.f32.mrf.mxu0 }
 0x243   : > { %v5542_v20 = vpop.f32.mrf.mxu0 }
 0x244   : > { %v8044_v19 = vadd.f32 %v5542_v20, %v7999_v10 }
 0x245   : > { %v5464_v49 = vpop.f32.mrf.mxu1  ;;  %v4209_v40 = vpop.f32.mrf.mxu0 }
 0x246   : > { %v8047_v45 = vadd.f32 %v4209_v40, %v7993_v42 }
 0x247   : > { %v5465_v5 = vpop.f32.mrf.mxu1  ;;  %v5543_v46 = vpop.f32.mrf.mxu0 }
 0x248   : > { %v8050_v17 = vadd.f32 %v5543_v46, %v8002_v22 }
 0x249   : > { %v5467_v13 = vpop.f32.mrf.mxu1  ;;  %v4212_v37 = vpop.f32.mrf.mxu0 }
 0x24a   : > { %v8053_v59 = vadd.f32 %v4212_v37, %v7996_v31 }
 0x24b   : > { %v5468_v53 = vpop.f32.mrf.mxu1  ;;  %v5546_v62 = vpop.f32.mrf.mxu0 }
 0x24c   : > { %v8056_v10 = vadd.f32 %v5546_v62, %v8009_v60  ;;  %v5466_v62 = vadd.f32 %v5465_v5, %v5464_v49 }
 0x24d   : > { %v4225_v41 = vpop.f32.mrf.mxu0 }
 0x24e   : > { %v8059_v42 = vadd.f32 %v4225_v41, %v8005_v25 }
 0x24f   : > { %v5470_v56 = vpop.f32.mrf.mxu1  ;;  %v5547_v39 = vpop.f32.mrf.mxu0 }
 0x250   : > { %v8062_v22 = vadd.f32 %v5547_v39, %v8011_v11 }
 0x251   : > { %v5471_v16 = vpop.f32.mrf.mxu1  ;;  %v4228_v7 = vpop.f32.mrf.mxu0 }
 0x252   : > { %v8065_v31 = vadd.f32 %v4228_v7, %v8007_v27  ;;  %v5472_v40 = vadd.f32 %v5471_v16, %v5470_v56 }
 0x253   : > { %v5473_v4 = vpop.f32.mrf.mxu1  ;;  %v5550_v50 = vpop.f32.mrf.mxu0 }
 0x254   : > { %v8068_v60 = vadd.f32 %v5550_v50, %v8021_v23 }
 0x255   : > { %v5474_v32 = vpop.f32.mrf.mxu1  ;;  %v4241_v30 = vpop.f32.mrf.mxu0 }
 0x256   : > { %v8071_v25 = vadd.f32 %v4241_v30, %v8013_v28  ;;  %v5475_v7 = vadd.f32 %v5474_v32, %v5473_v4 }
 0x257   : > { %v5476_v14 = vpop.f32.mrf.mxu1  ;;  %v5551_v21 = vpop.f32.mrf.mxu0 }
 0x258   : > { %v8074_v11 = vadd.f32 %v5551_v21, %v8023_v0  ;;  %v5469_v21 = vadd.f32 %v5468_v53, %v5467_v13  ;;  %v4124_v5 = vadd.f32 %v5475_v7, %v8027_v29 }
 0x259   : > { %v5477_v63 = vpop.f32.mrf.mxu1  ;;  %v4244_v24 = vpop.f32.mrf.mxu0 }
 0x25a   : > { %v8077_v27 = vadd.f32 %v4244_v24, %v8015_v44 }
 0x25b   : > { %v5479_v58 = vpop.f32.mrf.mxu1  ;;  %v5554_v2 = vpop.f32.mrf.mxu0 }
 0x25c   : > { %v8079_v36 = vadd.f32 %v5554_v2, %v4105_v55  ;;  %v4121_v55 = vadd.f32 %v5472_v40, %v8025_v8  ;;  %v4116_v8 = vadd.f32 %v5469_v21, %v8019_v52 }
 0x25d   : > { %v5480_v51 = vpop.f32.mrf.mxu1  ;;  %v4257_v20 = vpop.f32.mrf.mxu0 }
 0x25e   : > { %v8082_v28 = vadd.f32 %v4257_v20, %v8029_v26  ;;  %v4113_v26 = vadd.f32 %v5466_v62, %v8017_v54  ;;  %v5481_v29 = vadd.f32 %v5480_v51, %v5479_v58 }
 0x25f   : > { %v5482_v38 = vpop.f32.mrf.mxu1  ;;  %v5555_v37 = vpop.f32.mrf.mxu0 }
 0x260   : > { %v8084_v0 = vadd.f32 %v5555_v37, %v4108_v9  ;;  %v4132_v21 = vadd.f32 %v5481_v29, %v8035_v6 }
 0x261   : > { %v5483_v23 = vpop.f32.mrf.mxu1  ;;  %v4260_v39 = vpop.f32.mrf.mxu0 }
 0x262   : > { %v8087_v44 = vadd.f32 %v4260_v39, %v8031_v35  ;;  %v5484_v49 = vadd.f32 %v5483_v23, %v5482_v38  ;;  %v5478_v35 = vadd.f32 %v5477_v63, %v5476_v14  ;;  %v5375_v23 = vadd.f32 %v8041_v61, %v8039_v48 }
 0x263   : > { %v5485_v46 = vpop.f32.mrf.mxu1  ;;  %v5558_v30 = vpop.f32.mrf.mxu0 }
 0x264   : > { %v8090_v56 = vadd.f32 %v5558_v30, %v4121_v55  ;;  %v4137_v54 = vadd.f32 %v5484_v49, %v8037_v34  ;;  %v4129_v14 = vadd.f32 %v5478_v35, %v8033_v1 }
 0x265   : > { %v5486_v41 = vpop.f32.mrf.mxu1  ;;  %v4273_v24 = vpop.f32.mrf.mxu0 }
 0x266   : > { %v8093_v9 = vadd.f32 %v4273_v24, %v4113_v26  ;;  %v5487_v53 = vadd.f32 %v5486_v41, %v5485_v46 }
 0x267   : > { %v5488_v50 = vpop.f32.mrf.mxu1  ;;  %v5559_v32 = vpop.f32.mrf.mxu0 }
 0x268   : > { %v8096_v2 = vadd.f32 %v5559_v32, %v4124_v5  ;;  %v4140_v46 = vadd.f32 %v5487_v53, %v5375_v23 }
 0x269   : > { %v5489_v16 = vpop.f32.mrf.mxu1  ;;  %v4276_v13 = vpop.f32.mrf.mxu0 }
 0x26a   : > { %v8099_v40 = vadd.f32 %v4276_v13, %v4116_v8  ;;  %v5490_v30 = vadd.f32 %v5489_v16, %v5488_v50 }
 0x26b   : > { %v5491_v4 = vpop.f32.mrf.mxu1  ;;  %v5562_v38 = vpop.f32.mrf.mxu0 }
 0x26c   : > { %v8104_v62 = vadd.f32 %v5562_v38, %v4137_v54  ;;  %v4145_v32 = vadd.f32 %v5490_v30, %v7933_v15 }
 0x26d   : > { %v5492_v20 = vpop.f32.mrf.mxu1  ;;  %v4289_v39 = vpop.f32.mrf.mxu0 }
 0x26e   : > { %v8107_v7 = vadd.f32 %v4289_v39, %v4129_v14  ;;  %v5493_v49 = vadd.f32 %v5492_v20, %v5491_v4 }
 0x26f   : > { %v5494_v37 = vpop.f32.mrf.mxu1  ;;  %v5563_v55 = vpop.f32.mrf.mxu0 }
 0x270   : > { %v8109_v34 = vadd.f32 %v5563_v55, %v4140_v46 }
 0x271   : > { %v5495_v63 = vpop.f32.mrf.mxu1  ;;  %v4292_v48 = vpop.f32.mrf.mxu0 }
 0x272   : > { %v5496_v52 = vadd.f32 %v5495_v63, %v5494_v37  ;;  %v8112_v58 = vadd.f32 %v4292_v48, %v4132_v21 }
 0x273   : > { %v5497_v41 = vpop.f32.mrf.mxu1  ;;  %v5566_v24 = vpop.f32.mrf.mxu0 }
 0x274   : > { %v4153_v1 = vadd.f32 %v5496_v52, %v7952_v3  ;;  %v4148_v3 = vadd.f32 %v5493_v49, %v7942_v18 }
 0x275   : > { %v5498_v26 = vpop.f32.mrf.mxu1  ;;  %v4305_v50 = vpop.f32.mrf.mxu0 }
 0x276   : > { %v5499_v61 = vadd.f32 %v5498_v26, %v5497_v41  ;;  %v8115_v5 = vadd.f32 %v5566_v24, %v4153_v1  ;;  %v8118_v16 = vadd.f32 %v4305_v50, %v4145_v32 }
 0x277   : > { %v5500_v51 = vpop.f32.mrf.mxu1  ;;  %v5567_v13 = vpop.f32.mrf.mxu0 }
 0x278   : > { %v4156_v6 = vadd.f32 %v5499_v61, %v7956_v47 }
 0x279   : > { %v5501_v35 = vpop.f32.mrf.mxu1  ;;  %v4308_v38 = vpop.f32.mrf.mxu0 }
 0x27a   : > { %v5502_v53 = vadd.f32 %v5501_v35, %v5500_v51  ;;  %v8121_v54 = vadd.f32 %v5567_v13, %v4156_v6  ;;  %v8124_v4 = vadd.f32 %v4308_v38, %v4148_v3 }
 0x27b   : > { %v5503_v8 = vpop.f32.mrf.mxu1  ;;  %v5570_v23 = vpop.f32.mrf.mxu0 }
 0x27c   : > { %v4161_v29 = vadd.f32 %v5502_v53, %v7972_v57 }
 0x27d   : > { %v5504_v37 = vpop.f32.mrf.mxu1  ;;  %v4321_v63 = vpop.f32.mrf.mxu0 }
 0x27e   : > { %v5505_v15 = vadd.f32 %v5504_v37, %v5503_v8  ;;  %v8127_v47 = vadd.f32 %v4321_v63, %v4161_v29 }
 0x27f   : > { %v5506_v20 = vpop.f32.mrf.mxu1  ;;  %v5571_v46 = vpop.f32.mrf.mxu0 }
 0x280   : > { %v4164_v18 = vadd.f32 %v5505_v15, %v7976_v12 }
 0x281   : > { %v5507_v14 = vpop.f32.mrf.mxu1  ;;  %v4324_v30 = vpop.f32.mrf.mxu0 }
 0x282   : > { %v5508_v39 = vadd.f32 %v5507_v14, %v5506_v20  ;;  %v8133_v48 = vadd.f32 %v4324_v30, %v4164_v18 }
 0x283   : > { %v5509_v52 = vpop.f32.mrf.mxu1 }
 0x284   : > { %v4169_v41 = vadd.f32 %v5508_v39, %v7987_v33 }
 0x285   : > { %v5510_v55 = vpop.f32.mrf.mxu1 }
 0x286   : > { %v8131_v21 = vadd.f32 %v5570_v23, %v4169_v41  ;;  %v5511_v26 = vadd.f32 %v5510_v55, %v5509_v52  ;;  %4339 = sbr.rel (%p5125_p4) target bundleno = 653 (0x28d), region = 32 }
 0x288   : > { %v4172_v57 = vadd.f32 %v5511_v26, %v7989_v43 }
 0x28a   : > { %v8136_v61 = vadd.f32 %v5571_v46, %v4172_v57 }
 0x28b   : > { %v5727_v1 = vmov 0.0  }
 0x28c   : > { %4340 = vst [vmem:[%s8307_s3] sm:$0x1] %v5727_v1  ;;  %4341 = vst [vmem:[%s8308_s4] sm:$0x1] %v5727_v1 }
 0x28d PF: > { %v4343_v12 = vadd.f32 %v8053_v59, %v8047_v45  ;;  %v4383_v51 = vmul.f32 %v8047_v45, %v8047_v45  ;;  %v4384_v24 = vmul.f32 %v8053_v59, %v8053_v59  ;;  %v4385_v32 = vmul.f32 %v8044_v19, %v8044_v19 }
 0x28e   : > { %v4386_v50 = vmul.f32 %v8050_v17, %v8050_v17  ;;  %v4387_v6 = vmul.f32 %v8059_v42, %v8059_v42  ;;  %v4388_v8 = vmul.f32 %v8065_v31, %v8065_v31  ;;  %v5196_v53 = vpack.c.bf16 %v8053_v59, %v8047_v45 }
 0x28f   : > { %v4344_v33 = vadd.f32 %v4343_v12, %v8044_v19  ;;  %v4415_v13 = vadd.f32 %v4384_v24, %v4383_v51  ;;  %v5201_v3 = vpack.c.bf16 %v8050_v17, %v8044_v19  ;;  %v5206_v38 = vpack.c.bf16 %v8065_v31, %v8059_v42 }
 0x290   : > { %v5211_v20 = vpack.c.bf16 %v8062_v22, %v8056_v10  ;;  %v5216_v23 = vpack.c.bf16 %v8077_v27, %v8071_v25  ;;  %5197 = vst [vmem:[%s5780_s30] sm:$0xff] %v5196_v53   ;;  %v5221_v19 = vpack.c.bf16 %v8074_v11, %v8068_v60  ;;  %v5226_v45 = vpack.c.bf16 %v8087_v44, %v8082_v28 }
 0x291   : > { %v4345_v43 = vadd.f32 %v4344_v33, %v8050_v17  ;;  %v4416_v15 = vadd.f32 %v4415_v13, %v4385_v32  ;;  %5273 = vst [vmem:[%s5780_s30 + $0x8] sm:$0xff] %v5201_v3   ;;  %v5231_v17 = vpack.c.bf16 %v8084_v0, %v8079_v36  ;;  %5274 = vst [vmem:[%s5780_s30 + $0x10] sm:$0xff] %v5206_v38  }
 0x292   : > { %5275 = vst [vmem:[%s5780_s30 + $0x18] sm:$0xff] %v5211_v20   ;;  %5276 = vst [vmem:[%s5780_s30 + $0x20] sm:$0xff] %v5216_v23   ;;  %v5246_v29 = vpack.c.bf16 %v8112_v58, %v8107_v7  ;;  %v5251_v63 = vpack.c.bf16 %v8109_v34, %v8104_v62  ;;  %v5256_v39 = vpack.c.bf16 %v8124_v4, %v8118_v16 }
 0x293   : > { %v4346_v49 = vadd.f32 %v4345_v43, %v8059_v42  ;;  %v5236_v42 = vpack.c.bf16 %v8099_v40, %v8093_v9  ;;  %v4417_v14 = vadd.f32 %v4416_v15, %v4386_v50  ;;  %5277 = vst [vmem:[%s5780_s30 + $0x28] sm:$0xff] %v5221_v19   ;;  %5278 = vst [vmem:[%s5780_s30 + $0x30] sm:$0xff] %v5226_v45  }
 0x294   : > { %5279 = vst [vmem:[%s5780_s30 + $0x38] sm:$0xff] %v5231_v17   ;;  %v5261_v52 = vpack.c.bf16 %v8121_v54, %v8115_v5  ;;  %5282 = vst [vmem:[%s5780_s30 + $0x50] sm:$0xff] %v5246_v29   ;;  %v5266_v41 = vpack.c.bf16 %v8133_v48, %v8127_v47  ;;  %v5271_v18 = vpack.c.bf16 %v8136_v61, %v8131_v21 }
 0x295   : > { %v4347_v35 = vadd.f32 %v4346_v49, %v8065_v31  ;;  %v5241_v31 = vpack.c.bf16 %v8096_v2, %v8090_v56  ;;  %5280 = vst [vmem:[%s5780_s30 + $0x40] sm:$0xff] %v5236_v42   ;;  %v4389_v55 = vmul.f32 %v8056_v10, %v8056_v10  ;;  %v4418_v30 = vadd.f32 %v4417_v14, %v4387_v6 }
 0x296   : > { %5283 = vst [vmem:[%s5780_s30 + $0x58] sm:$0xff] %v5251_v63   ;;  %5284 = vst [vmem:[%s5780_s30 + $0x60] sm:$0xff] %v5256_v39   ;;  %v4390_v57 = vmul.f32 %v8062_v22, %v8062_v22  ;;  %v4391_v33 = vmul.f32 %v8071_v25, %v8071_v25  ;;  %v4392_v51 = vmul.f32 %v8077_v27, %v8077_v27 }
 0x297   : > { %v4348_v37 = vadd.f32 %v4347_v35, %v8056_v10  ;;  %5281 = vst [vmem:[%s5780_s30 + $0x48] sm:$0xff] %v5241_v31   ;;  %5285 = vst [vmem:[%s5780_s30 + $0x68] sm:$0xff] %v5261_v52   ;;  %v4419_v1 = vadd.f32 %v4418_v30, %v4388_v8  ;;  %v4393_v32 = vmul.f32 %v8068_v60, %v8068_v60 }
 0x298   : > { %5286 = vst [vmem:[%s5780_s30 + $0x70] sm:$0xff] %v5266_v41   ;;  %5287 = vst [vmem:[%s5780_s30 + $0x78] sm:$0xff] %v5271_v18   ;;  %v4394_v50 = vmul.f32 %v8074_v11, %v8074_v11  ;;  %v4395_v8 = vmul.f32 %v8082_v28, %v8082_v28  ;;  %v4396_v53 = vmul.f32 %v8087_v44, %v8087_v44 }
 0x299   : > { %v4349_v59 = vadd.f32 %v4348_v37, %v8062_v22  ;;  %v4420_v43 = vadd.f32 %v4419_v1, %v4389_v55  ;;  %v4397_v37 = vmul.f32 %v8079_v36, %v8079_v36  ;;  %v4398_v20 = vmul.f32 %v8084_v0, %v8084_v0 }
 0x29a   : > { %v4399_v15 = vmul.f32 %v8093_v9, %v8093_v9  ;;  %v4400_v45 = vmul.f32 %v8099_v40, %v8099_v40  ;;  %v4402_v31 = vmul.f32 %v8096_v2, %v8096_v2  ;;  %v4403_v14 = vmul.f32 %v8107_v7, %v8107_v7 }
 0x29b   : > { %v4350_v46 = vadd.f32 %v4349_v59, %v8071_v25  ;;  %v4421_v24 = vadd.f32 %v4420_v43, %v4390_v57  ;;  %v4401_v59 = vmul.f32 %v8090_v56, %v8090_v56  ;;  %v4404_v39 = vmul.f32 %v8112_v58, %v8112_v58 }
 0x29c   : > { %v4406_v18 = vmul.f32 %v8109_v34, %v8109_v34  ;;  %v4407_v30 = vmul.f32 %v8118_v16, %v8118_v16  ;;  %v4408_v57 = vmul.f32 %v8124_v4, %v8124_v4  ;;  %v4410_v43 = vmul.f32 %v8121_v54, %v8121_v54 }
 0x29d   : > { %v4351_v26 = vadd.f32 %v4350_v46, %v8077_v27  ;;  %v4422_v35 = vadd.f32 %v4421_v24, %v4391_v33  ;;  %v4405_v46 = vmul.f32 %v8104_v62, %v8104_v62 }
 0x29f   : > { %v4352_v12 = vadd.f32 %v4351_v26, %v8068_v60  ;;  %v4423_v6 = vadd.f32 %v4422_v35, %v4392_v51  ;;  %v4411_v51 = vmul.f32 %v8127_v47, %v8127_v47  ;;  %v4413_v35 = vmul.f32 %v8131_v21, %v8131_v21 }
 0x2a1   : > { %v4353_v10 = vadd.f32 %v4352_v12, %v8074_v11  ;;  %v4424_v13 = vadd.f32 %v4423_v6, %v4393_v32  ;;  %v4409_v12 = vmul.f32 %v8115_v5, %v8115_v5 }
 0x2a3   : > { %v4354_v49 = vadd.f32 %v4353_v10, %v8082_v28  ;;  %v4425_v3 = vadd.f32 %v4424_v13, %v4394_v50 }
 0x2a5   : > { %v4355_v22 = vadd.f32 %v4354_v49, %v8087_v44  ;;  %v4426_v38 = vadd.f32 %v4425_v3, %v4395_v8  ;;  %v4412_v49 = vmul.f32 %v8133_v48, %v8133_v48 }
 0x2a7   : > { %v4356_v25 = vadd.f32 %v4355_v22, %v8079_v36  ;;  %v4427_v23 = vadd.f32 %v4426_v38, %v4396_v53 }
 0x2a9   : > { %v4357_v27 = vadd.f32 %v4356_v25, %v8084_v0  ;;  %v4428_v19 = vadd.f32 %v4427_v23, %v4397_v37 }
 0x2ab   : > { %v4358_v60 = vadd.f32 %v4357_v27, %v8093_v9  ;;  %v4429_v17 = vadd.f32 %v4428_v19, %v4398_v20 }
 0x2ad   : > { %v4359_v11 = vadd.f32 %v4358_v60, %v8099_v40  ;;  %v4430_v42 = vadd.f32 %v4429_v17, %v4399_v15 }
 0x2af   : > { %v4360_v28 = vadd.f32 %v4359_v11, %v8090_v56  ;;  %v4431_v29 = vadd.f32 %v4430_v42, %v4400_v45  ;;  %v4382_v11 = vld [vmem:[%s8308_s4] sm:$0x1] }
 0x2b1   : > { %v4361_v44 = vadd.f32 %v4360_v28, %v8096_v2  ;;  %v4432_v63 = vadd.f32 %v4431_v29, %v4401_v59 }
 0x2b3   : > { %v4362_v36 = vadd.f32 %v4361_v44, %v8107_v7  ;;  %v4433_v52 = vadd.f32 %v4432_v63, %v4402_v31 }
 0x2b5   : > { %v4363_v0 = vadd.f32 %v4362_v36, %v8112_v58  ;;  %v4434_v41 = vadd.f32 %v4433_v52, %v4403_v14 }
 0x2b7   : > { %v4364_v9 = vadd.f32 %v4363_v0, %v8104_v62  ;;  %v4435_v55 = vadd.f32 %v4434_v41, %v4404_v39 }
 0x2b9   : > { %v4365_v40 = vadd.f32 %v4364_v9, %v8109_v34  ;;  %v4436_v26 = vadd.f32 %v4435_v55, %v4405_v46 }
 0x2bb   : > { %v4366_v56 = vadd.f32 %v4365_v40, %v8118_v16  ;;  %v4437_v1 = vadd.f32 %v4436_v26, %v4406_v18 }
 0x2bd   : > { %v4367_v2 = vadd.f32 %v4366_v56, %v8124_v4  ;;  %v4438_v33 = vadd.f32 %v4437_v1, %v4407_v30 }
 0x2bf   : > { %v4368_v7 = vadd.f32 %v4367_v2, %v8115_v5  ;;  %v4439_v10 = vadd.f32 %v4438_v33, %v4408_v57 }
 0x2c1   : > { %v4369_v58 = vadd.f32 %v4368_v7, %v8121_v54  ;;  %v4440_v24 = vadd.f32 %v4439_v10, %v4409_v12  ;;  %v4414_v54 = vmul.f32 %v8136_v61, %v8136_v61 }
 0x2c3   : > { %v4370_v62 = vadd.f32 %v4369_v58, %v8127_v47  ;;  %v4441_v32 = vadd.f32 %v4440_v24, %v4410_v43 }
 0x2c5   : > { %v4371_v34 = vadd.f32 %v4370_v62, %v8133_v48  ;;  %v4442_v22 = vadd.f32 %v4441_v32, %v4411_v51  ;;  %v4342_v48 = vld [vmem:[%s8307_s3] sm:$0x1] }
 0x2c7   : > { %v4372_v16 = vadd.f32 %v4371_v34, %v8131_v21  ;;  %v4443_v6 = vadd.f32 %v4442_v22, %v4412_v49 }
 0x2c9   : > { %v4373_v4 = vadd.f32 %v4372_v16, %v8136_v61  ;;  %v4444_v8 = vadd.f32 %v4443_v6, %v4413_v35 }
 0x2cb   : > { %v4374_v5 = vrot.slane %v4373_v4, 4  ;;  %v4445_v13 = vadd.f32 %v4444_v8, %v4414_v54 }
 0x2cd   : > { %v4375_v50 = vadd.f32 %v4374_v5, %v4373_v4  ;;  %v4446_v53 = vrot.slane %v4445_v13, 4 }
 0x2cf   : > { %v4376_v25 = vrot.slane %v4375_v50, 2  ;;  %v4447_v60 = vadd.f32 %v4446_v53, %v4445_v13 }
 0x2d1   : > { %v4377_v47 = vadd.f32 %v4376_v25, %v4375_v50  ;;  %v4448_v21 = vrot.slane %v4447_v60, 2 }
 0x2d3   : > { %v4378_v27 = vrot.slane %v4377_v47, 1  ;;  %v4449_v61 = vadd.f32 %v4448_v21, %v4447_v60 }
 0x2d5   : > { %v4379_v3 = vadd.f32 %v4378_v27, %v4377_v47  ;;  %v4450_v38 = vrot.slane %v4449_v61, 1 }
 0x2d7   : > { %v4380_v37 = vadd.f32 %v4379_v3, %v4342_v48  ;;  %v4451_v20 = vadd.f32 %v4450_v38, %v4449_v61 }
 0x2d9   : > { %4381 = vst [vmem:[%s8307_s3] sm:$0x1] %v4380_v37  ;;  %v4452_v23 = vadd.f32 %v4451_v20, %v4382_v11 }
 0x2db   : > { %4453 = vst [vmem:[%s8308_s4] sm:$0x1] %v4452_v23 }
 0x2dc PF: > { %s15_s15 = sadd.s32 1, %s5724_s15  }
 0x2dd   : > { %p12_p5 = scmp.ge.s32.totalorder %s15_s15, 4  }
 0x2df   :  { %14 = sbr.rel (!%p12_p5) target bundleno = 1 (0x1), region = 80 }

</bundles_post_ra>
